<compile_context>
chip_gen: v7x
topology: tpu7x:2x2x1
jax: 0.10.0
libtpu: 0.0.40
codegen_flags: <defaults>
</compile_context>

<pallas_src>
import jax
import jax.numpy as jnp
from jax.experimental import pallas as pl
from jax.experimental.pallas import tpu as pltpu

LN_EPS = 1e-5  # PyTorch LayerNorm default


def _layernorm(x, gamma, beta):
    mu = jnp.mean(x, axis=-1, keepdims=True)
    var = jnp.mean((x - mu) ** 2, axis=-1, keepdims=True)  # biased, like torch
    return (x - mu) * jax.lax.rsqrt(var + LN_EPS) * gamma + beta


def critic_kernel(x_ref,
                  w_fold_ref, w_ff1_ref, b_ff1_ref, w_ff2_ref,
                  w_h1_ref, w_h2_ref, w_h3_ref, vec_ref, b_h3_ref,
                  out_ref):
    cdt = w_fold_ref.dtype                    # MXU operand dtype (bf16)
    vec = vec_ref[...]                        # (8, hidden) f32 packed params

    def mm(a, w_ref):
        # bf16 operands, f32 accumulation on the MXU.
        return jnp.dot(a.astype(cdt), w_ref[...],
                       preferred_element_type=jnp.float32)

    x = x_ref[...]                            # (block_b, state_dim) f32

    # ---- input projection + (seq_len==1) self-attention, fully folded ------
    h1 = _layernorm(mm(x, w_fold_ref) + vec[0:1], vec[1:2], vec[2:3])

    # ---- feed-forward block (wide intermediate kept in bf16) ---------------
    ff = jnp.maximum(mm(h1, w_ff1_ref) + b_ff1_ref[...], 0.0).astype(cdt)
    ff = mm(ff, w_ff2_ref) + vec[3:4]
    h2 = _layernorm(h1 + ff, vec[4:5], vec[5:6])

    # ---- value head: Linear -> ReLU -> Linear -> ReLU -> Linear(->1) -------
    h2d = w_h1_ref.shape[1]
    h4d = w_h2_ref.shape[1]
    z = jnp.maximum(mm(h2, w_h1_ref) + vec[6:7, :h2d], 0.0).astype(cdt)
    z = jnp.maximum(mm(z, w_h2_ref) + vec[7:8, :h4d], 0.0)      # (block_b, h4) f32

    # Final (h4 -> 1) layer on VPU/XLU, written lane-dense as a (1, block_b)
    # row.  Transpose in bf16 (half the XLU footprint), accumulate in f32.
    zT = z.astype(cdt).T                                         # (h4, block_b)
    out_ref[...] = (jnp.sum(zT * w_h3_ref[...], axis=0, keepdims=True)
                    + b_h3_ref[0])                               # (1, block_b)


def prepare_params(raw, compute_dtype=jnp.bfloat16):
    """Fold attention into the input projection, pack small vectors, cast weights."""
    f32 = jnp.float32
    hidden = raw["w_in"].shape[1]

    # seq_len == 1  =>  attention output is exactly the V then O projection.
    w_vo = raw["w_v"].astype(f32) @ raw["w_o"].astype(f32)
    b_vo = raw["b_v"].astype(f32) @ raw["w_o"].astype(f32) + raw["b_o"].astype(f32)
    eye_plus_vo = jnp.eye(hidden, dtype=f32) + w_vo
    # h + attn = x @ (w_in @ (I + w_vo)) + (b_in @ (I + w_vo) + b_vo)   (exact)
    w_fold = raw["w_in"].astype(f32) @ eye_plus_vo
    b_fold = raw["b_in"].astype(f32) @ eye_plus_vo + b_vo

    def row(v):
        v = v.astype(f32).reshape(-1)
        return jnp.pad(v, (0, hidden - v.shape[0]))

    vecs = jnp.stack([
        row(b_fold),
        row(raw["g1"]), row(raw["bt1"]),
        row(raw["b_ff2"]), row(raw["g2"]), row(raw["bt2"]),
        row(raw["b_h1"]), row(raw["b_h2"]),
    ], axis=0)                                                # (8, hidden) f32

    return dict(
        w_fold=w_fold.astype(compute_dtype),
        w_ff1=raw["w_ff1"].astype(compute_dtype),
        b_ff1=raw["b_ff1"].astype(f32).reshape(1, -1),
        w_ff2=raw["w_ff2"].astype(compute_dtype),
        w_h1=raw["w_h1"].astype(compute_dtype),
        w_h2=raw["w_h2"].astype(compute_dtype),
        w_h3=raw["w_h3"].astype(f32),          # (h4, 1), f32 for the VPU epilogue
        vecs=vecs,
        b_h3=raw["b_h3"].astype(f32).reshape(1,),
    )


def _num_tensorcores():
    """2 on v7x (megacore sharding pays off), 1 on v5e/v6e (grid = serial loop)."""
    try:
        kind = jax.devices()[0].device_kind.lower()
        if "v7" in kind or "7x" in kind:
            return 2
    except Exception:
        pass
    return 1


def critic_net(x, prep, *, block_b=None):
    B, state_dim = x.shape
    if block_b is None:
        n_tc = _num_tensorcores()
        # Single grid step on single-TC chips; one step per TC on v7x; cap
        # tiles at 512 rows for larger batches (VMEM is nowhere near binding).
        n_steps = max(n_tc, pl.cdiv(B, 512))
        block_b = pl.cdiv(B, n_steps)
        # Lane-dense (1, block_b) output: multi-step grids need 128-multiples,
        # a single full-extent step only needs sublane (8) alignment.
        align = 128 if n_steps > 1 else 8
        block_b = pl.cdiv(block_b, align) * align

    n_steps = pl.cdiv(B, block_b)
    B_pad = n_steps * block_b
    if B_pad != B:
        x = jnp.pad(x, ((0, B_pad - B), (0, 0)))   # padded rows are sliced off below

    def rep(arr):
        zeros = (0,) * arr.ndim
        return pl.BlockSpec(arr.shape, lambda i, _z=zeros: _z)

    order = ("w_fold", "w_ff1", "b_ff1", "w_ff2", "w_h1", "w_h2", "w_h3", "vecs")
    weights = [prep[k] for k in order]

    in_specs = [pl.BlockSpec((block_b, state_dim), lambda i: (i, 0))]
    in_specs += [rep(w) for w in weights]
    in_specs += [pl.BlockSpec(memory_space=pltpu.MemorySpace.SMEM)]   # b_h3 scalar

    out = pl.pallas_call(
        critic_kernel,
        out_shape=jax.ShapeDtypeStruct((1, B_pad), jnp.float32),  # lane-dense row
        grid=(n_steps,),
        in_specs=in_specs,
        out_specs=pl.BlockSpec((1, block_b), lambda i: (0, i)),
        compiler_params=pltpu.CompilerParams(
            dimension_semantics=("parallel",)),
    )(x, *weights, prep["b_h3"])
    return out[0, :B].reshape(B, 1)


def init_params(key, state_dim, hidden_dim):
    """Raw f32 parameters in (in_features, out_features) layout."""
    h2, h4, ff = hidden_dim // 2, hidden_dim // 4, hidden_dim * 4
    w_shapes = {
        "w_in": (state_dim, hidden_dim),
        "w_v": (hidden_dim, hidden_dim), "w_o": (hidden_dim, hidden_dim),
        "w_ff1": (hidden_dim, ff), "w_ff2": (ff, hidden_dim),
        "w_h1": (hidden_dim, h2), "w_h2": (h2, h4), "w_h3": (h4, 1),
    }
    b_shapes = {
        "b_in": (hidden_dim,), "b_v": (hidden_dim,), "b_o": (hidden_dim,),
        "b_ff1": (ff,), "b_ff2": (hidden_dim,),
        "b_h1": (h2,), "b_h2": (h4,), "b_h3": (1,),
    }
    params = {
        "g1": jnp.ones((hidden_dim,), jnp.float32),
        "bt1": jnp.zeros((hidden_dim,), jnp.float32),
        "g2": jnp.ones((hidden_dim,), jnp.float32),
        "bt2": jnp.zeros((hidden_dim,), jnp.float32),
    }
    for name, shp in w_shapes.items():
        key, sub = jax.random.split(key)
        params[name] = (jax.random.normal(sub, shp, jnp.float32)
                        / jnp.sqrt(jnp.float32(shp[0])))
    for name, shp in b_shapes.items():
        key, sub = jax.random.split(key)
        params[name] = 0.01 * jax.random.normal(sub, shp, jnp.float32)
    return params


def critic_ref(x, prep):
    """Pure-JAX mirror of the kernel (same folds, packing and bf16 casts)."""
    cdt = prep["w_fold"].dtype
    vec = prep["vecs"]

    def mm(a, w):
        return jnp.dot(a.astype(cdt), w, preferred_element_type=jnp.float32)

    h1 = _layernorm(mm(x, prep["w_fold"]) + vec[0:1], vec[1:2], vec[2:3])
    ff = jnp.maximum(mm(h1, prep["w_ff1"]) + prep["b_ff1"], 0.0).astype(cdt)
    ff = mm(ff, prep["w_ff2"]) + vec[3:4]
    h2 = _layernorm(h1 + ff, vec[4:5], vec[5:6])
    h2d = prep["w_h1"].shape[1]
    h4d = prep["w_h2"].shape[1]
    z = jnp.maximum(mm(h2, prep["w_h1"]) + vec[6:7, :h2d], 0.0).astype(cdt)
    z = jnp.maximum(mm(z, prep["w_h2"]) + vec[7:8, :h4d], 0.0)
    zc = z.astype(cdt).astype(jnp.float32)
    return zc @ prep["w_h3"] + prep["b_h3"][0]


def critic_ref_f32(x, raw):
    """Exact eval-mode module semantics, unfused, all-f32 (fidelity check)."""
    h = x @ raw["w_in"] + raw["b_in"]
    v = h @ raw["w_v"] + raw["b_v"]
    attn = v @ raw["w_o"] + raw["b_o"]
    h1 = _layernorm(h + attn, raw["g1"], raw["bt1"])
    ff = jnp.maximum(h1 @ raw["w_ff1"] + raw["b_ff1"], 0.0) @ raw["w_ff2"] + raw["b_ff2"]
    h2 = _layernorm(h1 + ff, raw["g2"], raw["bt2"])
    z = jnp.maximum(h2 @ raw["w_h1"] + raw["b_h1"], 0.0)
    z = jnp.maximum(z @ raw["w_h2"] + raw["b_h2"], 0.0)
    return z @ raw["w_h3"] + raw["b_h3"]


if __name__ == "__main__":
    # Small shapes consistent with the module (state -> hidden, 1 encoder layer
    # with seq_len 1, 3-layer value head).  On v5e/v6e this runs as a single
    # 256-row grid step; on v7x as two parallel 128-row steps.
    B, STATE_DIM, HIDDEN_DIM = 256, 256, 128   # num_heads=8 -> head_dim=16

    key = jax.random.PRNGKey(0)
    key, xkey = jax.random.split(key)
    raw = init_params(key, STATE_DIM, HIDDEN_DIM)
    prep = prepare_params(raw, compute_dtype=jnp.bfloat16)
    x = jax.random.normal(xkey, (B, STATE_DIM), jnp.float32)

    value = jax.block_until_ready(critic_net(x, prep))
    assert value.shape == (B, 1), value.shape

    # Tight check against a pure-JAX mirror of the exact kernel computation.
    ref = critic_ref(x, prep)
    err = float(jnp.max(jnp.abs(value - ref)))
    assert err < 5e-3, err

    # Coarse fidelity check against the full-precision module semantics
    # (difference is only bf16 rounding of the folded/cast weights).
    ref32 = critic_ref_f32(x, raw)
    err32 = float(jnp.max(jnp.abs(value - ref32)))
    assert err32 < 0.3, err32

    # Non-multiple batch size exercises the wrapper-side padding path.
    B2 = 200
    value2 = jax.block_until_ready(critic_net(x[:B2], prep))
    assert value2.shape == (B2, 1), value2.shape
    err2 = float(jnp.max(jnp.abs(value2 - ref[:B2])))
    assert err2 < 5e-3, err2

    print("KERNEL_OK")
</pallas_src>

<mosaic_0001>
module attributes {stable_mosaic.version = 11 : i64} {
  func.func @critic_kernel(%arg0: i32, %arg1: memref<256x256xf32, #tpu.memory_space<vmem>>, %arg2: memref<256x128xbf16, #tpu.memory_space<vmem>>, %arg3: memref<128x512xbf16, #tpu.memory_space<vmem>>, %arg4: memref<1x512xf32, #tpu.memory_space<vmem>>, %arg5: memref<512x128xbf16, #tpu.memory_space<vmem>>, %arg6: memref<128x64xbf16, #tpu.memory_space<vmem>>, %arg7: memref<64x32xbf16, #tpu.memory_space<vmem>>, %arg8: memref<32x1xf32, #tpu.memory_space<vmem>>, %arg9: memref<8x128xf32, #tpu.memory_space<vmem>>, %arg10: memref<1xf32, #tpu.memory_space<smem>>, %arg11: memref<1x256xf32, #tpu.memory_space<vmem>>) attributes {dimension_semantics = [#tpu.dimension_semantics<parallel>], iteration_bounds = array<i64: 1>, scalar_prefetch = 0 : i64, scratch_operands = 0 : i64, tpu.core_type = #tpu.core_type<tc>, window_params = [{transform_indices = @transform_0, window_bounds = array<i64: 256, 256>}, {pipeline_mode = #tpu.pipeline_mode<synchronous>, transform_indices = @transform_1, window_bounds = array<i64: 256, 128>}, {pipeline_mode = #tpu.pipeline_mode<synchronous>, transform_indices = @transform_2, window_bounds = array<i64: 128, 512>}, {pipeline_mode = #tpu.pipeline_mode<synchronous>, transform_indices = @transform_3, window_bounds = array<i64: 1, 512>}, {pipeline_mode = #tpu.pipeline_mode<synchronous>, transform_indices = @transform_4, window_bounds = array<i64: 512, 128>}, {pipeline_mode = #tpu.pipeline_mode<synchronous>, transform_indices = @transform_5, window_bounds = array<i64: 128, 64>}, {pipeline_mode = #tpu.pipeline_mode<synchronous>, transform_indices = @transform_6, window_bounds = array<i64: 64, 32>}, {pipeline_mode = #tpu.pipeline_mode<synchronous>, transform_indices = @transform_7, window_bounds = array<i64: 32, 1>}, {pipeline_mode = #tpu.pipeline_mode<synchronous>, transform_indices = @transform_8, window_bounds = array<i64: 8, 128>}, {transform_indices = @transform_9, window_bounds = array<i64: 1>}, {transform_indices = @transform_10, window_bounds = array<i64: 1, 256>}]} {
    %c0 = arith.constant 0 : index
    %c0_0 = arith.constant 0 : index
    %0 = vector.load %arg9[%c0, %c0_0] : memref<8x128xf32, #tpu.memory_space<vmem>>, vector<8x128xf32>
    %c0_1 = arith.constant 0 : index
    %c0_2 = arith.constant 0 : index
    %1 = vector.load %arg1[%c0_1, %c0_2] : memref<256x256xf32, #tpu.memory_space<vmem>>, vector<256x256xf32>
    %2 = arith.truncf %1 : vector<256x256xf32> to vector<256x256xbf16>
    %c0_3 = arith.constant 0 : index
    %c0_4 = arith.constant 0 : index
    %3 = vector.load %arg2[%c0_3, %c0_4] : memref<256x128xbf16, #tpu.memory_space<vmem>>, vector<256x128xbf16>
    %cst = arith.constant dense<0.000000e+00> : vector<256x128xf32>
    %4 = tpu.matmul %2, %3, %cst {dimension_numbers = #tpu.dot_dimension_numbers<[1], [0], [0], [1], [0, 0, 1, 1], [], []>} : vector<256x256xbf16>, vector<256x128xbf16>, vector<256x128xf32> -> vector<256x128xf32>
    %5 = vector.extract_strided_slice %0 {offsets = [0, 0], sizes = [1, 128], strides = [1, 1]} : vector<8x128xf32> to vector<1x128xf32>
    %6 = vector.broadcast %5 : vector<1x128xf32> to vector<256x128xf32>
    %7 = arith.addf %4, %6 : vector<256x128xf32>
    %8 = vector.extract_strided_slice %0 {offsets = [1, 0], sizes = [1, 128], strides = [1, 1]} : vector<8x128xf32> to vector<1x128xf32>
    %9 = vector.extract_strided_slice %0 {offsets = [2, 0], sizes = [1, 128], strides = [1, 1]} : vector<8x128xf32> to vector<1x128xf32>
    %cst_5 = arith.constant dense<0.000000e+00> : vector<256xf32>
    %10 = vector.multi_reduction <add>, %7, %cst_5 [1] : vector<256x128xf32> to vector<256xf32>
    %11 = vector.shape_cast %10 : vector<256xf32> to vector<256x1xf32>
    %cst_6 = arith.constant 1.280000e+02 : f32
    %12 = vector.broadcast %cst_6 : f32 to vector<256x1xf32>
    %13 = arith.divf %11, %12 : vector<256x1xf32>
    %14 = vector.broadcast %13 : vector<256x1xf32> to vector<256x128xf32>
    %15 = arith.subf %7, %14 : vector<256x128xf32>
    %16 = arith.mulf %15, %15 : vector<256x128xf32>
    %cst_7 = arith.constant dense<0.000000e+00> : vector<256xf32>
    %17 = vector.multi_reduction <add>, %16, %cst_7 [1] : vector<256x128xf32> to vector<256xf32>
    %18 = vector.shape_cast %17 : vector<256xf32> to vector<256x1xf32>
    %cst_8 = arith.constant 1.280000e+02 : f32
    %19 = vector.broadcast %cst_8 : f32 to vector<256x1xf32>
    %20 = arith.divf %18, %19 : vector<256x1xf32>
    %21 = vector.broadcast %13 : vector<256x1xf32> to vector<256x128xf32>
    %22 = arith.subf %7, %21 : vector<256x128xf32>
    %cst_9 = arith.constant 9.99999974E-6 : f32
    %23 = vector.broadcast %cst_9 : f32 to vector<256x1xf32>
    %24 = arith.addf %20, %23 : vector<256x1xf32>
    %25 = math.rsqrt %24 : vector<256x1xf32>
    %26 = vector.broadcast %25 : vector<256x1xf32> to vector<256x128xf32>
    %27 = arith.mulf %22, %26 : vector<256x128xf32>
    %28 = vector.broadcast %8 : vector<1x128xf32> to vector<256x128xf32>
    %29 = arith.mulf %27, %28 : vector<256x128xf32>
    %30 = vector.broadcast %9 : vector<1x128xf32> to vector<256x128xf32>
    %31 = arith.addf %29, %30 : vector<256x128xf32>
    %32 = arith.truncf %31 : vector<256x128xf32> to vector<256x128xbf16>
    %c0_10 = arith.constant 0 : index
    %c0_11 = arith.constant 0 : index
    %33 = vector.load %arg3[%c0_10, %c0_11] : memref<128x512xbf16, #tpu.memory_space<vmem>>, vector<128x512xbf16>
    %cst_12 = arith.constant dense<0.000000e+00> : vector<256x512xf32>
    %34 = tpu.matmul %32, %33, %cst_12 {dimension_numbers = #tpu.dot_dimension_numbers<[1], [0], [0], [1], [0, 0, 1, 1], [], []>} : vector<256x128xbf16>, vector<128x512xbf16>, vector<256x512xf32> -> vector<256x512xf32>
    %c0_13 = arith.constant 0 : index
    %c0_14 = arith.constant 0 : index
    %35 = vector.load %arg4[%c0_13, %c0_14] : memref<1x512xf32, #tpu.memory_space<vmem>>, vector<1x512xf32>
    %36 = vector.broadcast %35 : vector<1x512xf32> to vector<256x512xf32>
    %37 = arith.addf %34, %36 : vector<256x512xf32>
    %cst_15 = arith.constant 0.000000e+00 : f32
    %38 = vector.broadcast %cst_15 : f32 to vector<256x512xf32>
    %39 = arith.maximumf %37, %38 : vector<256x512xf32>
    %40 = arith.truncf %39 : vector<256x512xf32> to vector<256x512xbf16>
    %c0_16 = arith.constant 0 : index
    %c0_17 = arith.constant 0 : index
    %41 = vector.load %arg5[%c0_16, %c0_17] : memref<512x128xbf16, #tpu.memory_space<vmem>>, vector<512x128xbf16>
    %cst_18 = arith.constant dense<0.000000e+00> : vector<256x128xf32>
    %42 = tpu.matmul %40, %41, %cst_18 {dimension_numbers = #tpu.dot_dimension_numbers<[1], [0], [0], [1], [0, 0, 1, 1], [], []>} : vector<256x512xbf16>, vector<512x128xbf16>, vector<256x128xf32> -> vector<256x128xf32>
    %43 = vector.extract_strided_slice %0 {offsets = [3, 0], sizes = [1, 128], strides = [1, 1]} : vector<8x128xf32> to vector<1x128xf32>
    %44 = vector.broadcast %43 : vector<1x128xf32> to vector<256x128xf32>
    %45 = arith.addf %42, %44 : vector<256x128xf32>
    %46 = arith.addf %31, %45 : vector<256x128xf32>
    %47 = vector.extract_strided_slice %0 {offsets = [4, 0], sizes = [1, 128], strides = [1, 1]} : vector<8x128xf32> to vector<1x128xf32>
    %48 = vector.extract_strided_slice %0 {offsets = [5, 0], sizes = [1, 128], strides = [1, 1]} : vector<8x128xf32> to vector<1x128xf32>
    %cst_19 = arith.constant dense<0.000000e+00> : vector<256xf32>
    %49 = vector.multi_reduction <add>, %46, %cst_19 [1] : vector<256x128xf32> to vector<256xf32>
    %50 = vector.shape_cast %49 : vector<256xf32> to vector<256x1xf32>
    %cst_20 = arith.constant 1.280000e+02 : f32
    %51 = vector.broadcast %cst_20 : f32 to vector<256x1xf32>
    %52 = arith.divf %50, %51 : vector<256x1xf32>
    %53 = vector.broadcast %52 : vector<256x1xf32> to vector<256x128xf32>
    %54 = arith.subf %46, %53 : vector<256x128xf32>
    %55 = arith.mulf %54, %54 : vector<256x128xf32>
    %cst_21 = arith.constant dense<0.000000e+00> : vector<256xf32>
    %56 = vector.multi_reduction <add>, %55, %cst_21 [1] : vector<256x128xf32> to vector<256xf32>
    %57 = vector.shape_cast %56 : vector<256xf32> to vector<256x1xf32>
    %cst_22 = arith.constant 1.280000e+02 : f32
    %58 = vector.broadcast %cst_22 : f32 to vector<256x1xf32>
    %59 = arith.divf %57, %58 : vector<256x1xf32>
    %60 = vector.broadcast %52 : vector<256x1xf32> to vector<256x128xf32>
    %61 = arith.subf %46, %60 : vector<256x128xf32>
    %cst_23 = arith.constant 9.99999974E-6 : f32
    %62 = vector.broadcast %cst_23 : f32 to vector<256x1xf32>
    %63 = arith.addf %59, %62 : vector<256x1xf32>
    %64 = math.rsqrt %63 : vector<256x1xf32>
    %65 = vector.broadcast %64 : vector<256x1xf32> to vector<256x128xf32>
    %66 = arith.mulf %61, %65 : vector<256x128xf32>
    %67 = vector.broadcast %47 : vector<1x128xf32> to vector<256x128xf32>
    %68 = arith.mulf %66, %67 : vector<256x128xf32>
    %69 = vector.broadcast %48 : vector<1x128xf32> to vector<256x128xf32>
    %70 = arith.addf %68, %69 : vector<256x128xf32>
    %71 = arith.truncf %70 : vector<256x128xf32> to vector<256x128xbf16>
    %c0_24 = arith.constant 0 : index
    %c0_25 = arith.constant 0 : index
    %72 = vector.load %arg6[%c0_24, %c0_25] : memref<128x64xbf16, #tpu.memory_space<vmem>>, vector<128x64xbf16>
    %cst_26 = arith.constant dense<0.000000e+00> : vector<256x64xf32>
    %73 = tpu.matmul %71, %72, %cst_26 {dimension_numbers = #tpu.dot_dimension_numbers<[1], [0], [0], [1], [0, 0, 1, 1], [], []>} : vector<256x128xbf16>, vector<128x64xbf16>, vector<256x64xf32> -> vector<256x64xf32>
    %74 = vector.extract_strided_slice %0 {offsets = [6, 0], sizes = [1, 64], strides = [1, 1]} : vector<8x128xf32> to vector<1x64xf32>
    %75 = vector.broadcast %74 : vector<1x64xf32> to vector<256x64xf32>
    %76 = arith.addf %73, %75 : vector<256x64xf32>
    %cst_27 = arith.constant 0.000000e+00 : f32
    %77 = vector.broadcast %cst_27 : f32 to vector<256x64xf32>
    %78 = arith.maximumf %76, %77 : vector<256x64xf32>
    %79 = arith.truncf %78 : vector<256x64xf32> to vector<256x64xbf16>
    %c0_28 = arith.constant 0 : index
    %c0_29 = arith.constant 0 : index
    %80 = vector.load %arg7[%c0_28, %c0_29] : memref<64x32xbf16, #tpu.memory_space<vmem>>, vector<64x32xbf16>
    %cst_30 = arith.constant dense<0.000000e+00> : vector<256x32xf32>
    %81 = tpu.matmul %79, %80, %cst_30 {dimension_numbers = #tpu.dot_dimension_numbers<[1], [0], [0], [1], [0, 0, 1, 1], [], []>} : vector<256x64xbf16>, vector<64x32xbf16>, vector<256x32xf32> -> vector<256x32xf32>
    %82 = vector.extract_strided_slice %0 {offsets = [7, 0], sizes = [1, 32], strides = [1, 1]} : vector<8x128xf32> to vector<1x32xf32>
    %83 = vector.broadcast %82 : vector<1x32xf32> to vector<256x32xf32>
    %84 = arith.addf %81, %83 : vector<256x32xf32>
    %cst_31 = arith.constant 0.000000e+00 : f32
    %85 = vector.broadcast %cst_31 : f32 to vector<256x32xf32>
    %86 = arith.maximumf %84, %85 : vector<256x32xf32>
    %87 = arith.truncf %86 : vector<256x32xf32> to vector<256x32xbf16>
    %88 = tpu.transpose %87, [1, 0] : vector<256x32xbf16> -> vector<32x256xbf16>
    %c0_32 = arith.constant 0 : index
    %c0_33 = arith.constant 0 : index
    %89 = vector.load %arg8[%c0_32, %c0_33] : memref<32x1xf32, #tpu.memory_space<vmem>>, vector<32x1xf32>
    %90 = arith.extf %88 : vector<32x256xbf16> to vector<32x256xf32>
    %91 = vector.broadcast %89 : vector<32x1xf32> to vector<32x256xf32>
    %92 = arith.mulf %90, %91 : vector<32x256xf32>
    %cst_34 = arith.constant dense<0.000000e+00> : vector<256xf32>
    %93 = vector.multi_reduction <add>, %92, %cst_34 [0] : vector<32x256xf32> to vector<256xf32>
    %94 = vector.shape_cast %93 : vector<256xf32> to vector<1x256xf32>
    %c0_35 = arith.constant 0 : index
    %95 = memref.load %arg10[%c0_35] : memref<1xf32, #tpu.memory_space<smem>>
    %96 = vector.broadcast %95 : f32 to vector<1x256xf32>
    %97 = arith.addf %94, %96 : vector<1x256xf32>
    %c0_36 = arith.constant 0 : index
    %c0_37 = arith.constant 0 : index
    %98 = vector.load %arg11[%c0_36, %c0_37] : memref<1x256xf32, #tpu.memory_space<vmem>>, vector<1x256xf32>
    tpu.vector_store %arg11[%c0_36, %c0_37], %97 {strides = array<i32>} : memref<1x256xf32, #tpu.memory_space<vmem>>, vector<1x256xf32>,
    return
  }
  func.func @transform_0(%arg0: i32) -> (i32, i32) {
    %c0_i32 = arith.constant 0 : i32
    %c0_i32_0 = arith.constant 0 : i32
    return %arg0, %c0_i32 : i32, i32
  }
  func.func @transform_1(%arg0: i32) -> (i32, i32) {
    %c0_i32 = arith.constant 0 : i32
    %c0_i32_0 = arith.constant 0 : i32
    %c0_i32_1 = arith.constant 0 : i32
    return %c0_i32, %c0_i32_0 : i32, i32
  }
  func.func @transform_2(%arg0: i32) -> (i32, i32) {
    %c0_i32 = arith.constant 0 : i32
    %c0_i32_0 = arith.constant 0 : i32
    %c0_i32_1 = arith.constant 0 : i32
    return %c0_i32, %c0_i32_0 : i32, i32
  }
  func.func @transform_3(%arg0: i32) -> (i32, i32) {
    %c0_i32 = arith.constant 0 : i32
    %c0_i32_0 = arith.constant 0 : i32
    %c0_i32_1 = arith.constant 0 : i32
    return %c0_i32, %c0_i32_0 : i32, i32
  }
  func.func @transform_4(%arg0: i32) -> (i32, i32) {
    %c0_i32 = arith.constant 0 : i32
    %c0_i32_0 = arith.constant 0 : i32
    %c0_i32_1 = arith.constant 0 : i32
    return %c0_i32, %c0_i32_0 : i32, i32
  }
  func.func @transform_5(%arg0: i32) -> (i32, i32) {
    %c0_i32 = arith.constant 0 : i32
    %c0_i32_0 = arith.constant 0 : i32
    %c0_i32_1 = arith.constant 0 : i32
    return %c0_i32, %c0_i32_0 : i32, i32
  }
  func.func @transform_6(%arg0: i32) -> (i32, i32) {
    %c0_i32 = arith.constant 0 : i32
    %c0_i32_0 = arith.constant 0 : i32
    %c0_i32_1 = arith.constant 0 : i32
    return %c0_i32, %c0_i32_0 : i32, i32
  }
  func.func @transform_7(%arg0: i32) -> (i32, i32) {
    %c0_i32 = arith.constant 0 : i32
    %c0_i32_0 = arith.constant 0 : i32
    %c0_i32_1 = arith.constant 0 : i32
    return %c0_i32, %c0_i32_0 : i32, i32
  }
  func.func @transform_8(%arg0: i32) -> (i32, i32) {
    %c0_i32 = arith.constant 0 : i32
    %c0_i32_0 = arith.constant 0 : i32
    %c0_i32_1 = arith.constant 0 : i32
    return %c0_i32, %c0_i32_0 : i32, i32
  }
  func.func @transform_9(%arg0: i32) -> i32 {
    %c0_i32 = arith.constant 0 : i32
    %c0_i32_0 = arith.constant 0 : i32
    return %c0_i32 : i32
  }
  func.func @transform_10(%arg0: i32) -> (i32, i32) {
    %c0_i32 = arith.constant 0 : i32
    %c0_i32_0 = arith.constant 0 : i32
    return %c0_i32, %arg0 : i32, i32
  }
}

</mosaic_0001>

<bundles_post_ra>
// kernel: tpu_custom_call.1
= control target key start
LH: loop header
LB: loop body
LE: loop exit
PB: predicated region body
PF: predicated region fallthrough
CT: control target
= control target key end

     0   :  { %16 = vsyncpa [#allocation4], 0  ;;  %s5846_s0 = inlined_call_operand.hbm [shape: f32[256,256], index: 0, kind: input, shape index: {}]   ;;  %s5847_s1 = inlined_call_operand.vmem [shape: bf16[256,128], index: 1, kind: input, shape index: {}]   ;;  %s5848_s2 = inlined_call_operand.hbm [shape: bf16[128,512], index: 2, kind: input, shape index: {}]   ;;  %s5849_s3 = inlined_call_operand.vmem [shape: f32[1,512], index: 3, kind: input, shape index: {}]   ;;  %s5850_s4 = inlined_call_operand.hbm [shape: bf16[512,128], index: 4, kind: input, shape index: {}]   ;;  %s5851_s5 = inlined_call_operand.vmem [shape: bf16[128,64], index: 5, kind: input, shape index: {}]   ;;  %s5852_s6 = inlined_call_operand.vmem [shape: bf16[64,32], index: 6, kind: input, shape index: {}]   ;;  %s5853_s7 = inlined_call_operand.vmem [shape: f32[32,1], index: 7, kind: input, shape index: {}]   ;;  %s5854_s8 = inlined_call_operand.vmem [shape: f32[8,128], index: 8, kind: input, shape index: {}]   ;;  %s5855_s9 = inlined_call_operand.<no memory space> [shape: f32[1], index: 9, kind: input, shape index: {}]   ;;  %s5856_s10 = inlined_call_operand.hbm [shape: f32[1,256], index: 10, kind: output, shape index: {}]  }
   0x1   :  { %17 = vsyncpa [#allocation7], 0 }
   0x2   :  { %18 = vsyncpa [#allocation5], 0  ;;  %s4380_s13 = smov [#allocation6]   ;;  %s4381_s15 = smov [#allocation3]  }
   0x3   :  { %s38_s14 = sshll.u32 %s4380_s13, 4  ;;  %s24_s16 = sshll.u32 %s4381_s15, 4  ;;  %s39_s14 = int_to_ptr.vmem [resolvable:$true] %s38_s14  ;;  %s4445_s16 = int_to_ptr.vmem [resolvable:$true] %s24_s16 }
   0x4   :  { %s4286_s19 = scalar_lea.hbm %s5848_s2, 4096 }
   0x5   :  { %p4287_p0 = scmp.ne.s32.totalorder %s5848_s2, %s4286_s19  ;;  %p4290_p1 = scmp.lt.u32.totalorder %s4286_s19, %s5848_s2 }
   0x7   :  { %p4292_p2 = pnand %p4290_p1, %p4287_p0 }
   0x9   :  { %4295 = shalt.err (!%p4292_p2)
}
   0xa   :  { %s4296_s24 = scalar_lea.vmem %s39_s14, 4096  ;;  %p4301_p4 = scmp.lt.s32.totalorder %s39_s14, %s39_s14 }
   0xb   :  { %p4297_p3 = scmp.ne.s32.totalorder %s39_s14, %s4296_s24  ;;  %p4302_p5 = scmp.lt.s32.totalorder %s4296_s24, %s4296_s24 }
   0xd   :  { %p4303_p6 = por %p4302_p5, %p4301_p4 }
   0xf   :  { %p4304_p7 = pnand %p4303_p6, %p4297_p3 }
  0x11   :  { %4307 = shalt.err (!%p4304_p7)
}
  0x12   :  { %s4382_s25 = smov 256   ;;  %s4383_s26 = smov 16  }
  0x13   :  { %44 = dma.hbm_to_vmem [thread:$0]  %s5848_s2, 4096, %s39_s14, [#allocation7], %s4382_s25, %s4382_s25, %s4383_s26  }
  0x14   :  { %s4308_s11 = scalar_lea.hbm %s5846_s0, 8192 }
  0x15   :  { %p4309_p8 = scmp.ne.s32.totalorder %s5846_s0, %s4308_s11  ;;  %p4312_p9 = scmp.lt.u32.totalorder %s4308_s11, %s5846_s0 }
  0x17   :  { %p4314_p10 = pnand %p4312_p9, %p4309_p8 }
  0x19   :  { %4317 = shalt.err (!%p4314_p10)
}
  0x1a   :  { %s4318_s18 = scalar_lea.vmem %s4445_s16, 8192  ;;  %p4323_p12 = scmp.lt.s32.totalorder %s4445_s16, %s4445_s16 }
  0x1b   :  { %p4319_p11 = scmp.ne.s32.totalorder %s4445_s16, %s4318_s18  ;;  %p4324_p13 = scmp.lt.s32.totalorder %s4318_s18, %s4318_s18 }
  0x1d   :  { %p4325_p0 = por %p4324_p13, %p4323_p12 }
  0x1f   :  { %p4326_p1 = pnand %p4325_p0, %p4319_p11 }
  0x21   :  { %4329 = shalt.err (!%p4326_p1)
}
  0x22   :  { %30 = dma.hbm_to_vmem [thread:$0]  %s5846_s0, 8192, %s4445_s16, [#allocation4], %s4382_s25, %s4382_s25, %s4383_s26  }
  0x23   :  { %s4384_s19 = smov [#allocation8]   ;;  %s4330_s23 = scalar_lea.hbm %s5850_s4, 4096 }
  0x24   :  { %s52_s20 = sshll.u32 %s4384_s19, 4  ;;  %p4331_p2 = scmp.ne.s32.totalorder %s5850_s4, %s4330_s23  ;;  %s53_s20 = int_to_ptr.vmem [resolvable:$true] %s52_s20 }
  0x25   :  { %p4334_p3 = scmp.lt.u32.totalorder %s4330_s23, %s5850_s4 }
  0x27   :  { %p4336_p4 = pnand %p4334_p3, %p4331_p2 }
  0x29   :  { %4339 = shalt.err (!%p4336_p4)
}
  0x2a   :  { %s4340_s30 = scalar_lea.vmem %s53_s20, 4096  ;;  %p4345_p6 = scmp.lt.s32.totalorder %s53_s20, %s53_s20 }
  0x2b   :  { %p4341_p5 = scmp.ne.s32.totalorder %s53_s20, %s4340_s30  ;;  %p4346_p7 = scmp.lt.s32.totalorder %s4340_s30, %s4340_s30 }
  0x2d   :  { %p4347_p8 = por %p4346_p7, %p4345_p6 }
  0x2f   :  { %p4348_p9 = pnand %p4347_p8, %p4341_p5 }
  0x31   :  { %4351 = shalt.err (!%p4348_p9)
}
  0x32   :  { %s4385_s0 = smov 64   ;;  %s4386_s16 = smov 4  }
  0x33   :  { %58 = dma.hbm_to_vmem [thread:$0]  %s5850_s4, 4096, %s53_s20, [#allocation7], %s4385_s0, %s4385_s0, %s4386_s16  }
  0x34   :  { %4374 = dma.done.wait [#allocation4], 8192  }
  0x35   :  { %4375 = vsyncadd [#allocation4], 4294959104 }
  0x36   :  { %4376 = dma.done.wait [#allocation7], 8192  }
  0x37   :  { %4377 = vsyncadd [#allocation7], 4294959104  ;;  %v4048_v0 = vld [vmem:[%s5847_s1 + $0x40] sm:$0xff]   ;;  %v4050_v2 = vld [vmem:[%s5847_s1 + $0x48] sm:$0xff]   ;;  %vm3069_vm0 = vcmask 523264   ;;  %s4389_s16 = smov [#allocation9]  }
  0x38   :  { %v4049_v1 = vld [vmem:[%s5847_s1] sm:$0xff]   ;;  %3568 = vmatprep.subr.bf16.mxu0 %v4048_v0  ;;  %v4051_v3 = vld [vmem:[%s5847_s1 + $0x8] sm:$0xff]   ;;  %v4052_v4 = vld [vmem:[%s5847_s1 + $0x50] sm:$0xff]   ;;  %s3450_s25 = sshll.u32 %s4389_s16, 4  ;;  %s3451_s25 = int_to_ptr.vmem [resolvable:$true] %s3450_s25 }
  0x39   :  { %3569 = vmatpush3.bf16.msra.mxu0 %v4049_v1  ;;  %v4053_v5 = vld [vmem:[%s5847_s1 + $0x10] sm:$0xff]   ;;  %v4054_v6 = vld [vmem:[%s5847_s1 + $0x58] sm:$0xff]   ;;  %v4056_v8 = vld [vmem:[%s5847_s1 + $0x60] sm:$0xff]   ;;  %s4352_s26 = scalar_lea.vmem %s3451_s25, 32  ;;  %p4357_p11 = scmp.lt.s32.totalorder %s3451_s25, %s3451_s25 }
  0x3a   :  { %3570 = vmatprep.subr.bf16.mxu0 %v4050_v2  ;;  %v4055_v7 = vld [vmem:[%s5847_s1 + $0x18] sm:$0xff]   ;;  %v4057_v9 = vld [vmem:[%s5847_s1 + $0x20] sm:$0xff]   ;;  %v4058_v10 = vld [vmem:[%s5847_s1 + $0x68] sm:$0xff]   ;;  %p4353_p10 = scmp.ne.s32.totalorder %s3451_s25, %s4352_s26  ;;  %p4358_p12 = scmp.lt.s32.totalorder %s4352_s26, %s4352_s26 }
  0x3b   :  { %v81_v11 = vld [vmem:[#allocation3 + $0x8] sm:$0xff]  ;;  %v83_v12 = vld [vmem:[#allocation3 + $0x18] sm:$0xff]  ;;  %v4060_v15 = vld [vmem:[%s5847_s1 + $0x70] sm:$0xff]  }
  0x3c   :  { %v145_v13 = vpack.c.bf16 %v83_v12, %v81_v11  ;;  %v4059_v14 = vld [vmem:[%s5847_s1 + $0x28] sm:$0xff]   ;;  %v4061_v16 = vld [vmem:[%s5847_s1 + $0x30] sm:$0xff]   ;;  %v4062_v17 = vld [vmem:[%s5847_s1 + $0x78] sm:$0xff]   ;;  %p4359_p13 = por %p4358_p12, %p4357_p11 }
  0x3d   :  { %3571 = vmatpush3.bf16.msra.mxu0 %v4051_v3  ;;  %v4063_v18 = vld [vmem:[%s5847_s1 + $0x38] sm:$0xff]   ;;  %v80_v19 = vld [vmem:[#allocation3] sm:$0xff]  ;;  %v82_v20 = vld [vmem:[#allocation3 + $0x10] sm:$0xff] }
  0x3e   :  { %3572 = vmatprep.subr.bf16.mxu0 %v4052_v4  ;;  %340 = vmatprep.mubr.bf16.mxu0 %v145_v13  ;;  %v85_v21 = vld [vmem:[#allocation3 + $0x28] sm:$0xff]  ;;  %v87_v22 = vld [vmem:[#allocation3 + $0x38] sm:$0xff]  ;;  %v144_v23 = vpack.c.bf16 %v82_v20, %v80_v19  ;;  %v84_v25 = vld [vmem:[#allocation3 + $0x20] sm:$0xff]  ;;  %p4360_p0 = pnand %p4359_p13, %p4353_p10 }
  0x3f   :  { %v147_v24 = vpack.c.bf16 %v87_v22, %v85_v21  ;;  %v86_v26 = vld [vmem:[#allocation3 + $0x30] sm:$0xff]  ;;  %v89_v27 = vld [vmem:[#allocation3 + $0x48] sm:$0xff]  ;;  %v91_v28 = vld [vmem:[#allocation3 + $0x58] sm:$0xff] }
  0x40   :  { %v146_v29 = vpack.c.bf16 %v86_v26, %v84_v25  ;;  %v149_v30 = vpack.c.bf16 %v91_v28, %v89_v27  ;;  %v88_v31 = vld [vmem:[#allocation3 + $0x40] sm:$0xff]  ;;  %v90_v32 = vld [vmem:[#allocation3 + $0x50] sm:$0xff]  ;;  %v93_v33 = vld [vmem:[#allocation3 + $0x68] sm:$0xff] }
  0x41   :  { %3573 = vmatpush3.bf16.msra.mxu0 %v4053_v5  ;;  %v95_v34 = vld [vmem:[#allocation3 + $0x78] sm:$0xff]  ;;  %v148_v35 = vpack.c.bf16 %v90_v32, %v88_v31  ;;  %v92_v37 = vld [vmem:[#allocation3 + $0x60] sm:$0xff]  ;;  %v94_v38 = vld [vmem:[#allocation3 + $0x70] sm:$0xff] }
  0x42   :  { %3574 = vmatprep.subr.bf16.mxu0 %v4054_v6  ;;  %v151_v36 = vpack.c.bf16 %v95_v34, %v93_v33  ;;  %v97_v39 = vld [vmem:[#allocation3 + $0x88] sm:$0xff]  ;;  %v99_v40 = vld [vmem:[#allocation3 + $0x98] sm:$0xff]  ;;  %v150_v41 = vpack.c.bf16 %v94_v38, %v92_v37  ;;  %v96_v43 = vld [vmem:[#allocation3 + $0x80] sm:$0xff] }
  0x43   :  { %v153_v42 = vpack.c.bf16 %v99_v40, %v97_v39  ;;  %v98_v44 = vld [vmem:[#allocation3 + $0x90] sm:$0xff]  ;;  %v101_v45 = vld [vmem:[#allocation3 + $0xa8] sm:$0xff]  ;;  %v103_v46 = vld [vmem:[#allocation3 + $0xb8] sm:$0xff] }
  0x44   :  { %v152_v47 = vpack.c.bf16 %v98_v44, %v96_v43  ;;  %v155_v48 = vpack.c.bf16 %v103_v46, %v101_v45  ;;  %v100_v49 = vld [vmem:[#allocation3 + $0xa0] sm:$0xff]  ;;  %v102_v50 = vld [vmem:[#allocation3 + $0xb0] sm:$0xff]  ;;  %v105_v51 = vld [vmem:[#allocation3 + $0xc8] sm:$0xff] }
  0x45   :  { %3575 = vmatpush3.bf16.msra.mxu0 %v4055_v7  ;;  %v107_v52 = vld [vmem:[#allocation3 + $0xd8] sm:$0xff]  ;;  %v154_v53 = vpack.c.bf16 %v102_v50, %v100_v49  ;;  %v104_v55 = vld [vmem:[#allocation3 + $0xc0] sm:$0xff]  ;;  %v106_v56 = vld [vmem:[#allocation3 + $0xd0] sm:$0xff] }
  0x46   :  { %3576 = vmatprep.subr.bf16.mxu0 %v4056_v8  ;;  %v157_v54 = vpack.c.bf16 %v107_v52, %v105_v51  ;;  %v109_v57 = vld [vmem:[#allocation3 + $0xe8] sm:$0xff]  ;;  %v111_v58 = vld [vmem:[#allocation3 + $0xf8] sm:$0xff]  ;;  %v156_v59 = vpack.c.bf16 %v106_v56, %v104_v55  ;;  %v108_v61 = vld [vmem:[#allocation3 + $0xe0] sm:$0xff] }
  0x47   :  { %v159_v60 = vpack.c.bf16 %v111_v58, %v109_v57  ;;  %v110_v62 = vld [vmem:[#allocation3 + $0xf0] sm:$0xff]  ;;  %v113_v63 = vld [vmem:[#allocation3 + $0x108] sm:$0xff]  ;;  %v115_v0 = vld [vmem:[#allocation3 + $0x118] sm:$0xff] }
  0x48   :  { %v158_v1 = vpack.c.bf16 %v110_v62, %v108_v61  ;;  %v161_v2 = vpack.c.bf16 %v115_v0, %v113_v63  ;;  %v112_v3 = vld [vmem:[#allocation3 + $0x100] sm:$0xff]  ;;  %v114_v4 = vld [vmem:[#allocation3 + $0x110] sm:$0xff]  ;;  %v117_v5 = vld [vmem:[#allocation3 + $0x128] sm:$0xff] }
  0x49   :  { %3577 = vmatpush3.bf16.msra.mxu0 %v4057_v9  ;;  %v119_v6 = vld [vmem:[#allocation3 + $0x138] sm:$0xff]  ;;  %v160_v7 = vpack.c.bf16 %v114_v4, %v112_v3  ;;  %v116_v9 = vld [vmem:[#allocation3 + $0x120] sm:$0xff]  ;;  %v121_v11 = vld [vmem:[#allocation3 + $0x148] sm:$0xff] }
  0x4a   :  { %3578 = vmatprep.subr.bf16.mxu0 %v4058_v10  ;;  %v163_v8 = vpack.c.bf16 %v119_v6, %v117_v5  ;;  %v118_v10 = vld [vmem:[#allocation3 + $0x130] sm:$0xff]  ;;  %v123_v12 = vld [vmem:[#allocation3 + $0x158] sm:$0xff]  ;;  %v124_v21 = vld [vmem:[#allocation3 + $0x160] sm:$0xff] }
  0x4b   :  { %v162_v13 = vpack.c.bf16 %v118_v10, %v116_v9  ;;  %v126_v22 = vld [vmem:[#allocation3 + $0x170] sm:$0xff]  ;;  %v128_v27 = vld [vmem:[#allocation3 + $0x180] sm:$0xff] }
  0x4c   :  { %v166_v25 = vpack.c.bf16 %v126_v22, %v124_v21  ;;  %v130_v28 = vld [vmem:[#allocation3 + $0x190] sm:$0xff]  ;;  %v132_v33 = vld [vmem:[#allocation3 + $0x1a0] sm:$0xff] }
  0x4d   :  { %3579 = vmatpush3.bf16.msra.mxu0 %v4059_v14  ;;  %v165_v14 = vpack.c.bf16 %v123_v12, %v121_v11  ;;  %v168_v31 = vpack.c.bf16 %v130_v28, %v128_v27  ;;  %v134_v34 = vld [vmem:[#allocation3 + $0x1b0] sm:$0xff]  ;;  %v136_v39 = vld [vmem:[#allocation3 + $0x1c0] sm:$0xff] }
  0x4e   :  { %3580 = vmatprep.subr.bf16.mxu0 %v4060_v15  ;;  %v120_v15 = vld [vmem:[#allocation3 + $0x140] sm:$0xff]  ;;  %v170_v37 = vpack.c.bf16 %v134_v34, %v132_v33  ;;  %v138_v40 = vld [vmem:[#allocation3 + $0x1d0] sm:$0xff] }
  0x4f   :  { %v172_v43 = vpack.c.bf16 %v138_v40, %v136_v39  ;;  %v140_v45 = vld [vmem:[#allocation3 + $0x1e0] sm:$0xff]  ;;  %v142_v46 = vld [vmem:[#allocation3 + $0x1f0] sm:$0xff] }
  0x50   :  { %v4543_v51 = vld [vmem:[%s5854_s8] sm:$0xff] }
  0x51   :  { %3581 = vmatpush3.bf16.msra.mxu0 %v4061_v16  ;;  %v122_v16 = vld [vmem:[#allocation3 + $0x150] sm:$0xff] }
  0x52   :  { %3582 = vmatprep.subr.bf16.mxu0 %v4062_v17  ;;  %v125_v17 = vld [vmem:[#allocation3 + $0x168] sm:$0xff]  ;;  %v164_v19 = vpack.c.bf16 %v122_v16, %v120_v15 }
  0x55   :  { %3583 = vmatpush3.bf16.msra.mxu0 %v4063_v18  ;;  %v127_v18 = vld [vmem:[#allocation3 + $0x178] sm:$0xff] }
  0x56   :  { %v167_v20 = vpack.c.bf16 %v127_v18, %v125_v17 }
  0x58   :  { %341 = vmatmul.mubr.bf16.vlgmr.msra.gmra.mrb[0].mxu0 %v144_v23  ;;  %v129_v23 = vld [vmem:[#allocation3 + $0x188] sm:$0xff] }
  0x59   :  { %348 = vmatprep.mubr.bf16.mxu0 %v147_v24  ;;  %v131_v24 = vld [vmem:[#allocation3 + $0x198] sm:$0xff] }
  0x5a   :  { %v169_v26 = vpack.c.bf16 %v131_v24, %v129_v23 }
  0x60   :  { %349 = vmatmul.mubr.bf16.gmra.mrb[4].mxu0 %v146_v29  ;;  %v133_v29 = vld [vmem:[#allocation3 + $0x1a8] sm:$0xff] }
  0x61   :  { %356 = vmatprep.mubr.bf16.mxu0 %v149_v30  ;;  %v135_v30 = vld [vmem:[#allocation3 + $0x1b8] sm:$0xff] }
  0x62   :  { %v171_v32 = vpack.c.bf16 %v135_v30, %v133_v29 }
  0x68   :  { %357 = vmatmul.mubr.bf16.gmra.mrb[8].mxu0 %v148_v35  ;;  %v137_v35 = vld [vmem:[#allocation3 + $0x1c8] sm:$0xff] }
  0x69   :  { %364 = vmatprep.mubr.bf16.mxu0 %v151_v36  ;;  %v139_v36 = vld [vmem:[#allocation3 + $0x1d8] sm:$0xff] }
  0x6a   :  { %v173_v38 = vpack.c.bf16 %v139_v36, %v137_v35 }
  0x70   :  { %365 = vmatmul.mubr.bf16.gmra.mrb[12].mxu0 %v150_v41  ;;  %v141_v41 = vld [vmem:[#allocation3 + $0x1e8] sm:$0xff] }
  0x71   :  { %372 = vmatprep.mubr.bf16.mxu0 %v153_v42  ;;  %v143_v42 = vld [vmem:[#allocation3 + $0x1f8] sm:$0xff] }
  0x72   :  { %v175_v44 = vpack.c.bf16 %v143_v42, %v141_v41 }
  0x78   :  { %373 = vmatmul.mubr.bf16.gmra.mrb[16].mxu0 %v152_v47  ;;  %v174_v47 = vpack.c.bf16 %v142_v46, %v140_v45 }
  0x79   :  { %380 = vmatprep.mubr.bf16.mxu0 %v155_v48  ;;  %v5857_v48 = vlaneseq }
  0x7b   :  { %v4537_v49 = vshrl.u32 %v5857_v48, 7 }
  0x7d   :  { %v210_v50 = vsub.s32 0, %v4537_v49 }
  0x80   :  { %381 = vmatmul.mubr.bf16.gmra.mrb[20].mxu0 %v154_v53  ;;  %v4548_v53 = vrot.slane %v4543_v51, %v210_v50 }
  0x81   :  { %388 = vmatprep.mubr.bf16.mxu0 %v157_v54 }
  0x88   :  { %389 = vmatmul.mubr.bf16.gmra.mrb[24].mxu0 %v156_v59 }
  0x89   :  { %396 = vmatprep.mubr.bf16.mxu0 %v159_v60 }
  0x90   :  { %397 = vmatmul.mubr.bf16.gmra.mrb[28].mxu0 %v158_v1 }
  0x91   :  { %404 = vmatprep.mubr.bf16.mxu0 %v161_v2 }
  0x98   :  { %405 = vmatmul.mubr.bf16.gmra.mrb[32].mxu0 %v160_v7 }
  0x99   :  { %412 = vmatprep.mubr.bf16.mxu0 %v163_v8 }
  0xa0   :  { %413 = vmatmul.mubr.bf16.gmra.mrb[36].mxu0 %v162_v13 }
  0xa1   :  { %420 = vmatprep.mubr.bf16.mxu0 %v165_v14 }
  0xa8   :  { %421 = vmatmul.mubr.bf16.gmra.mrb[40].mxu0 %v164_v19 }
  0xa9   :  { %428 = vmatprep.mubr.bf16.mxu0 %v167_v20 }
  0xb0   :  { %429 = vmatmul.mubr.bf16.gmra.mrb[44].mxu0 %v166_v25 }
  0xb1   :  { %436 = vmatprep.mubr.bf16.mxu0 %v169_v26 }
  0xb8   :  { %437 = vmatmul.mubr.bf16.gmra.mrb[48].mxu0 %v168_v31 }
  0xb9   :  { %444 = vmatprep.mubr.bf16.mxu0 %v171_v32 }
  0xc0   :  { %445 = vmatmul.mubr.bf16.gmra.mrb[52].mxu0 %v170_v37 }
  0xc1   :  { %452 = vmatprep.mubr.bf16.mxu0 %v173_v38 }
  0xc8   :  { %453 = vmatmul.mubr.bf16.gmra.mrb[56].mxu0 %v172_v43 }
  0xc9   :  { %460 = vmatprep.mubr.bf16.mxu0 %v175_v44 }
  0xd0   :  { %461 = vmatmul.mubr.bf16.gmra.mrb[60].mxu0 %v174_v47 }
 0x12b   :  { %v3584_v52 = vpop.f32.mrb[0].mxu0 }
 0x12c   :  { %v3585_v54 = vpop.f32.mrb[1].mxu0 }
 0x12d   :  { %v3586_v55 = vadd.f32 %v3585_v54, %v3584_v52  ;;  %v3587_v56 = vpop.f32.mrb[2].mxu0 }
 0x12e   :  { %v3588_v57 = vpop.f32.mrb[3].mxu0 }
 0x12f   :  { %v3589_v58 = vadd.f32 %v3588_v57, %v3587_v56  ;;  %v4551_v59 = vadd.f32 %v3586_v55, %v4548_v53 }
 0x131   :  { %469 = vadd.xlane.f32.xlu0 %v4551_v59  ;;  %v4555_v61 = vadd.f32 %v3589_v58, %v4548_v53 }
 0x133   :  { %v3590_v60 = vpop.f32.mrb[4].mxu0 }
 0x134   :  { %v3591_v62 = vpop.f32.mrb[5].mxu0 }
 0x135   :  { %v3592_v63 = vadd.f32 %v3591_v62, %v3590_v60  ;;  %v3593_v0 = vpop.f32.mrb[6].mxu0  ;;  %471 = vadd.xlane.f32.xlu0 %v4555_v61 }
 0x136   :  { %v3594_v1 = vpop.f32.mrb[7].mxu0 }
 0x137   :  { %v3595_v2 = vadd.f32 %v3594_v1, %v3593_v0  ;;  %v4559_v3 = vadd.f32 %v3592_v63, %v4548_v53 }
 0x139   :  { %473 = vadd.xlane.f32.xlu1 %v4559_v3  ;;  %v4563_v5 = vadd.f32 %v3595_v2, %v4548_v53 }
 0x13b   :  { %v3596_v4 = vpop.f32.mrb[8].mxu0 }
 0x13c   :  { %v3597_v6 = vpop.f32.mrb[9].mxu0 }
 0x13d   :  { %v3598_v7 = vadd.f32 %v3597_v6, %v3596_v4  ;;  %v3599_v8 = vpop.f32.mrb[10].mxu0  ;;  %475 = vadd.xlane.f32.xlu1 %v4563_v5 }
 0x13e   :  { %v3600_v9 = vpop.f32.mrb[11].mxu0 }
 0x13f   :  { %v3601_v10 = vadd.f32 %v3600_v9, %v3599_v8  ;;  %v4567_v11 = vadd.f32 %v3598_v7, %v4548_v53 }
 0x141   :  { %477 = vadd.xlane.f32.xlu0 %v4567_v11  ;;  %v4571_v12 = vadd.f32 %v3601_v10, %v4548_v53 }
 0x143   :  { %v3602_v13 = vpop.f32.mrb[12].mxu0  ;;  %479 = vadd.xlane.f32.xlu1 %v4571_v12 }
 0x144   :  { %v3603_v14 = vpop.f32.mrb[13].mxu0 }
 0x145   :  { %v3604_v15 = vadd.f32 %v3603_v14, %v3602_v13  ;;  %v3605_v16 = vpop.f32.mrb[14].mxu0 }
 0x146   :  { %v3606_v17 = vpop.f32.mrb[15].mxu0 }
 0x147   :  { %v3607_v18 = vadd.f32 %v3606_v17, %v3605_v16  ;;  %v4575_v19 = vadd.f32 %v3604_v15, %v4548_v53 }
 0x149   :  { %481 = vadd.xlane.f32.xlu0 %v4575_v19  ;;  %v4579_v20 = vadd.f32 %v3607_v18, %v4548_v53 }
 0x14b   :  { %v3608_v21 = vpop.f32.mrb[16].mxu0  ;;  %483 = vadd.xlane.f32.xlu1 %v4579_v20 }
 0x14c   :  { %v3609_v22 = vpop.f32.mrb[17].mxu0 }
 0x14d   :  { %v3610_v23 = vadd.f32 %v3609_v22, %v3608_v21  ;;  %v3611_v24 = vpop.f32.mrb[18].mxu0 }
 0x14e   :  { %v3612_v25 = vpop.f32.mrb[19].mxu0 }
 0x14f   :  { %v3613_v26 = vadd.f32 %v3612_v25, %v3611_v24  ;;  %v4583_v27 = vadd.f32 %v3610_v23, %v4548_v53 }
 0x151   :  { %485 = vadd.xlane.f32.xlu0 %v4583_v27  ;;  %v4587_v28 = vadd.f32 %v3613_v26, %v4548_v53 }
 0x153   :  { %v3614_v29 = vpop.f32.mrb[20].mxu0  ;;  %487 = vadd.xlane.f32.xlu1 %v4587_v28 }
 0x154   :  { %v3615_v30 = vpop.f32.mrb[21].mxu0 }
 0x155   :  { %v3616_v31 = vadd.f32 %v3615_v30, %v3614_v29  ;;  %v3617_v32 = vpop.f32.mrb[22].mxu0 }
 0x156   :  { %v3618_v33 = vpop.f32.mrb[23].mxu0 }
 0x157   :  { %v3619_v34 = vadd.f32 %v3618_v33, %v3617_v32  ;;  %v4591_v35 = vadd.f32 %v3616_v31, %v4548_v53 }
 0x159   :  { %489 = vadd.xlane.f32.xlu0 %v4591_v35  ;;  %v4595_v36 = vadd.f32 %v3619_v34, %v4548_v53 }
 0x15b   :  { %v3620_v37 = vpop.f32.mrb[24].mxu0  ;;  %491 = vadd.xlane.f32.xlu1 %v4595_v36 }
 0x15c   :  { %v3621_v38 = vpop.f32.mrb[25].mxu0 }
 0x15d   :  { %v3622_v39 = vadd.f32 %v3621_v38, %v3620_v37  ;;  %v3623_v40 = vpop.f32.mrb[26].mxu0 }
 0x15e   :  { %v3624_v41 = vpop.f32.mrb[27].mxu0 }
 0x15f   :  { %v3625_v42 = vadd.f32 %v3624_v41, %v3623_v40  ;;  %v4599_v43 = vadd.f32 %v3622_v39, %v4548_v53  ;;  %v4064_v40 = vld [vmem:[#allocation6 + $0x8] ss:$16 sps:$4 sm:$0xff]   ;;  %v4066_v41 = vld [vmem:[#allocation6 + $0xc] ss:$16 sps:$4 sm:$0xff]  }
 0x160   :  { %1317 = vmatprep.subr.bf16.mxu0 %v4066_v41 }
 0x161   :  { %493 = vadd.xlane.f32.xlu0 %v4599_v43  ;;  %v4603_v44 = vadd.f32 %v3625_v42, %v4548_v53  ;;  %v4069_v42 = vld [vmem:[#allocation6 + $0x2c] ss:$16 sps:$4 sm:$0xff]   ;;  %1318 = vmatpush1.bf16.msra.mxu0 %v4064_v40 }
 0x162   :  { %1319 = vmatprep.subr.bf16.mxu0 %v4069_v42 }
 0x163   :  { %v3626_v45 = vpop.f32.mrb[28].mxu0  ;;  %495 = vadd.xlane.f32.xlu1 %v4603_v44 }
 0x164   :  { %v3627_v46 = vpop.f32.mrb[29].mxu0 }
 0x165   :  { %v3628_v47 = vadd.f32 %v3627_v46, %v3626_v45  ;;  %v3629_v52 = vpop.f32.mrb[30].mxu0  ;;  %v4070_v45 = vld [vmem:[#allocation6 + $0x4] ss:$16 sps:$4 sm:$0xff]   ;;  %v4072_v46 = vld [vmem:[#allocation6] ss:$16 sps:$4 sm:$0xff]  }
 0x166   :  { %v3630_v54 = vpop.f32.mrb[31].mxu0  ;;  %1124 = vmatprep.subr.bf16.mxu1 %v4070_v45 }
 0x167   :  { %v3631_v55 = vadd.f32 %v3630_v54, %v3629_v52  ;;  %v4607_v56 = vadd.f32 %v3628_v47, %v4548_v53  ;;  %v4073_v47 = vld [vmem:[#allocation6 + $0x24] ss:$16 sps:$4 sm:$0xff]   ;;  %v4067_v52 = vld [vmem:[#allocation6 + $0x28] ss:$16 sps:$4 sm:$0xff]   ;;  %1125 = vmatpush1.bf16.msra.mxu1 %v4072_v46 }
 0x168   :  { %1126 = vmatprep.subr.bf16.mxu1 %v4073_v47  ;;  %1320 = vmatpush1.bf16.msra.mxu0 %v4067_v52 }
 0x169   :  { %497 = vadd.xlane.f32.xlu0 %v4607_v56  ;;  %v4611_v57 = vadd.f32 %v3631_v55, %v4548_v53 }
 0x16b   :  { %v3632_v58 = vpop.f32.mrb[32].mxu0  ;;  %499 = vadd.xlane.f32.xlu1 %v4611_v57 }
 0x16c   :  { %v3633_v60 = vpop.f32.mrb[33].mxu0 }
 0x16d   :  { %v3634_v62 = vadd.f32 %v3633_v60, %v3632_v58  ;;  %v3635_v63 = vpop.f32.mrb[34].mxu0 }
 0x16e   :  { %v3636_v0 = vpop.f32.mrb[35].mxu0 }
 0x16f   :  { %v3637_v1 = vadd.f32 %v3636_v0, %v3635_v63  ;;  %v4615_v2 = vadd.f32 %v3634_v62, %v4548_v53 }
 0x171   :  { %501 = vadd.xlane.f32.xlu0 %v4615_v2  ;;  %v4619_v4 = vadd.f32 %v3637_v1, %v4548_v53 }
 0x173   :  { %v3638_v6 = vpop.f32.mrb[36].mxu0  ;;  %503 = vadd.xlane.f32.xlu1 %v4619_v4 }
 0x174   :  { %v3639_v7 = vpop.f32.mrb[37].mxu0 }
 0x175   :  { %v3640_v8 = vadd.f32 %v3639_v7, %v3638_v6  ;;  %v3641_v9 = vpop.f32.mrb[38].mxu0 }
 0x176   :  { %v3642_v10 = vpop.f32.mrb[39].mxu0 }
 0x177   :  { %v3643_v13 = vadd.f32 %v3642_v10, %v3641_v9  ;;  %v4623_v14 = vadd.f32 %v3640_v8, %v4548_v53 }
 0x179   :  { %505 = vadd.xlane.f32.xlu0 %v4623_v14  ;;  %v4627_v15 = vadd.f32 %v3643_v13, %v4548_v53 }
 0x17b   :  { %507 = vadd.xlane.f32.xlu1 %v4627_v15  ;;  %v3644_v16 = vpop.f32.mrb[40].mxu0 }
 0x17c   :  { %v3645_v17 = vpop.f32.mrb[41].mxu0 }
 0x17d   :  { %v3646_v18 = vadd.f32 %v3645_v17, %v3644_v16  ;;  %v3647_v21 = vpop.f32.mrb[42].mxu0 }
 0x17e   :  { %v3648_v22 = vpop.f32.mrb[43].mxu0 }
 0x17f   :  { %v4630_v23 = vadd.f32 %v3648_v22, %v3647_v21 }
 0x183   :  { %v3650_v24 = vpop.f32.mrb[44].mxu0 }
 0x184   :  { %v3651_v25 = vpop.f32.mrb[45].mxu0 }
 0x185   :  { %v4632_v26 = vadd.f32 %v3651_v25, %v3650_v24  ;;  %v3653_v29 = vpop.f32.mrb[46].mxu0 }
 0x186   :  { %v3654_v30 = vpop.f32.mrb[47].mxu0 }
 0x187   :  { %v4634_v31 = vadd.f32 %v3654_v30, %v3653_v29  ;;  %v4678_v47 = vadd.f32 %v4632_v26, %v4548_v53 }
 0x189   :  { %v4691_v26 = vadd.f32 %v4634_v31, %v4548_v53 }
 0x18b   :  { %v3656_v32 = vpop.f32.mrb[48].mxu0 }
 0x18c   :  { %v3657_v33 = vpop.f32.mrb[49].mxu0 }
 0x18d   :  { %v4636_v34 = vadd.f32 %v3657_v33, %v3656_v32  ;;  %v3659_v37 = vpop.f32.mrb[50].mxu0 }
 0x18e   :  { %v3660_v38 = vpop.f32.mrb[51].mxu0 }
 0x18f   :  { %v4638_v39 = vadd.f32 %v3660_v38, %v3659_v37  ;;  %v4658_v37 = vadd.f32 %v3646_v18, %v4548_v53 }
 0x193   :  { %v3662_v54 = vpop.f32.mrb[52].mxu0 }
 0x194   :  { %v3663_v55 = vpop.f32.mrb[53].mxu0 }
 0x195   :  { %v4640_v58 = vadd.f32 %v3663_v55, %v3662_v54  ;;  %v3665_v60 = vpop.f32.mrb[54].mxu0 }
 0x196   :  { %v3666_v62 = vpop.f32.mrb[55].mxu0 }
 0x197   :  { %v4642_v63 = vadd.f32 %v3666_v62, %v3665_v60 }
 0x19b   :  { %v3668_v0 = vpop.f32.mrb[56].mxu0 }
 0x19c   :  { %v3669_v1 = vpop.f32.mrb[57].mxu0 }
 0x19d   :  { %v4644_v6 = vadd.f32 %v3669_v1, %v3668_v0  ;;  %v3671_v7 = vpop.f32.mrb[58].mxu0  ;;  %v4075_v0 = vld [vmem:[#allocation6 + $0x20] ss:$16 sps:$4 sm:$0xff]  }
 0x19e   :  { %v3672_v8 = vpop.f32.mrb[59].mxu0  ;;  %1127 = vmatpush1.bf16.msra.mxu1 %v4075_v0 }
 0x19f   :  { %v4646_v9 = vadd.f32 %v3672_v8, %v3671_v7  ;;  %v4076_v7 = vld [vmem:[#allocation6 + $0x44] ss:$16 sps:$4 sm:$0xff]   ;;  %v4080_v8 = vld [vmem:[#allocation6 + $0x4c] ss:$16 sps:$4 sm:$0xff]  }
 0x1a0   :  { %1128 = vmatprep.subr.bf16.mxu1 %v4076_v7  ;;  %1321 = vmatprep.subr.bf16.mxu0 %v4080_v8  ;;  %v4099_v7 = vld [vmem:[#allocation6 + $0xa0] ss:$16 sps:$4 sm:$0xff]   ;;  %v4731_v8 = vadd.f32 %v4642_v63, %v4548_v53 }
 0x1a1   :  { %v4105_v63 = vld [vmem:[#allocation6 + $0xc0] ss:$16 sps:$4 sm:$0xff]  }
 0x1a3   :  { %v3674_v10 = vpop.f32.mrb[60].mxu0 }
 0x1a4   :  { %v3675_v13 = vpop.f32.mrb[61].mxu0 }
 0x1a5   :  { %v4648_v16 = vadd.f32 %v3675_v13, %v3674_v10  ;;  %v3677_v17 = vpop.f32.mrb[62].mxu0  ;;  %v4078_v10 = vld [vmem:[#allocation6 + $0x48] ss:$16 sps:$4 sm:$0xff]   ;;  %v4081_v13 = vld [vmem:[#allocation6 + $0x40] ss:$16 sps:$4 sm:$0xff]  }
 0x1a6   :  { %v3678_v21 = vpop.f32.mrb[63].mxu0  ;;  %1129 = vmatpush1.bf16.msra.mxu1 %v4081_v13  ;;  %1322 = vmatpush1.bf16.msra.mxu0 %v4078_v10 }
 0x1a7   :  { %v4650_v22 = vadd.f32 %v3678_v21, %v3677_v17 }
 0x1be   :  { %v470_v24 = vpop.xlane.xlu0 %469 }
 0x1bf   :  { %v534_v25 = vmul.f32 0.0078125, %v470_v24  ;;  %v4082_v24 = vld [vmem:[#allocation6 + $0x64] ss:$16 sps:$4 sm:$0xff]  }
 0x1c0   :  { %1130 = vmatprep.subr.bf16.mxu1 %v4082_v24 }
 0x1c1   :  { %v4653_v29 = vsub.f32 %v4551_v59, %v534_v25  ;;  %v4086_v25 = vld [vmem:[#allocation6 + $0x6c] ss:$16 sps:$4 sm:$0xff]  }
 0x1c2   :  { %v472_v30 = vpop.xlane.xlu0 %471  ;;  %1323 = vmatprep.subr.bf16.mxu0 %v4086_v25 }
 0x1c3   :  { %v535_v32 = vmul.f32 0.0078125, %v472_v30  ;;  %v598_v33 = vmul.f32 %v4653_v29, %v4653_v29 }
 0x1c5   :  { %630 = vadd.xlane.f32.xlu0 %v598_v33  ;;  %v4661_v38 = vsub.f32 %v4555_v61, %v535_v32  ;;  %v4673_v61 = vadd.f32 %v4630_v23, %v4548_v53  ;;  %v4084_v32 = vld [vmem:[#allocation6 + $0x68] ss:$16 sps:$4 sm:$0xff]   ;;  %v4087_v33 = vld [vmem:[#allocation6 + $0x60] ss:$16 sps:$4 sm:$0xff]  }
 0x1c6   :  { %v474_v40 = vpop.xlane.xlu1 %473  ;;  %1131 = vmatpush1.bf16.msra.mxu1 %v4087_v33  ;;  %1324 = vmatpush1.bf16.msra.mxu0 %v4084_v32  ;;  %v4110_v32 = vld [vmem:[#allocation6 + $0xec] ss:$16 sps:$4 sm:$0xff]  }
 0x1c7   :  { %v536_v41 = vmul.f32 0.0078125, %v474_v40  ;;  %v599_v42 = vmul.f32 %v4661_v38, %v4661_v38  ;;  %v4711_v40 = vadd.f32 %v4638_v39, %v4548_v53  ;;  %v4093_v39 = vld [vmem:[#allocation6 + $0x80] ss:$16 sps:$4 sm:$0xff]  }
 0x1c9   :  { %509 = vadd.xlane.f32.xlu0 %v4658_v37  ;;  %632 = vadd.xlane.f32.xlu1 %v599_v42  ;;  %v4667_v59 = vsub.f32 %v4559_v3, %v536_v41 }
 0x1ca   :  { %v476_v45 = vpop.xlane.xlu1 %475 }
 0x1cb   :  { %v537_v46 = vmul.f32 0.0078125, %v476_v45  ;;  %v600_v18 = vmul.f32 %v4667_v59, %v4667_v59  ;;  %v4088_v45 = vld [vmem:[#allocation6 + $0x84] ss:$16 sps:$4 sm:$0xff]  }
 0x1cc   :  { %1132 = vmatprep.subr.bf16.mxu1 %v4088_v45  ;;  %v4111_v45 = vld [vmem:[#allocation6 + $0xe0] ss:$16 sps:$4 sm:$0xff]  }
 0x1cd   :  { %634 = vadd.xlane.f32.xlu0 %v600_v18  ;;  %511 = vadd.xlane.f32.xlu1 %v4673_v61  ;;  %v4681_v52 = vsub.f32 %v4563_v5, %v537_v46  ;;  %v4092_v46 = vld [vmem:[#allocation6 + $0x8c] ss:$16 sps:$4 sm:$0xff]   ;;  %v4090_v18 = vld [vmem:[#allocation6 + $0x88] ss:$16 sps:$4 sm:$0xff]  }
 0x1ce   :  { %v478_v3 = vpop.xlane.xlu0 %477  ;;  %1325 = vmatprep.subr.bf16.mxu0 %v4092_v46  ;;  %1133 = vmatpush1.bf16.msra.mxu1 %v4093_v39  ;;  %v4751_v46 = vadd.f32 %v4646_v9, %v4548_v53 }
 0x1cf   :  { %v538_v54 = vmul.f32 0.0078125, %v478_v3  ;;  %v601_v55 = vmul.f32 %v4681_v52, %v4681_v52  ;;  %1326 = vmatpush1.bf16.msra.mxu0 %v4090_v18 }
 0x1d0   :  { %v480_v60 = vpop.xlane.xlu1 %479 }
 0x1d1   :  { %v539_v62 = vmul.f32 0.0078125, %v480_v60  ;;  %513 = vadd.xlane.f32.xlu0 %v4678_v47  ;;  %636 = vadd.xlane.f32.xlu1 %v601_v55  ;;  %v4687_v23 = vsub.f32 %v4567_v11, %v538_v54  ;;  %v4701_v11 = vadd.f32 %v4636_v34, %v4548_v53  ;;  %v4094_v60 = vld [vmem:[#allocation6 + $0xa4] ss:$16 sps:$4 sm:$0xff]  }
 0x1d2   :  { %1134 = vmatprep.subr.bf16.mxu1 %v4094_v60  ;;  %v4775_v60 = vadd.f32 %v4650_v22, %v4548_v53 }
 0x1d3   :  { %v602_v5 = vmul.f32 %v4687_v23, %v4687_v23  ;;  %v4696_v1 = vsub.f32 %v4571_v12, %v539_v62  ;;  %v4098_v62 = vld [vmem:[#allocation6 + $0xac] ss:$16 sps:$4 sm:$0xff]   ;;  %1135 = vmatpush1.bf16.msra.mxu1 %v4099_v7 }
 0x1d4   :  { %1327 = vmatprep.subr.bf16.mxu0 %v4098_v62 }
 0x1d5   :  { %515 = vadd.xlane.f32.xlu1 %v4691_v26  ;;  %638 = vadd.xlane.f32.xlu0 %v602_v5  ;;  %v603_v12 = vmul.f32 %v4696_v1, %v4696_v1  ;;  %v4096_v5 = vld [vmem:[#allocation6 + $0xa8] ss:$16 sps:$4 sm:$0xff]  }
 0x1d6   :  { %v482_v31 = vpop.xlane.xlu0 %481  ;;  %1328 = vmatpush1.bf16.msra.mxu0 %v4096_v5 }
 0x1d7   :  { %v540_v17 = vmul.f32 0.0078125, %v482_v31  ;;  %v4100_v31 = vld [vmem:[#allocation6 + $0xc4] ss:$16 sps:$4 sm:$0xff]  }
 0x1d8   :  { %v484_v21 = vpop.xlane.xlu1 %483  ;;  %1136 = vmatprep.subr.bf16.mxu1 %v4100_v31 }
 0x1d9   :  { %v541_v30 = vmul.f32 0.0078125, %v484_v21  ;;  %640 = vadd.xlane.f32.xlu1 %v603_v12  ;;  %517 = vadd.xlane.f32.xlu0 %v4701_v11  ;;  %v4707_v34 = vsub.f32 %v4575_v19, %v540_v17  ;;  %v4721_v19 = vadd.f32 %v4640_v58, %v4548_v53  ;;  %v4104_v17 = vld [vmem:[#allocation6 + $0xcc] ss:$16 sps:$4 sm:$0xff]   ;;  %v4102_v12 = vld [vmem:[#allocation6 + $0xc8] ss:$16 sps:$4 sm:$0xff]  }
 0x1da   :  { %1329 = vmatprep.subr.bf16.mxu0 %v4104_v17  ;;  %1137 = vmatpush1.bf16.msra.mxu1 %v4105_v63 }
 0x1db   :  { %v604_v41 = vmul.f32 %v4707_v34, %v4707_v34  ;;  %v4716_v42 = vsub.f32 %v4579_v20, %v541_v30  ;;  %1330 = vmatpush1.bf16.msra.mxu0 %v4102_v12  ;;  %v4106_v30 = vld [vmem:[#allocation6 + $0xe4] ss:$16 sps:$4 sm:$0xff]  }
 0x1dc   :  { %1138 = vmatprep.subr.bf16.mxu1 %v4106_v30  ;;  %1331 = vmatprep.subr.bf16.mxu0 %v4110_v32 }
 0x1dd   :  { %519 = vadd.xlane.f32.xlu1 %v4711_v40  ;;  %642 = vadd.xlane.f32.xlu0 %v604_v41  ;;  %v605_v20 = vmul.f32 %v4716_v42, %v4716_v42  ;;  %v4108_v41 = vld [vmem:[#allocation6 + $0xe8] ss:$16 sps:$4 sm:$0xff]  }
 0x1de   :  { %v486_v3 = vpop.xlane.xlu0 %485  ;;  %1139 = vmatpush1.bf16.msra.mxu1 %v4111_v45 }
 0x1df   :  { %v542_v54 = vmul.f32 0.0078125, %v486_v3  ;;  %1332 = vmatpush1.bf16.msra.mxu0 %v4108_v41 }
 0x1e0   :  { %v488_v55 = vpop.xlane.xlu1 %487 }
 0x1e1   :  { %v543_v0 = vmul.f32 0.0078125, %v488_v55  ;;  %644 = vadd.xlane.f32.xlu1 %v605_v20  ;;  %521 = vadd.xlane.f32.xlu0 %v4721_v19  ;;  %v4727_v58 = vsub.f32 %v4583_v27, %v542_v54  ;;  %v4741_v27 = vadd.f32 %v4644_v6, %v4548_v53  ;;  %v4387_v54 = vmov 0  }
 0x1e2   :  { %1156 = vmatprep.mubr.bf16.mxu1 %v4387_v54  ;;  %1349 = vmatprep.mubr.bf16.mxu0 %v4387_v54 }
 0x1e3   :  { %v606_v10 = vmul.f32 %v4727_v58, %v4727_v58  ;;  %v4736_v13 = vsub.f32 %v4587_v28, %v543_v0  ;;  %4047 = vset.pattern.permute.xlu1 %v4387_v54  ;;  %4046 = vset.pattern.permute.xlu0 %v4387_v54 }
 0x1e5   :  { %523 = vadd.xlane.f32.xlu1 %v4731_v8  ;;  %646 = vadd.xlane.f32.xlu0 %v606_v10  ;;  %v607_v28 = vmul.f32 %v4736_v13, %v4736_v13 }
 0x1e6   :  { %v490_v21 = vpop.xlane.xlu0 %489 }
 0x1e7   :  { %v544_v24 = vmul.f32 0.0078125, %v490_v21 }
 0x1e8   :  { %v492_v25 = vpop.xlane.xlu1 %491 }
 0x1e9   :  { %v545_v33 = vmul.f32 0.0078125, %v492_v25  ;;  %648 = vadd.xlane.f32.xlu1 %v607_v28  ;;  %525 = vadd.xlane.f32.xlu0 %v4741_v27  ;;  %v4747_v6 = vsub.f32 %v4591_v35, %v544_v24  ;;  %v4761_v35 = vadd.f32 %v4648_v16, %v4548_v53 }
 0x1eb   :  { %v608_v18 = vmul.f32 %v4747_v6, %v4747_v6  ;;  %v4756_v39 = vsub.f32 %v4595_v36, %v545_v33 }
 0x1ed   :  { %527 = vadd.xlane.f32.xlu1 %v4751_v46  ;;  %650 = vadd.xlane.f32.xlu0 %v608_v18  ;;  %v609_v36 = vmul.f32 %v4756_v39, %v4756_v39 }
 0x1ee   :  { %v494_v3 = vpop.xlane.xlu0 %493 }
 0x1ef   :  { %v546_v9 = vmul.f32 0.0078125, %v494_v3 }
 0x1f0   :  { %v496_v20 = vpop.xlane.xlu1 %495 }
 0x1f1   :  { %v547_v55 = vmul.f32 0.0078125, %v496_v20  ;;  %652 = vadd.xlane.f32.xlu1 %v609_v36  ;;  %529 = vadd.xlane.f32.xlu0 %v4761_v35  ;;  %v4771_v16 = vsub.f32 %v4599_v43, %v546_v9 }
 0x1f3   :  { %v610_v62 = vmul.f32 %v4771_v16, %v4771_v16  ;;  %v4780_v0 = vsub.f32 %v4603_v44, %v547_v55 }
 0x1f5   :  { %531 = vadd.xlane.f32.xlu1 %v4775_v60  ;;  %654 = vadd.xlane.f32.xlu0 %v610_v62  ;;  %v611_v10 = vmul.f32 %v4780_v0, %v4780_v0 }
 0x1f6   :  { %v498_v5 = vpop.xlane.xlu0 %497 }
 0x1f7   :  { %v548_v7 = vmul.f32 0.0078125, %v498_v5 }
 0x1f8   :  { %v500_v43 = vpop.xlane.xlu1 %499 }
 0x1f9   :  { %v549_v31 = vmul.f32 0.0078125, %v500_v43  ;;  %656 = vadd.xlane.f32.xlu1 %v611_v10  ;;  %v4786_v53 = vsub.f32 %v4607_v56, %v548_v7 }
 0x1fb   :  { %v612_v22 = vmul.f32 %v4786_v53, %v4786_v53  ;;  %v4791_v44 = vsub.f32 %v4611_v57, %v549_v31 }
 0x1fd   :  { %658 = vadd.xlane.f32.xlu0 %v612_v22  ;;  %v613_v17 = vmul.f32 %v4791_v44, %v4791_v44 }
 0x1fe   :  { %v502_v12 = vpop.xlane.xlu0 %501 }
 0x1ff   :  { %v550_v63 = vmul.f32 0.0078125, %v502_v12  ;;  %660 = vadd.xlane.f32.xlu1 %v613_v17 }
 0x200   :  { %v504_v21 = vpop.xlane.xlu1 %503 }
 0x201   :  { %v551_v24 = vmul.f32 0.0078125, %v504_v21  ;;  %v4796_v28 = vsub.f32 %v4615_v2, %v550_v63 }
 0x203   :  { %v614_v56 = vmul.f32 %v4796_v28, %v4796_v28  ;;  %v4801_v25 = vsub.f32 %v4619_v4, %v551_v24  ;;  %v824_v24 = vsub.s32 1, %v4537_v49 }
 0x205   :  { %662 = vadd.xlane.f32.xlu0 %v614_v56  ;;  %v615_v57 = vmul.f32 %v4801_v25, %v4801_v25 }
 0x206   :  { %v506_v30 = vpop.xlane.xlu0 %505 }
 0x207   :  { %v552_v32 = vmul.f32 0.0078125, %v506_v30  ;;  %664 = vadd.xlane.f32.xlu1 %v615_v57 }
 0x208   :  { %v508_v33 = vpop.xlane.xlu1 %507 }
 0x209   :  { %v553_v41 = vmul.f32 0.0078125, %v508_v33  ;;  %v4806_v45 = vsub.f32 %v4623_v14, %v552_v32 }
 0x20b   :  { %v616_v2 = vmul.f32 %v4806_v45, %v4806_v45  ;;  %v4811_v18 = vsub.f32 %v4627_v15, %v553_v41 }
 0x20d   :  { %666 = vadd.xlane.f32.xlu0 %v616_v2  ;;  %v617_v4 = vmul.f32 %v4811_v18, %v4811_v18 }
 0x20f   :  { %668 = vadd.xlane.f32.xlu1 %v617_v4  ;;  %v4833_v4 = vrot.slane %v4543_v51, %v824_v24 }
 0x252   :  { %v631_v3 = vpop.xlane.xlu0 %630 }
 0x253   :  { %v694_v9 = vmul.f32 0.0078125, %v631_v3  ;;  %v860_v3 = vsub.s32 2, %v4537_v49 }
 0x255   :  { %v726_v36 = vadd.f32 1e-05, %v694_v9 }
 0x256   :  { %v633_v20 = vpop.xlane.xlu1 %632  ;;  %v510_v55 = vpop.xlane.xlu0 %509 }
 0x257   :  { %4156 = vrsqrt.f32 %v726_v36  ;;  %v695_v62 = vmul.f32 0.0078125, %v633_v20  ;;  %v554_v14 = vmul.f32 0.0078125, %v510_v55 }
 0x259   :  { %v727_v5 = vadd.f32 1e-05, %v695_v62  ;;  %v4816_v7 = vsub.f32 %v4658_v37, %v554_v14 }
 0x25a   :  { %v512_v10 = vpop.xlane.xlu1 %511  ;;  %v635_v15 = vpop.xlane.xlu0 %634 }
 0x25b   :  { %4158 = vrsqrt.f32 %v727_v5  ;;  %v555_v43 = vmul.f32 0.0078125, %v512_v10  ;;  %v696_v31 = vmul.f32 0.0078125, %v635_v15  ;;  %v618_v22 = vmul.f32 %v4816_v7, %v4816_v7 }
 0x25c   :  { %v4846_v15 = vrot.slane %v4543_v51, %v860_v3 }
 0x25d   :  { %v728_v17 = vadd.f32 1e-05, %v696_v31  ;;  %670 = vadd.xlane.f32.xlu0 %v618_v22  ;;  %v4821_v12 = vsub.f32 %v4673_v61, %v555_v43 }
 0x25e   :  { %v637_v63 = vpop.xlane.xlu1 %636  ;;  %v514_v21 = vpop.xlane.xlu0 %513 }
 0x25f   :  { %4160 = vrsqrt.f32 %v728_v17  ;;  %v697_v37 = vmul.f32 0.0078125, %v637_v63  ;;  %v556_v56 = vmul.f32 0.0078125, %v514_v21  ;;  %v619_v57 = vmul.f32 %v4821_v12, %v4821_v12 }
 0x261   :  { %v4157_v30 = vpop.eup %4156  ;;  %v729_v32 = vadd.f32 1e-05, %v697_v37  ;;  %672 = vadd.xlane.f32.xlu1 %v619_v57  ;;  %v4827_v33 = vsub.f32 %v4678_v47, %v556_v56 }
 0x262   :  { %v516_v41 = vpop.xlane.xlu1 %515  ;;  %v639_v2 = vpop.xlane.xlu0 %638  ;;  %v790_v61 = vmul.f32 %v4157_v30, %v4653_v29 }
 0x263   :  { %4162 = vrsqrt.f32 %v729_v32  ;;  %v557_v9 = vmul.f32 0.0078125, %v516_v41  ;;  %v698_v36 = vmul.f32 0.0078125, %v639_v2  ;;  %v620_v20 = vmul.f32 %v4827_v33, %v4827_v33 }
 0x264   :  { %v826_v10 = vmul.f32 %v4833_v4, %v790_v61 }
 0x265   :  { %v4159_v55 = vpop.eup %4158  ;;  %v730_v47 = vadd.f32 1e-05, %v698_v36  ;;  %674 = vadd.xlane.f32.xlu0 %v620_v20  ;;  %v4839_v62 = vsub.f32 %v4691_v26, %v557_v9 }
 0x266   :  { %v641_v29 = vpop.xlane.xlu1 %640  ;;  %v518_v14 = vpop.xlane.xlu0 %517  ;;  %v791_v5 = vmul.f32 %v4159_v55, %v4661_v38  ;;  %v4855_v56 = vadd.f32 %v4846_v15, %v826_v10 }
 0x267   :  { %4164 = vrsqrt.f32 %v730_v47  ;;  %v699_v43 = vmul.f32 0.0078125, %v641_v29  ;;  %v558_v31 = vmul.f32 0.0078125, %v518_v14  ;;  %v621_v22 = vmul.f32 %v4839_v62, %v4839_v62 }
 0x268   :  { %v827_v26 = vmul.f32 %v4833_v4, %v791_v5 }
 0x269   :  { %v4161_v17 = vpop.eup %4160  ;;  %v731_v63 = vadd.f32 1e-05, %v699_v43  ;;  %676 = vadd.xlane.f32.xlu1 %v621_v22  ;;  %v4852_v38 = vsub.f32 %v4701_v11, %v558_v31 }
 0x26a   :  { %v520_v21 = vpop.xlane.xlu1 %519  ;;  %v643_v37 = vpop.xlane.xlu0 %642  ;;  %v4858_v51 = vadd.f32 %v4846_v15, %v827_v26  ;;  %v792_v57 = vmul.f32 %v4161_v17, %v4667_v59 }
 0x26b   :  { %4166 = vrsqrt.f32 %v731_v63  ;;  %v559_v30 = vmul.f32 0.0078125, %v520_v21  ;;  %v700_v32 = vmul.f32 0.0078125, %v643_v37  ;;  %v622_v41 = vmul.f32 %v4852_v38, %v4852_v38 }
 0x26c   :  { %v894_v11 = vpack.c.bf16 %v4858_v51, %v4855_v56  ;;  %v828_v55 = vmul.f32 %v4833_v4, %v792_v57 }
 0x26d   :  { %v4163_v2 = vpop.eup %4162  ;;  %v732_v61 = vadd.f32 1e-05, %v700_v32  ;;  %678 = vadd.xlane.f32.xlu0 %v622_v41  ;;  %v4866_v9 = vsub.f32 %v4711_v40, %v559_v30 }
 0x26e   :  { %v645_v36 = vpop.xlane.xlu1 %644  ;;  %1157 = vmatmul.mubr.bf16.vlgmr.msra.gmra.mrb[0].mxu1 %v894_v11  ;;  %1350 = vmatmul.mubr.bf16.vlgmr.msra.gmra.mrb[64].mxu0 %v894_v11  ;;  %v522_v20 = vpop.xlane.xlu0 %521  ;;  %v793_v59 = vmul.f32 %v4163_v2, %v4681_v52  ;;  %v4879_v22 = vadd.f32 %v4846_v15, %v828_v55 }
 0x26f   :  { %4168 = vrsqrt.f32 %v732_v61  ;;  %v701_v47 = vmul.f32 0.0078125, %v645_v36  ;;  %v560_v29 = vmul.f32 0.0078125, %v522_v20  ;;  %v623_v14 = vmul.f32 %v4866_v9, %v4866_v9  ;;  %1166 = vmatprep.mubr.bf16.mxu1 %v4387_v54  ;;  %1359 = vmatprep.mubr.bf16.mxu0 %v4387_v54 }
 0x270   :  { %v829_v40 = vmul.f32 %v4833_v4, %v793_v59 }
 0x271   :  { %v4165_v5 = vpop.eup %4164  ;;  %v733_v10 = vadd.f32 1e-05, %v701_v47  ;;  %680 = vadd.xlane.f32.xlu1 %v623_v14  ;;  %v4876_v43 = vsub.f32 %v4721_v19, %v560_v29 }
 0x272   :  { %v524_v52 = vpop.xlane.xlu1 %523  ;;  %v647_v31 = vpop.xlane.xlu0 %646  ;;  %v4882_v26 = vadd.f32 %v4846_v15, %v829_v40  ;;  %v794_v17 = vmul.f32 %v4165_v5, %v4687_v23 }
 0x273   :  { %4170 = vrsqrt.f32 %v733_v10  ;;  %v561_v63 = vmul.f32 0.0078125, %v524_v52  ;;  %v702_v21 = vmul.f32 0.0078125, %v647_v31  ;;  %v624_v37 = vmul.f32 %v4876_v43, %v4876_v43 }
 0x274   :  { %v895_v19 = vpack.c.bf16 %v4882_v26, %v4879_v22  ;;  %v830_v2 = vmul.f32 %v4833_v4, %v794_v17 }
 0x275   :  { %v4167_v57 = vpop.eup %4166  ;;  %v734_v30 = vadd.f32 1e-05, %v702_v21  ;;  %682 = vadd.xlane.f32.xlu0 %v624_v37  ;;  %v4890_v32 = vsub.f32 %v4731_v8, %v561_v63 }
 0x276   :  { %v649_v41 = vpop.xlane.xlu1 %648  ;;  %1167 = vmatmul.mubr.bf16.gmra.mrb[4].mxu1 %v895_v19  ;;  %1360 = vmatmul.mubr.bf16.gmra.mrb[68].mxu0 %v895_v19  ;;  %v526_v11 = vpop.xlane.xlu0 %525  ;;  %v795_v23 = vmul.f32 %v4167_v57, %v4696_v1  ;;  %v4903_v14 = vadd.f32 %v4846_v15, %v830_v2 }
 0x277   :  { %4172 = vrsqrt.f32 %v734_v30  ;;  %v703_v61 = vmul.f32 0.0078125, %v649_v41  ;;  %v562_v36 = vmul.f32 0.0078125, %v526_v11  ;;  %v625_v20 = vmul.f32 %v4890_v32, %v4890_v32  ;;  %1176 = vmatprep.mubr.bf16.mxu1 %v4387_v54  ;;  %1369 = vmatprep.mubr.bf16.mxu0 %v4387_v54 }
 0x278   :  { %v831_v8 = vmul.f32 %v4833_v4, %v795_v23 }
 0x279   :  { %v4169_v59 = vpop.eup %4168  ;;  %v735_v55 = vadd.f32 1e-05, %v703_v61  ;;  %v4900_v47 = vsub.f32 %v4741_v27, %v562_v36  ;;  %684 = vadd.xlane.f32.xlu1 %v625_v20 }
 0x27a   :  { %v528_v1 = vpop.xlane.xlu1 %527  ;;  %v651_v29 = vpop.xlane.xlu0 %650  ;;  %v4906_v40 = vadd.f32 %v4846_v15, %v831_v8  ;;  %v796_v5 = vmul.f32 %v4169_v59, %v4707_v34 }
 0x27b   :  { %4174 = vrsqrt.f32 %v735_v55  ;;  %v563_v10 = vmul.f32 0.0078125, %v528_v1  ;;  %v704_v52 = vmul.f32 0.0078125, %v651_v29  ;;  %v626_v31 = vmul.f32 %v4900_v47, %v4900_v47 }
 0x27c   :  { %v896_v27 = vpack.c.bf16 %v4906_v40, %v4903_v14  ;;  %v832_v57 = vmul.f32 %v4833_v4, %v796_v5 }
 0x27d   :  { %v4171_v17 = vpop.eup %4170  ;;  %v736_v63 = vadd.f32 1e-05, %v704_v52  ;;  %686 = vadd.xlane.f32.xlu0 %v626_v31  ;;  %v4914_v21 = vsub.f32 %v4751_v46, %v563_v10 }
 0x27e   :  { %v653_v37 = vpop.xlane.xlu1 %652  ;;  %1177 = vmatmul.mubr.bf16.gmra.mrb[8].mxu1 %v896_v27  ;;  %1370 = vmatmul.mubr.bf16.gmra.mrb[72].mxu0 %v896_v27  ;;  %v530_v19 = vpop.xlane.xlu0 %529  ;;  %v797_v34 = vmul.f32 %v4171_v17, %v4716_v42  ;;  %v4927_v20 = vadd.f32 %v4846_v15, %v832_v57 }
 0x27f   :  { %4176 = vrsqrt.f32 %v736_v63  ;;  %v705_v30 = vmul.f32 0.0078125, %v653_v37  ;;  %v564_v41 = vmul.f32 0.0078125, %v530_v19  ;;  %v627_v11 = vmul.f32 %v4914_v21, %v4914_v21  ;;  %1186 = vmatprep.mubr.bf16.mxu1 %v4387_v54  ;;  %1379 = vmatprep.mubr.bf16.mxu0 %v4387_v54 }
 0x280   :  { %v833_v46 = vmul.f32 %v4833_v4, %v797_v34 }
 0x281   :  { %v4173_v23 = vpop.eup %4172  ;;  %v737_v2 = vadd.f32 1e-05, %v705_v30  ;;  %v4924_v61 = vsub.f32 %v4761_v35, %v564_v41  ;;  %688 = vadd.xlane.f32.xlu1 %v627_v11 }
 0x282   :  { %v532_v42 = vpop.xlane.xlu1 %531  ;;  %v655_v36 = vpop.xlane.xlu0 %654  ;;  %v4930_v8 = vadd.f32 %v4846_v15, %v833_v46  ;;  %v798_v59 = vmul.f32 %v4173_v23, %v4727_v58 }
 0x283   :  { %4178 = vrsqrt.f32 %v737_v2  ;;  %v565_v55 = vmul.f32 0.0078125, %v532_v42  ;;  %v706_v1 = vmul.f32 0.0078125, %v655_v36  ;;  %v628_v29 = vmul.f32 %v4924_v61, %v4924_v61 }
 0x284   :  { %v897_v35 = vpack.c.bf16 %v4930_v8, %v4927_v20  ;;  %v834_v27 = vmul.f32 %v4833_v4, %v798_v59 }
 0x285   :  { %v4175_v5 = vpop.eup %4174  ;;  %v4938_v10 = vsub.f32 %v4775_v60, %v565_v55  ;;  %v738_v52 = vadd.f32 1e-05, %v706_v1  ;;  %690 = vadd.xlane.f32.xlu0 %v628_v29 }
 0x286   :  { %v657_v31 = vpop.xlane.xlu1 %656  ;;  %1187 = vmatmul.mubr.bf16.gmra.mrb[12].mxu1 %v897_v35  ;;  %1380 = vmatmul.mubr.bf16.gmra.mrb[76].mxu0 %v897_v35  ;;  %v799_v58 = vmul.f32 %v4175_v5, %v4736_v13  ;;  %v4948_v57 = vadd.f32 %v4846_v15, %v834_v27 }
 0x287   :  { %4180 = vrsqrt.f32 %v738_v52  ;;  %v707_v17 = vmul.f32 0.0078125, %v657_v31  ;;  %v629_v63 = vmul.f32 %v4938_v10, %v4938_v10  ;;  %1196 = vmatprep.mubr.bf16.mxu1 %v4387_v54  ;;  %1389 = vmatprep.mubr.bf16.mxu0 %v4387_v54 }
 0x288   :  { %v835_v60 = vmul.f32 %v4833_v4, %v799_v58 }
 0x289   :  { %v4177_v37 = vpop.eup %4176  ;;  %v739_v19 = vadd.f32 1e-05, %v707_v17  ;;  %692 = vadd.xlane.f32.xlu1 %v629_v63 }
 0x28a   :  { %v659_v34 = vpop.xlane.xlu0 %658  ;;  %v4951_v13 = vadd.f32 %v4846_v15, %v835_v60  ;;  %v800_v30 = vmul.f32 %v4177_v37, %v4747_v6 }
 0x28b   :  { %4182 = vrsqrt.f32 %v739_v19  ;;  %v708_v41 = vmul.f32 0.0078125, %v659_v34  ;;  %v4113_v34 = vld [vmem:[#allocation8] sm:$0xff]  }
 0x28c   :  { %v661_v11 = vpop.xlane.xlu1 %660  ;;  %v898_v46 = vpack.c.bf16 %v4951_v13, %v4948_v57  ;;  %v836_v59 = vmul.f32 %v4833_v4, %v800_v30  ;;  %v4114_v30 = vld [vmem:[#allocation8 + $0xc0] sm:$0xff]  }
 0x28d   :  { %v4179_v23 = vpop.eup %4178  ;;  %v740_v2 = vadd.f32 1e-05, %v708_v41  ;;  %v709_v42 = vmul.f32 0.0078125, %v661_v11  ;;  %3792 = vmatprep.subr.bf16.mxu0 %v4114_v30 }
 0x28e   :  { %1197 = vmatmul.mubr.bf16.gmra.mrb[16].mxu1 %v898_v46  ;;  %1390 = vmatmul.mubr.bf16.gmra.mrb[80].mxu0 %v898_v46  ;;  %v801_v36 = vmul.f32 %v4179_v23, %v4756_v39  ;;  %v4962_v35 = vadd.f32 %v4846_v15, %v836_v59  ;;  %v4115_v59 = vld [vmem:[#allocation8 + $0x80] sm:$0xff]  }
 0x28f   :  { %4184 = vrsqrt.f32 %v740_v2  ;;  %v741_v55 = vadd.f32 1e-05, %v709_v42  ;;  %1206 = vmatprep.mubr.bf16.mxu1 %v4387_v54  ;;  %1399 = vmatprep.mubr.bf16.mxu0 %v4387_v54 }
 0x290   :  { %v837_v6 = vmul.f32 %v4833_v4, %v801_v36  ;;  %3793 = vmatpush3.bf16.msra.mxu0 %v4115_v59 }
 0x291   :  { %v4181_v1 = vpop.eup %4180  ;;  %4186 = vrsqrt.f32 %v741_v55 }
 0x292   :  { %v663_v29 = vpop.xlane.xlu0 %662  ;;  %v4965_v5 = vadd.f32 %v4846_v15, %v837_v6  ;;  %v802_v39 = vmul.f32 %v4181_v1, %v4771_v16  ;;  %v4112_v16 = vld [vmem:[#allocation8 + $0x40] sm:$0xff]  }
 0x293   :  { %v710_v52 = vmul.f32 0.0078125, %v663_v29  ;;  %3680 = vmatprep.subr.bf16.mxu1 %v4112_v16 }
 0x294   :  { %v665_v31 = vpop.xlane.xlu1 %664  ;;  %v899_v58 = vpack.c.bf16 %v4965_v5, %v4962_v35  ;;  %v838_v37 = vmul.f32 %v4833_v4, %v802_v39  ;;  %3681 = vmatpush3.bf16.msra.mxu1 %v4113_v34 }
 0x295   :  { %v4183_v27 = vpop.eup %4182  ;;  %v742_v17 = vadd.f32 1e-05, %v710_v52  ;;  %v711_v63 = vmul.f32 0.0078125, %v665_v31 }
 0x296   :  { %1207 = vmatmul.mubr.bf16.gmra.mrb[20].mxu1 %v899_v58  ;;  %1400 = vmatmul.mubr.bf16.gmra.mrb[84].mxu0 %v899_v58  ;;  %v803_v60 = vmul.f32 %v4183_v27, %v4780_v0  ;;  %v4976_v0 = vadd.f32 %v4846_v15, %v838_v37  ;;  %v4117_v58 = vld [vmem:[#allocation8 + $0x8] sm:$0xff]  }
 0x297   :  { %4188 = vrsqrt.f32 %v742_v17  ;;  %v743_v19 = vadd.f32 1e-05, %v711_v63  ;;  %1216 = vmatprep.mubr.bf16.mxu1 %v4387_v54  ;;  %1409 = vmatprep.mubr.bf16.mxu0 %v4387_v54  ;;  %v4118_v17 = vld [vmem:[#allocation8 + $0xc8] sm:$0xff]  }
 0x298   :  { %v839_v41 = vmul.f32 %v4833_v4, %v803_v60  ;;  %3794 = vmatprep.subr.bf16.mxu0 %v4118_v17 }
 0x299   :  { %v4185_v11 = vpop.eup %4184  ;;  %4190 = vrsqrt.f32 %v743_v19 }
 0x29a   :  { %v667_v46 = vpop.xlane.xlu0 %666  ;;  %v4979_v23 = vadd.f32 %v4846_v15, %v839_v41  ;;  %v804_v2 = vmul.f32 %v4185_v11, %v4786_v53  ;;  %v4116_v53 = vld [vmem:[#allocation8 + $0x48] sm:$0xff]  }
 0x29b   :  { %v4187_v42 = vpop.eup %4186  ;;  %v712_v36 = vmul.f32 0.0078125, %v667_v46  ;;  %3682 = vmatprep.subr.bf16.mxu1 %v4116_v53  ;;  %v4119_v11 = vld [vmem:[#allocation8 + $0x88] sm:$0xff]  }
 0x29c   :  { %v669_v55 = vpop.xlane.xlu1 %668  ;;  %v900_v6 = vpack.c.bf16 %v4979_v23, %v4976_v0  ;;  %v805_v1 = vmul.f32 %v4187_v42, %v4791_v44  ;;  %v840_v52 = vmul.f32 %v4833_v4, %v804_v2  ;;  %3683 = vmatpush3.bf16.msra.mxu1 %v4117_v58  ;;  %3795 = vmatpush3.bf16.msra.mxu0 %v4119_v11  ;;  %v4127_v58 = vld [vmem:[#allocation8 + $0x98] sm:$0xff]   ;;  %v4135_v11 = vld [vmem:[#allocation8 + $0xa8] sm:$0xff]  }
 0x29d   :  { %v744_v29 = vadd.f32 1e-05, %v712_v36  ;;  %v713_v39 = vmul.f32 0.0078125, %v669_v55 }
 0x29e   :  { %1217 = vmatmul.mubr.bf16.gmra.mrb[24].mxu1 %v900_v6  ;;  %1410 = vmatmul.mubr.bf16.gmra.mrb[88].mxu0 %v900_v6  ;;  %v841_v31 = vmul.f32 %v4833_v4, %v805_v1  ;;  %v4993_v60 = vadd.f32 %v4846_v15, %v840_v52  ;;  %v4120_v1 = vld [vmem:[#allocation8 + $0x50] sm:$0xff]   ;;  %v4124_v52 = vld [vmem:[#allocation8 + $0x58] sm:$0xff]  }
 0x29f   :  { %4192 = vrsqrt.f32 %v744_v29  ;;  %v745_v27 = vadd.f32 1e-05, %v713_v39  ;;  %1226 = vmatprep.mubr.bf16.mxu1 %v4387_v54  ;;  %1419 = vmatprep.mubr.bf16.mxu0 %v4387_v54  ;;  %v4121_v29 = vld [vmem:[#allocation8 + $0x10] sm:$0xff]  }
 0x2a0   :  { %v4990_v44 = vadd.f32 %v4846_v15, %v841_v31  ;;  %v4122_v39 = vld [vmem:[#allocation8 + $0xd0] sm:$0xff]   ;;  %v4125_v31 = vld [vmem:[#allocation8 + $0xd8] sm:$0xff]   ;;  %3684 = vmatprep.subr.bf16.mxu1 %v4120_v1 }
 0x2a1   :  { %v4189_v63 = vpop.eup %4188  ;;  %4194 = vrsqrt.f32 %v745_v27  ;;  %3796 = vmatprep.subr.bf16.mxu0 %v4122_v39  ;;  %3685 = vmatpush3.bf16.msra.mxu1 %v4121_v29  ;;  %v4143_v1 = vld [vmem:[#allocation8 + $0xb8] sm:$0xff]  }
 0x2a2   :  { %v806_v37 = vmul.f32 %v4189_v63, %v4796_v28  ;;  %v901_v16 = vpack.c.bf16 %v4990_v44, %v4993_v60  ;;  %3686 = vmatprep.subr.bf16.mxu1 %v4124_v52  ;;  %v4128_v63 = vld [vmem:[#allocation8 + $0x60] sm:$0xff]  }
 0x2a3   :  { %v4191_v19 = vpop.eup %4190 }
 0x2a4   :  { %v807_v34 = vmul.f32 %v4191_v19, %v4801_v25  ;;  %v842_v30 = vmul.f32 %v4833_v4, %v806_v37  ;;  %v4129_v37 = vld [vmem:[#allocation8 + $0xe0] sm:$0xff]  }
 0x2a5   :  { %v4130_v19 = vld [vmem:[#allocation8 + $0x20] sm:$0xff]  }
 0x2a6   :  { %1227 = vmatmul.mubr.bf16.gmra.mrb[28].mxu1 %v901_v16  ;;  %1420 = vmatmul.mubr.bf16.gmra.mrb[92].mxu0 %v901_v16  ;;  %v843_v41 = vmul.f32 %v4833_v4, %v807_v34  ;;  %v5007_v2 = vadd.f32 %v4846_v15, %v842_v30  ;;  %v4131_v16 = vld [vmem:[#allocation8 + $0xa0] sm:$0xff]   ;;  %v4132_v34 = vld [vmem:[#allocation8 + $0x68] sm:$0xff]  }
 0x2a7   :  { %1236 = vmatprep.mubr.bf16.mxu1 %v4387_v54  ;;  %1429 = vmatprep.mubr.bf16.mxu0 %v4387_v54  ;;  %v4133_v30 = vld [vmem:[#allocation8 + $0xe8] sm:$0xff]  }
 0x2a8   :  { %v5004_v46 = vadd.f32 %v4846_v15, %v843_v41  ;;  %v4134_v41 = vld [vmem:[#allocation8 + $0x28] sm:$0xff]  }
 0x2a9   :  { %v4193_v28 = vpop.eup %4192 }
 0x2aa   :  { %v808_v25 = vmul.f32 %v4193_v28, %v4806_v45  ;;  %v902_v36 = vpack.c.bf16 %v5004_v46, %v5007_v2  ;;  %v4123_v45 = vld [vmem:[#allocation8 + $0x90] sm:$0xff]  }
 0x2ab   :  { %v4195_v42 = vpop.eup %4194  ;;  %3797 = vmatpush3.bf16.msra.mxu0 %v4123_v45  ;;  %v4136_v28 = vld [vmem:[#allocation8 + $0x70] sm:$0xff]  }
 0x2ac   :  { %v809_v59 = vmul.f32 %v4195_v42, %v4811_v18  ;;  %v844_v55 = vmul.f32 %v4833_v4, %v808_v25  ;;  %v4126_v18 = vld [vmem:[#allocation8 + $0x18] sm:$0xff]   ;;  %3798 = vmatprep.subr.bf16.mxu0 %v4125_v31  ;;  %v4137_v25 = vld [vmem:[#allocation8 + $0xf0] sm:$0xff]  }
 0x2ad   :  { %3687 = vmatpush3.bf16.msra.mxu1 %v4126_v18  ;;  %v4138_v42 = vld [vmem:[#allocation8 + $0x30] sm:$0xff]  }
 0x2ae   :  { %1237 = vmatmul.mubr.bf16.gmra.mrb[32].mxu1 %v902_v36  ;;  %1430 = vmatmul.mubr.bf16.gmra.mrb[96].mxu0 %v902_v36  ;;  %v845_v6 = vmul.f32 %v4833_v4, %v809_v59  ;;  %v5021_v27 = vadd.f32 %v4846_v15, %v844_v55  ;;  %v4139_v36 = vld [vmem:[#allocation8 + $0xb0] sm:$0xff]   ;;  %v4140_v59 = vld [vmem:[#allocation8 + $0x78] sm:$0xff]  }
 0x2af   :  { %1246 = vmatprep.mubr.bf16.mxu1 %v4387_v54  ;;  %1439 = vmatprep.mubr.bf16.mxu0 %v4387_v54  ;;  %v4141_v55 = vld [vmem:[#allocation8 + $0xf8] sm:$0xff]  }
 0x2b0   :  { %v5018_v53 = vadd.f32 %v4846_v15, %v845_v6  ;;  %3799 = vmatpush3.bf16.msra.mxu0 %v4127_v58  ;;  %3688 = vmatprep.subr.bf16.mxu1 %v4128_v63  ;;  %v4142_v6 = vld [vmem:[#allocation8 + $0x38] sm:$0xff]  }
 0x2b1   :  { %3800 = vmatprep.subr.bf16.mxu0 %v4129_v37  ;;  %3689 = vmatpush3.bf16.msra.mxu1 %v4130_v19 }
 0x2b2   :  { %v903_v17 = vpack.c.bf16 %v5018_v53, %v5021_v27  ;;  %3690 = vmatprep.subr.bf16.mxu1 %v4132_v34 }
 0x2b4   :  { %3801 = vmatpush3.bf16.msra.mxu0 %v4131_v16 }
 0x2b5   :  { %3802 = vmatprep.subr.bf16.mxu0 %v4133_v30  ;;  %3691 = vmatpush3.bf16.msra.mxu1 %v4134_v41 }
 0x2b6   :  { %1247 = vmatmul.mubr.bf16.gmra.mrb[36].mxu1 %v903_v17  ;;  %1440 = vmatmul.mubr.bf16.gmra.mrb[100].mxu0 %v903_v17 }
 0x2b7   :  { %1256 = vmatprep.mubr.bf16.mxu1 %v4387_v54  ;;  %1449 = vmatprep.mubr.bf16.mxu0 %v4387_v54 }
 0x2b8   :  { %3803 = vmatpush3.bf16.msra.mxu0 %v4135_v11  ;;  %3692 = vmatprep.subr.bf16.mxu1 %v4136_v28 }
 0x2b9   :  { %3804 = vmatprep.subr.bf16.mxu0 %v4137_v25  ;;  %3693 = vmatpush3.bf16.msra.mxu1 %v4138_v42 }
 0x2ba   :  { %3694 = vmatprep.subr.bf16.mxu1 %v4140_v59 }
 0x2bc   :  { %3805 = vmatpush3.bf16.msra.mxu0 %v4139_v36 }
 0x2bd   :  { %3806 = vmatprep.subr.bf16.mxu0 %v4141_v55  ;;  %3695 = vmatpush3.bf16.msra.mxu1 %v4142_v6 }
 0x2c0   :  { %3807 = vmatpush3.bf16.msra.mxu0 %v4143_v1 }
 0x2ea   :  { %v671_v29 = vpop.xlane.xlu0 %670 }
 0x2eb   :  { %v714_v39 = vmul.f32 0.0078125, %v671_v29 }
 0x2ed   :  { %v746_v45 = vadd.f32 1e-05, %v714_v39 }
 0x2ee   :  { %v673_v52 = vpop.xlane.xlu1 %672 }
 0x2ef   :  { %4196 = vrsqrt.f32 %v746_v45  ;;  %v715_v31 = vmul.f32 0.0078125, %v673_v52 }
 0x2f1   :  { %v747_v18 = vadd.f32 1e-05, %v715_v31 }
 0x2f2   :  { %v675_v58 = vpop.xlane.xlu0 %674 }
 0x2f3   :  { %4198 = vrsqrt.f32 %v747_v18  ;;  %v716_v17 = vmul.f32 0.0078125, %v675_v58 }
 0x2f5   :  { %v748_v63 = vadd.f32 1e-05, %v716_v17 }
 0x2f6   :  { %v677_v37 = vpop.xlane.xlu1 %676 }
 0x2f7   :  { %4200 = vrsqrt.f32 %v748_v63  ;;  %v717_v19 = vmul.f32 0.0078125, %v677_v37 }
 0x2f9   :  { %v4197_v16 = vpop.eup %4196  ;;  %v749_v34 = vadd.f32 1e-05, %v717_v19 }
 0x2fa   :  { %v679_v30 = vpop.xlane.xlu0 %678  ;;  %v810_v41 = vmul.f32 %v4197_v16, %v4816_v7 }
 0x2fb   :  { %4202 = vrsqrt.f32 %v749_v34  ;;  %v718_v11 = vmul.f32 0.0078125, %v679_v30 }
 0x2fc   :  { %v846_v59 = vmul.f32 %v4833_v4, %v810_v41 }
 0x2fd   :  { %v4199_v28 = vpop.eup %4198  ;;  %v750_v25 = vadd.f32 1e-05, %v718_v11 }
 0x2fe   :  { %v681_v42 = vpop.xlane.xlu1 %680  ;;  %v811_v36 = vmul.f32 %v4199_v28, %v4821_v12  ;;  %v5032_v45 = vadd.f32 %v4846_v15, %v846_v59 }
 0x2ff   :  { %4204 = vrsqrt.f32 %v750_v25  ;;  %v719_v55 = vmul.f32 0.0078125, %v681_v42 }
 0x300   :  { %v847_v6 = vmul.f32 %v4833_v4, %v811_v36 }
 0x301   :  { %v4201_v1 = vpop.eup %4200  ;;  %v751_v29 = vadd.f32 1e-05, %v719_v55 }
 0x302   :  { %v683_v39 = vpop.xlane.xlu0 %682  ;;  %v5035_v7 = vadd.f32 %v4846_v15, %v847_v6  ;;  %v812_v52 = vmul.f32 %v4201_v1, %v4827_v33 }
 0x303   :  { %4206 = vrsqrt.f32 %v751_v29  ;;  %v720_v31 = vmul.f32 0.0078125, %v683_v39 }
 0x304   :  { %v904_v12 = vpack.c.bf16 %v5035_v7, %v5032_v45  ;;  %v848_v37 = vmul.f32 %v4833_v4, %v812_v52 }
 0x305   :  { %v4203_v18 = vpop.eup %4202  ;;  %v752_v58 = vadd.f32 1e-05, %v720_v31 }
 0x306   :  { %v685_v17 = vpop.xlane.xlu1 %684  ;;  %1257 = vmatmul.mubr.bf16.gmra.mrb[40].mxu1 %v904_v12  ;;  %1450 = vmatmul.mubr.bf16.gmra.mrb[104].mxu0 %v904_v12  ;;  %v813_v63 = vmul.f32 %v4203_v18, %v4839_v62  ;;  %v5046_v41 = vadd.f32 %v4846_v15, %v848_v37 }
 0x307   :  { %4208 = vrsqrt.f32 %v752_v58  ;;  %v721_v19 = vmul.f32 0.0078125, %v685_v17  ;;  %1266 = vmatprep.mubr.bf16.mxu1 %v4387_v54  ;;  %1459 = vmatprep.mubr.bf16.mxu0 %v4387_v54 }
 0x308   :  { %v849_v33 = vmul.f32 %v4833_v4, %v813_v63 }
 0x309   :  { %v4205_v16 = vpop.eup %4204  ;;  %v753_v34 = vadd.f32 1e-05, %v721_v19 }
 0x30a   :  { %v687_v30 = vpop.xlane.xlu0 %686  ;;  %v5049_v11 = vadd.f32 %v4846_v15, %v849_v33  ;;  %v814_v62 = vmul.f32 %v4205_v16, %v4852_v38 }
 0x30b   :  { %4210 = vrsqrt.f32 %v753_v34  ;;  %v722_v28 = vmul.f32 0.0078125, %v687_v30 }
 0x30c   :  { %v905_v25 = vpack.c.bf16 %v5049_v11, %v5046_v41  ;;  %v850_v6 = vmul.f32 %v4833_v4, %v814_v62 }
 0x30d   :  { %v4207_v42 = vpop.eup %4206  ;;  %v754_v36 = vadd.f32 1e-05, %v722_v28 }
 0x30e   :  { %v689_v59 = vpop.xlane.xlu1 %688  ;;  %1267 = vmatmul.mubr.bf16.gmra.mrb[44].mxu1 %v905_v25  ;;  %1460 = vmatmul.mubr.bf16.gmra.mrb[108].mxu0 %v905_v25  ;;  %v815_v55 = vmul.f32 %v4207_v42, %v4866_v9  ;;  %v5060_v31 = vadd.f32 %v4846_v15, %v850_v6 }
 0x30f   :  { %4212 = vrsqrt.f32 %v754_v36  ;;  %v723_v1 = vmul.f32 0.0078125, %v689_v59  ;;  %1276 = vmatprep.mubr.bf16.mxu1 %v4387_v54  ;;  %1469 = vmatprep.mubr.bf16.mxu0 %v4387_v54 }
 0x310   :  { %v851_v38 = vmul.f32 %v4833_v4, %v815_v55 }
 0x311   :  { %v4209_v29 = vpop.eup %4208  ;;  %v755_v39 = vadd.f32 1e-05, %v723_v1 }
 0x312   :  { %v691_v52 = vpop.xlane.xlu0 %690  ;;  %v5063_v12 = vadd.f32 %v4846_v15, %v851_v38  ;;  %v816_v9 = vmul.f32 %v4209_v29, %v4876_v43 }
 0x313   :  { %4214 = vrsqrt.f32 %v755_v39  ;;  %v724_v18 = vmul.f32 0.0078125, %v691_v52 }
 0x314   :  { %v906_v58 = vpack.c.bf16 %v5063_v12, %v5060_v31  ;;  %v852_v33 = vmul.f32 %v4833_v4, %v816_v9 }
 0x315   :  { %v4211_v17 = vpop.eup %4210  ;;  %v756_v63 = vadd.f32 1e-05, %v724_v18 }
 0x316   :  { %v693_v37 = vpop.xlane.xlu1 %692  ;;  %1277 = vmatmul.mubr.bf16.gmra.mrb[48].mxu1 %v906_v58  ;;  %1470 = vmatmul.mubr.bf16.gmra.mrb[112].mxu0 %v906_v58  ;;  %v817_v19 = vmul.f32 %v4211_v17, %v4890_v32  ;;  %v5074_v62 = vadd.f32 %v4846_v15, %v852_v33  ;;  %v958_v17 = vsub.s32 3, %v4537_v49 }
 0x317   :  { %4216 = vrsqrt.f32 %v756_v63  ;;  %v725_v16 = vmul.f32 0.0078125, %v693_v37  ;;  %1286 = vmatprep.mubr.bf16.mxu1 %v4387_v54  ;;  %1479 = vmatprep.mubr.bf16.mxu0 %v4387_v54 }
 0x318   :  { %v853_v43 = vmul.f32 %v4833_v4, %v817_v19 }
 0x319   :  { %v4213_v34 = vpop.eup %4212  ;;  %v757_v30 = vadd.f32 1e-05, %v725_v16 }
 0x31a   :  { %v5077_v28 = vadd.f32 %v4846_v15, %v853_v43  ;;  %v818_v32 = vmul.f32 %v4213_v34, %v4900_v47 }
 0x31b   :  { %4218 = vrsqrt.f32 %v757_v30 }
 0x31c   :  { %v907_v25 = vpack.c.bf16 %v5077_v28, %v5074_v62  ;;  %v854_v59 = vmul.f32 %v4833_v4, %v818_v32 }
 0x31d   :  { %v4215_v42 = vpop.eup %4214 }
 0x31e   :  { %1287 = vmatmul.mubr.bf16.gmra.mrb[52].mxu1 %v907_v25  ;;  %1480 = vmatmul.mubr.bf16.gmra.mrb[116].mxu0 %v907_v25  ;;  %v819_v36 = vmul.f32 %v4215_v42, %v4914_v21  ;;  %v5088_v47 = vadd.f32 %v4846_v15, %v854_v59 }
 0x31f   :  { %1296 = vmatprep.mubr.bf16.mxu1 %v4387_v54  ;;  %1489 = vmatprep.mubr.bf16.mxu0 %v4387_v54 }
 0x320   :  { %v855_v55 = vmul.f32 %v4833_v4, %v819_v36 }
 0x321   :  { %v4217_v6 = vpop.eup %4216 }
 0x322   :  { %v5091_v1 = vadd.f32 %v4846_v15, %v855_v55  ;;  %v820_v38 = vmul.f32 %v4217_v6, %v4924_v61 }
 0x324   :  { %v908_v21 = vpack.c.bf16 %v5091_v1, %v5088_v47  ;;  %v856_v52 = vmul.f32 %v4833_v4, %v820_v38 }
 0x325   :  { %v4219_v29 = vpop.eup %4218 }
 0x326   :  { %1297 = vmatmul.mubr.bf16.gmra.mrb[56].mxu1 %v908_v21  ;;  %1490 = vmatmul.mubr.bf16.gmra.mrb[120].mxu0 %v908_v21  ;;  %v821_v39 = vmul.f32 %v4219_v29, %v4938_v10  ;;  %v5102_v18 = vadd.f32 %v4846_v15, %v856_v52  ;;  %v942_v10 = vld [vmem:[%s5849_s3] sm:$0xf] }
 0x327   :  { %1306 = vmatprep.mubr.bf16.mxu1 %v4387_v54  ;;  %1499 = vmatprep.mubr.bf16.mxu0 %v4387_v54  ;;  %v5115_v54 = vrot.slane %v942_v10, %v210_v50  ;;  %v5127_v63 = vrot.slane %v942_v10, %v958_v17 }
 0x328   :  { %v857_v9 = vmul.f32 %v4833_v4, %v821_v39  ;;  %v5119_v4 = vrot.slane %v942_v10, %v860_v3 }
 0x32a   :  { %v5105_v61 = vadd.f32 %v4846_v15, %v857_v9  ;;  %v5123_v15 = vrot.slane %v942_v10, %v824_v24 }
 0x32c   :  { %v909_v58 = vpack.c.bf16 %v5105_v61, %v5102_v18 }
 0x32e   :  { %1307 = vmatmul.mubr.bf16.gmra.mrb[60].mxu1 %v909_v58  ;;  %1500 = vmatmul.mubr.bf16.gmra.mrb[124].mxu0 %v909_v58 }
 0x341   :  { %v1158_v37 = vpop.f32.mrb[0].mxu1  ;;  %v1351_v19 = vpop.f32.mrb[64].mxu0 }
 0x342   :  { %v1159_v33 = vadd.f32 %v1158_v37, %v5115_v54  ;;  %v1352_v16 = vadd.f32 %v1351_v19, %v5119_v4  ;;  %v1160_v50 = vpop.f32.mrb[1].mxu1  ;;  %v1353_v43 = vpop.f32.mrb[65].mxu0 }
 0x343   :  { %v1161_v34 = vadd.f32 %v1160_v50, %v5123_v15  ;;  %v1354_v3 = vadd.f32 %v1353_v43, %v5127_v63  ;;  %v1162_v30 = vpop.f32.mrb[2].mxu1  ;;  %v1355_v32 = vpop.f32.mrb[66].mxu0 }
 0x344   :  { %v1163_v24 = vadd.f32 %v1162_v30, %v5115_v54  ;;  %v1356_v25 = vadd.f32 %v1355_v32, %v5119_v4  ;;  %v1164_v42 = vpop.f32.mrb[3].mxu1  ;;  %v1357_v36 = vpop.f32.mrb[67].mxu0  ;;  %v1510_v6 = vmax.f32 %v1159_v33, 0.0  ;;  %v1512_v38 = vmax.f32 %v1352_v16, 0.0 }
 0x345   :  { %v1165_v59 = vadd.f32 %v1164_v42, %v5123_v15  ;;  %v1358_v55 = vadd.f32 %v1357_v36, %v5127_v63  ;;  %v1511_v39 = vmax.f32 %v1161_v34, 0.0  ;;  %v1513_v52 = vmax.f32 %v1354_v3, 0.0 }
 0x346   :  { %v1514_v21 = vmax.f32 %v1163_v24, 0.0  ;;  %v1516_v29 = vmax.f32 %v1356_v25, 0.0 }
 0x347   :  { %v1515_v9 = vmax.f32 %v1165_v59, 0.0  ;;  %v1517_v58 = vmax.f32 %v1358_v55, 0.0 }
 0x348   :  { %v1638_v10 = vpack.c.bf16 %v1514_v21, %v1510_v6  ;;  %v1640_v37 = vpack.c.bf16 %v1516_v29, %v1512_v38 }
 0x349   :  { %v1639_v19 = vpack.c.bf16 %v1515_v9, %v1511_v39  ;;  %v1641_v50 = vpack.c.bf16 %v1517_v58, %v1513_v52  ;;  %v1168_v43 = vpop.f32.mrb[4].mxu1  ;;  %v1361_v30 = vpop.f32.mrb[68].mxu0 }
 0x34a   :  { %v1169_v32 = vadd.f32 %v1168_v43, %v5115_v54  ;;  %v1362_v42 = vadd.f32 %v1361_v30, %v5119_v4  ;;  %v1170_v48 = vpop.f32.mrb[5].mxu1  ;;  %v1363_v36 = vpop.f32.mrb[69].mxu0 }
 0x34b   :  { %v1171_v33 = vadd.f32 %v1170_v48, %v5123_v15  ;;  %v1364_v16 = vadd.f32 %v1363_v36, %v5127_v63  ;;  %v1172_v34 = vpop.f32.mrb[6].mxu1  ;;  %v1365_v3 = vpop.f32.mrb[70].mxu0  ;;  %1994 = vmatprep.mubr.bf16.mxu1 %v1639_v19  ;;  %2155 = vmatprep.mubr.bf16.mxu0 %v1641_v50 }
 0x34c   :  { %v1173_v24 = vadd.f32 %v1172_v34, %v5115_v54  ;;  %v1366_v25 = vadd.f32 %v1365_v3, %v5119_v4  ;;  %v1174_v59 = vpop.f32.mrb[7].mxu1  ;;  %v1367_v55 = vpop.f32.mrb[71].mxu0  ;;  %1995 = vmatmul.mubr.bf16.vlgmr.msra.gmra.mrb[64].mxu1 %v1638_v10  ;;  %2156 = vmatmul.mubr.bf16.vlgmr.msra.gmra.mrb[128].mxu0 %v1640_v37  ;;  %v1518_v21 = vmax.f32 %v1169_v32, 0.0  ;;  %v1520_v48 = vmax.f32 %v1362_v42, 0.0 }
 0x34d   :  { %v1175_v6 = vadd.f32 %v1174_v59, %v5123_v15  ;;  %v1368_v38 = vadd.f32 %v1367_v55, %v5127_v63  ;;  %v1519_v52 = vmax.f32 %v1171_v33, 0.0  ;;  %v1521_v9 = vmax.f32 %v1364_v16, 0.0 }
 0x34e   :  { %v1522_v29 = vmax.f32 %v1173_v24, 0.0  ;;  %v1524_v39 = vmax.f32 %v1366_v25, 0.0 }
 0x34f   :  { %v1523_v58 = vmax.f32 %v1175_v6, 0.0  ;;  %v1525_v19 = vmax.f32 %v1368_v38, 0.0 }
 0x350   :  { %v1642_v50 = vpack.c.bf16 %v1522_v29, %v1518_v21  ;;  %v1644_v43 = vpack.c.bf16 %v1524_v39, %v1520_v48 }
 0x351   :  { %v1643_v30 = vpack.c.bf16 %v1523_v58, %v1519_v52  ;;  %v1645_v36 = vpack.c.bf16 %v1525_v19, %v1521_v9  ;;  %v1178_v34 = vpop.f32.mrb[8].mxu1  ;;  %v1371_v3 = vpop.f32.mrb[72].mxu0 }
 0x352   :  { %v1179_v10 = vadd.f32 %v1178_v34, %v5115_v54  ;;  %v1372_v37 = vadd.f32 %v1371_v3, %v5119_v4  ;;  %v1180_v59 = vpop.f32.mrb[9].mxu1  ;;  %v1373_v55 = vpop.f32.mrb[73].mxu0 }
 0x353   :  { %v1181_v32 = vadd.f32 %v1180_v59, %v5123_v15  ;;  %v1374_v42 = vadd.f32 %v1373_v55, %v5127_v63  ;;  %v1182_v33 = vpop.f32.mrb[10].mxu1  ;;  %v1375_v16 = vpop.f32.mrb[74].mxu0  ;;  %2002 = vmatprep.mubr.bf16.mxu1 %v1643_v30  ;;  %2163 = vmatprep.mubr.bf16.mxu0 %v1645_v36 }
 0x354   :  { %v1183_v24 = vadd.f32 %v1182_v33, %v5115_v54  ;;  %v1376_v25 = vadd.f32 %v1375_v16, %v5119_v4  ;;  %v1184_v6 = vpop.f32.mrb[11].mxu1  ;;  %v1377_v38 = vpop.f32.mrb[75].mxu0  ;;  %2003 = vmatmul.mubr.bf16.gmra.mrb[68].mxu1 %v1642_v50  ;;  %2164 = vmatmul.mubr.bf16.gmra.mrb[132].mxu0 %v1644_v43  ;;  %v1526_v29 = vmax.f32 %v1179_v10, 0.0  ;;  %v1528_v39 = vmax.f32 %v1372_v37, 0.0 }
 0x355   :  { %v1185_v21 = vadd.f32 %v1184_v6, %v5123_v15  ;;  %v1378_v48 = vadd.f32 %v1377_v38, %v5127_v63  ;;  %v1527_v58 = vmax.f32 %v1181_v32, 0.0  ;;  %v1529_v19 = vmax.f32 %v1374_v42, 0.0 }
 0x356   :  { %v1530_v52 = vmax.f32 %v1183_v24, 0.0  ;;  %v1532_v9 = vmax.f32 %v1376_v25, 0.0 }
 0x357   :  { %v1531_v30 = vmax.f32 %v1185_v21, 0.0  ;;  %v1533_v36 = vmax.f32 %v1378_v48, 0.0 }
 0x358   :  { %v1646_v34 = vpack.c.bf16 %v1530_v52, %v1526_v29  ;;  %v1648_v3 = vpack.c.bf16 %v1532_v9, %v1528_v39 }
 0x359   :  { %v1647_v59 = vpack.c.bf16 %v1531_v30, %v1527_v58  ;;  %v1649_v55 = vpack.c.bf16 %v1533_v36, %v1529_v19  ;;  %v1188_v33 = vpop.f32.mrb[12].mxu1  ;;  %v1381_v16 = vpop.f32.mrb[76].mxu0 }
 0x35a   :  { %v1189_v50 = vadd.f32 %v1188_v33, %v5115_v54  ;;  %v1382_v43 = vadd.f32 %v1381_v16, %v5119_v4  ;;  %v1190_v6 = vpop.f32.mrb[13].mxu1  ;;  %v1383_v38 = vpop.f32.mrb[77].mxu0 }
 0x35b   :  { %v1191_v10 = vadd.f32 %v1190_v6, %v5123_v15  ;;  %v1384_v37 = vadd.f32 %v1383_v38, %v5127_v63  ;;  %v1192_v32 = vpop.f32.mrb[14].mxu1  ;;  %v1385_v42 = vpop.f32.mrb[78].mxu0  ;;  %2010 = vmatprep.mubr.bf16.mxu1 %v1647_v59  ;;  %2171 = vmatprep.mubr.bf16.mxu0 %v1649_v55 }
 0x35c   :  { %v1193_v24 = vadd.f32 %v1192_v32, %v5115_v54  ;;  %v1386_v25 = vadd.f32 %v1385_v42, %v5119_v4  ;;  %v1194_v21 = vpop.f32.mrb[15].mxu1  ;;  %v1387_v48 = vpop.f32.mrb[79].mxu0  ;;  %2011 = vmatmul.mubr.bf16.gmra.mrb[72].mxu1 %v1646_v34  ;;  %2172 = vmatmul.mubr.bf16.gmra.mrb[136].mxu0 %v1648_v3  ;;  %v1534_v52 = vmax.f32 %v1189_v50, 0.0  ;;  %v1536_v9 = vmax.f32 %v1382_v43, 0.0 }
 0x35d   :  { %v1195_v29 = vadd.f32 %v1194_v21, %v5123_v15  ;;  %v1388_v39 = vadd.f32 %v1387_v48, %v5127_v63  ;;  %v1535_v30 = vmax.f32 %v1191_v10, 0.0  ;;  %v1537_v36 = vmax.f32 %v1384_v37, 0.0 }
 0x35e   :  { %v1538_v58 = vmax.f32 %v1193_v24, 0.0  ;;  %v1540_v19 = vmax.f32 %v1386_v25, 0.0 }
 0x35f   :  { %v1539_v59 = vmax.f32 %v1195_v29, 0.0  ;;  %v1541_v55 = vmax.f32 %v1388_v39, 0.0 }
 0x360   :  { %v1650_v33 = vpack.c.bf16 %v1538_v58, %v1534_v52  ;;  %v1652_v16 = vpack.c.bf16 %v1540_v19, %v1536_v9 }
 0x361   :  { %v1651_v6 = vpack.c.bf16 %v1539_v59, %v1535_v30  ;;  %v1653_v38 = vpack.c.bf16 %v1541_v55, %v1537_v36  ;;  %v1198_v32 = vpop.f32.mrb[16].mxu1  ;;  %v1391_v42 = vpop.f32.mrb[80].mxu0 }
 0x362   :  { %v1199_v34 = vadd.f32 %v1198_v32, %v5115_v54  ;;  %v1392_v3 = vadd.f32 %v1391_v42, %v5119_v4  ;;  %v1200_v21 = vpop.f32.mrb[17].mxu1  ;;  %v1393_v48 = vpop.f32.mrb[81].mxu0 }
 0x363   :  { %v1201_v50 = vadd.f32 %v1200_v21, %v5123_v15  ;;  %v1394_v43 = vadd.f32 %v1393_v48, %v5127_v63  ;;  %v1202_v10 = vpop.f32.mrb[18].mxu1  ;;  %v1395_v37 = vpop.f32.mrb[82].mxu0  ;;  %2018 = vmatprep.mubr.bf16.mxu1 %v1651_v6  ;;  %2179 = vmatprep.mubr.bf16.mxu0 %v1653_v38 }
 0x364   :  { %v1203_v24 = vadd.f32 %v1202_v10, %v5115_v54  ;;  %v1396_v25 = vadd.f32 %v1395_v37, %v5119_v4  ;;  %v1204_v29 = vpop.f32.mrb[19].mxu1  ;;  %v1397_v39 = vpop.f32.mrb[83].mxu0  ;;  %2019 = vmatmul.mubr.bf16.gmra.mrb[76].mxu1 %v1650_v33  ;;  %2180 = vmatmul.mubr.bf16.gmra.mrb[140].mxu0 %v1652_v16  ;;  %v1542_v58 = vmax.f32 %v1199_v34, 0.0  ;;  %v1544_v19 = vmax.f32 %v1392_v3, 0.0 }
 0x365   :  { %v1205_v52 = vadd.f32 %v1204_v29, %v5123_v15  ;;  %v1398_v9 = vadd.f32 %v1397_v39, %v5127_v63  ;;  %v1543_v59 = vmax.f32 %v1201_v50, 0.0  ;;  %v1545_v55 = vmax.f32 %v1394_v43, 0.0 }
 0x366   :  { %v1546_v30 = vmax.f32 %v1203_v24, 0.0  ;;  %v1548_v36 = vmax.f32 %v1396_v25, 0.0 }
 0x367   :  { %v1547_v6 = vmax.f32 %v1205_v52, 0.0  ;;  %v1549_v38 = vmax.f32 %v1398_v9, 0.0 }
 0x368   :  { %v1654_v32 = vpack.c.bf16 %v1546_v30, %v1542_v58  ;;  %v1656_v42 = vpack.c.bf16 %v1548_v36, %v1544_v19 }
 0x369   :  { %v1655_v21 = vpack.c.bf16 %v1547_v6, %v1543_v59  ;;  %v1657_v48 = vpack.c.bf16 %v1549_v38, %v1545_v55  ;;  %v1208_v10 = vpop.f32.mrb[20].mxu1  ;;  %v1401_v37 = vpop.f32.mrb[84].mxu0 }
 0x36a   :  { %v1209_v33 = vadd.f32 %v1208_v10, %v5115_v54  ;;  %v1402_v16 = vadd.f32 %v1401_v37, %v5119_v4  ;;  %v1210_v29 = vpop.f32.mrb[21].mxu1  ;;  %v1403_v39 = vpop.f32.mrb[85].mxu0 }
 0x36b   :  { %v1211_v34 = vadd.f32 %v1210_v29, %v5123_v15  ;;  %v1404_v3 = vadd.f32 %v1403_v39, %v5127_v63  ;;  %v1212_v50 = vpop.f32.mrb[22].mxu1  ;;  %v1405_v43 = vpop.f32.mrb[86].mxu0  ;;  %2026 = vmatprep.mubr.bf16.mxu1 %v1655_v21  ;;  %2187 = vmatprep.mubr.bf16.mxu0 %v1657_v48 }
 0x36c   :  { %v1213_v24 = vadd.f32 %v1212_v50, %v5115_v54  ;;  %v1406_v25 = vadd.f32 %v1405_v43, %v5119_v4  ;;  %v1214_v52 = vpop.f32.mrb[23].mxu1  ;;  %v1407_v9 = vpop.f32.mrb[87].mxu0  ;;  %2027 = vmatmul.mubr.bf16.gmra.mrb[80].mxu1 %v1654_v32  ;;  %2188 = vmatmul.mubr.bf16.gmra.mrb[144].mxu0 %v1656_v42  ;;  %v1550_v30 = vmax.f32 %v1209_v33, 0.0  ;;  %v1552_v36 = vmax.f32 %v1402_v16, 0.0 }
 0x36d   :  { %v1215_v58 = vadd.f32 %v1214_v52, %v5123_v15  ;;  %v1408_v19 = vadd.f32 %v1407_v9, %v5127_v63  ;;  %v1551_v6 = vmax.f32 %v1211_v34, 0.0  ;;  %v1553_v38 = vmax.f32 %v1404_v3, 0.0 }
 0x36e   :  { %v1554_v59 = vmax.f32 %v1213_v24, 0.0  ;;  %v1556_v55 = vmax.f32 %v1406_v25, 0.0 }
 0x36f   :  { %v1555_v21 = vmax.f32 %v1215_v58, 0.0  ;;  %v1557_v48 = vmax.f32 %v1408_v19, 0.0 }
 0x370   :  { %v1658_v10 = vpack.c.bf16 %v1554_v59, %v1550_v30  ;;  %v1660_v37 = vpack.c.bf16 %v1556_v55, %v1552_v36 }
 0x371   :  { %v1659_v29 = vpack.c.bf16 %v1555_v21, %v1551_v6  ;;  %v1661_v39 = vpack.c.bf16 %v1557_v48, %v1553_v38  ;;  %v1218_v50 = vpop.f32.mrb[24].mxu1  ;;  %v1411_v43 = vpop.f32.mrb[88].mxu0 }
 0x372   :  { %v1219_v32 = vadd.f32 %v1218_v50, %v5115_v54  ;;  %v1412_v42 = vadd.f32 %v1411_v43, %v5119_v4  ;;  %v1220_v52 = vpop.f32.mrb[25].mxu1  ;;  %v1413_v9 = vpop.f32.mrb[89].mxu0 }
 0x373   :  { %v1221_v33 = vadd.f32 %v1220_v52, %v5123_v15  ;;  %v1414_v16 = vadd.f32 %v1413_v9, %v5127_v63  ;;  %v1222_v34 = vpop.f32.mrb[26].mxu1  ;;  %v1415_v3 = vpop.f32.mrb[90].mxu0  ;;  %2034 = vmatprep.mubr.bf16.mxu1 %v1659_v29  ;;  %2195 = vmatprep.mubr.bf16.mxu0 %v1661_v39 }
 0x374   :  { %v1223_v24 = vadd.f32 %v1222_v34, %v5115_v54  ;;  %v1416_v25 = vadd.f32 %v1415_v3, %v5119_v4  ;;  %v1224_v58 = vpop.f32.mrb[27].mxu1  ;;  %v1417_v19 = vpop.f32.mrb[91].mxu0  ;;  %2035 = vmatmul.mubr.bf16.gmra.mrb[84].mxu1 %v1658_v10  ;;  %2196 = vmatmul.mubr.bf16.gmra.mrb[148].mxu0 %v1660_v37  ;;  %v1558_v59 = vmax.f32 %v1219_v32, 0.0  ;;  %v1560_v55 = vmax.f32 %v1412_v42, 0.0 }
 0x375   :  { %v1225_v30 = vadd.f32 %v1224_v58, %v5123_v15  ;;  %v1418_v36 = vadd.f32 %v1417_v19, %v5127_v63  ;;  %v1559_v21 = vmax.f32 %v1221_v33, 0.0  ;;  %v1561_v48 = vmax.f32 %v1414_v16, 0.0 }
 0x376   :  { %v1562_v6 = vmax.f32 %v1223_v24, 0.0  ;;  %v1564_v38 = vmax.f32 %v1416_v25, 0.0 }
 0x377   :  { %v1563_v29 = vmax.f32 %v1225_v30, 0.0  ;;  %v1565_v39 = vmax.f32 %v1418_v36, 0.0 }
 0x378   :  { %v1662_v50 = vpack.c.bf16 %v1562_v6, %v1558_v59  ;;  %v1664_v43 = vpack.c.bf16 %v1564_v38, %v1560_v55 }
 0x379   :  { %v1663_v52 = vpack.c.bf16 %v1563_v29, %v1559_v21  ;;  %v1665_v9 = vpack.c.bf16 %v1565_v39, %v1561_v48  ;;  %v1228_v34 = vpop.f32.mrb[28].mxu1  ;;  %v1421_v3 = vpop.f32.mrb[92].mxu0 }
 0x37a   :  { %v1229_v10 = vadd.f32 %v1228_v34, %v5115_v54  ;;  %v1422_v37 = vadd.f32 %v1421_v3, %v5119_v4  ;;  %v1230_v58 = vpop.f32.mrb[29].mxu1  ;;  %v1423_v19 = vpop.f32.mrb[93].mxu0 }
 0x37b   :  { %v1231_v32 = vadd.f32 %v1230_v58, %v5123_v15  ;;  %v1424_v42 = vadd.f32 %v1423_v19, %v5127_v63  ;;  %v1232_v33 = vpop.f32.mrb[30].mxu1  ;;  %v1425_v16 = vpop.f32.mrb[94].mxu0  ;;  %2042 = vmatprep.mubr.bf16.mxu1 %v1663_v52  ;;  %2203 = vmatprep.mubr.bf16.mxu0 %v1665_v9 }
 0x37c   :  { %v1233_v24 = vadd.f32 %v1232_v33, %v5115_v54  ;;  %v1426_v25 = vadd.f32 %v1425_v16, %v5119_v4  ;;  %v1234_v30 = vpop.f32.mrb[31].mxu1  ;;  %v1427_v36 = vpop.f32.mrb[95].mxu0  ;;  %2043 = vmatmul.mubr.bf16.gmra.mrb[88].mxu1 %v1662_v50  ;;  %2204 = vmatmul.mubr.bf16.gmra.mrb[152].mxu0 %v1664_v43  ;;  %v1566_v6 = vmax.f32 %v1229_v10, 0.0  ;;  %v1568_v38 = vmax.f32 %v1422_v37, 0.0 }
 0x37d   :  { %v1235_v59 = vadd.f32 %v1234_v30, %v5123_v15  ;;  %v1428_v55 = vadd.f32 %v1427_v36, %v5127_v63  ;;  %v1567_v29 = vmax.f32 %v1231_v32, 0.0  ;;  %v1569_v39 = vmax.f32 %v1424_v42, 0.0 }
 0x37e   :  { %v1570_v21 = vmax.f32 %v1233_v24, 0.0  ;;  %v1572_v48 = vmax.f32 %v1426_v25, 0.0 }
 0x37f   :  { %v1571_v52 = vmax.f32 %v1235_v59, 0.0  ;;  %v1573_v9 = vmax.f32 %v1428_v55, 0.0 }
 0x380   :  { %v1666_v34 = vpack.c.bf16 %v1570_v21, %v1566_v6  ;;  %v1668_v3 = vpack.c.bf16 %v1572_v48, %v1568_v38 }
 0x381   :  { %v1667_v58 = vpack.c.bf16 %v1571_v52, %v1567_v29  ;;  %v1669_v19 = vpack.c.bf16 %v1573_v9, %v1569_v39  ;;  %v1238_v33 = vpop.f32.mrb[32].mxu1  ;;  %v1431_v16 = vpop.f32.mrb[96].mxu0 }
 0x382   :  { %v1239_v50 = vadd.f32 %v1238_v33, %v5115_v54  ;;  %v1432_v43 = vadd.f32 %v1431_v16, %v5119_v4  ;;  %v1240_v30 = vpop.f32.mrb[33].mxu1  ;;  %v1433_v36 = vpop.f32.mrb[97].mxu0 }
 0x383   :  { %v1241_v10 = vadd.f32 %v1240_v30, %v5123_v15  ;;  %v1434_v37 = vadd.f32 %v1433_v36, %v5127_v63  ;;  %v1242_v32 = vpop.f32.mrb[34].mxu1  ;;  %v1435_v42 = vpop.f32.mrb[98].mxu0  ;;  %2050 = vmatprep.mubr.bf16.mxu1 %v1667_v58  ;;  %2211 = vmatprep.mubr.bf16.mxu0 %v1669_v19 }
 0x384   :  { %v1243_v24 = vadd.f32 %v1242_v32, %v5115_v54  ;;  %v1436_v25 = vadd.f32 %v1435_v42, %v5119_v4  ;;  %v1244_v59 = vpop.f32.mrb[35].mxu1  ;;  %v1437_v55 = vpop.f32.mrb[99].mxu0  ;;  %2051 = vmatmul.mubr.bf16.gmra.mrb[92].mxu1 %v1666_v34  ;;  %2212 = vmatmul.mubr.bf16.gmra.mrb[156].mxu0 %v1668_v3  ;;  %v1574_v21 = vmax.f32 %v1239_v50, 0.0  ;;  %v1576_v48 = vmax.f32 %v1432_v43, 0.0 }
 0x385   :  { %v1245_v6 = vadd.f32 %v1244_v59, %v5123_v15  ;;  %v1438_v38 = vadd.f32 %v1437_v55, %v5127_v63  ;;  %v1575_v52 = vmax.f32 %v1241_v10, 0.0  ;;  %v1577_v9 = vmax.f32 %v1434_v37, 0.0 }
 0x386   :  { %v1578_v29 = vmax.f32 %v1243_v24, 0.0  ;;  %v1580_v39 = vmax.f32 %v1436_v25, 0.0 }
 0x387   :  { %v1579_v58 = vmax.f32 %v1245_v6, 0.0  ;;  %v1581_v19 = vmax.f32 %v1438_v38, 0.0 }
 0x388   :  { %v1670_v33 = vpack.c.bf16 %v1578_v29, %v1574_v21  ;;  %v1672_v16 = vpack.c.bf16 %v1580_v39, %v1576_v48 }
 0x389   :  { %v1671_v30 = vpack.c.bf16 %v1579_v58, %v1575_v52  ;;  %v1673_v36 = vpack.c.bf16 %v1581_v19, %v1577_v9  ;;  %v1248_v32 = vpop.f32.mrb[36].mxu1  ;;  %v1441_v42 = vpop.f32.mrb[100].mxu0 }
 0x38a   :  { %v1249_v34 = vadd.f32 %v1248_v32, %v5115_v54  ;;  %v1442_v3 = vadd.f32 %v1441_v42, %v5119_v4  ;;  %v1250_v59 = vpop.f32.mrb[37].mxu1  ;;  %v1443_v55 = vpop.f32.mrb[101].mxu0 }
 0x38b   :  { %v1251_v50 = vadd.f32 %v1250_v59, %v5123_v15  ;;  %v1444_v43 = vadd.f32 %v1443_v55, %v5127_v63  ;;  %v1252_v10 = vpop.f32.mrb[38].mxu1  ;;  %v1445_v37 = vpop.f32.mrb[102].mxu0  ;;  %2058 = vmatprep.mubr.bf16.mxu1 %v1671_v30  ;;  %2219 = vmatprep.mubr.bf16.mxu0 %v1673_v36 }
 0x38c   :  { %v1253_v24 = vadd.f32 %v1252_v10, %v5115_v54  ;;  %v1446_v25 = vadd.f32 %v1445_v37, %v5119_v4  ;;  %v1254_v6 = vpop.f32.mrb[39].mxu1  ;;  %v1447_v38 = vpop.f32.mrb[103].mxu0  ;;  %2059 = vmatmul.mubr.bf16.gmra.mrb[96].mxu1 %v1670_v33  ;;  %2220 = vmatmul.mubr.bf16.gmra.mrb[160].mxu0 %v1672_v16  ;;  %v1582_v29 = vmax.f32 %v1249_v34, 0.0  ;;  %v1584_v39 = vmax.f32 %v1442_v3, 0.0 }
 0x38d   :  { %v1255_v21 = vadd.f32 %v1254_v6, %v5123_v15  ;;  %v1448_v48 = vadd.f32 %v1447_v38, %v5127_v63  ;;  %v1583_v58 = vmax.f32 %v1251_v50, 0.0  ;;  %v1585_v19 = vmax.f32 %v1444_v43, 0.0 }
 0x38e   :  { %v1586_v52 = vmax.f32 %v1253_v24, 0.0  ;;  %v1588_v9 = vmax.f32 %v1446_v25, 0.0 }
 0x38f   :  { %v1587_v30 = vmax.f32 %v1255_v21, 0.0  ;;  %v1589_v36 = vmax.f32 %v1448_v48, 0.0 }
 0x390   :  { %v1674_v32 = vpack.c.bf16 %v1586_v52, %v1582_v29  ;;  %v1676_v42 = vpack.c.bf16 %v1588_v9, %v1584_v39 }
 0x391   :  { %v1675_v59 = vpack.c.bf16 %v1587_v30, %v1583_v58  ;;  %v1677_v55 = vpack.c.bf16 %v1589_v36, %v1585_v19 }
 0x393   :  { %2066 = vmatprep.mubr.bf16.mxu1 %v1675_v59  ;;  %2227 = vmatprep.mubr.bf16.mxu0 %v1677_v55 }
 0x394   :  { %2067 = vmatmul.mubr.bf16.gmra.mrb[100].mxu1 %v1674_v32  ;;  %2228 = vmatmul.mubr.bf16.gmra.mrb[164].mxu0 %v1676_v42 }
 0x3d9   :  { %v1258_v33 = vpop.f32.mrb[40].mxu1  ;;  %v1451_v16 = vpop.f32.mrb[104].mxu0 }
 0x3da   :  { %v1259_v10 = vadd.f32 %v1258_v33, %v5115_v54  ;;  %v1452_v34 = vadd.f32 %v1451_v16, %v5119_v4  ;;  %v1260_v3 = vpop.f32.mrb[41].mxu1  ;;  %v1453_v37 = vpop.f32.mrb[105].mxu0 }
 0x3db   :  { %v1261_v50 = vadd.f32 %v1260_v3, %v5123_v15  ;;  %v1454_v43 = vadd.f32 %v1453_v37, %v5127_v63  ;;  %v1262_v24 = vpop.f32.mrb[42].mxu1  ;;  %v1455_v25 = vpop.f32.mrb[106].mxu0 }
 0x3dc   :  { %v1263_v6 = vadd.f32 %v1262_v24, %v5115_v54  ;;  %v1456_v38 = vadd.f32 %v1455_v25, %v5119_v4  ;;  %v1264_v21 = vpop.f32.mrb[43].mxu1  ;;  %v1457_v48 = vpop.f32.mrb[107].mxu0  ;;  %v1590_v52 = vmax.f32 %v1259_v10, 0.0  ;;  %v1592_v9 = vmax.f32 %v1452_v34, 0.0 }
 0x3dd   :  { %v1265_v29 = vadd.f32 %v1264_v21, %v5123_v15  ;;  %v1458_v39 = vadd.f32 %v1457_v48, %v5127_v63  ;;  %v1591_v30 = vmax.f32 %v1261_v50, 0.0  ;;  %v1593_v36 = vmax.f32 %v1454_v43, 0.0 }
 0x3de   :  { %v1594_v58 = vmax.f32 %v1263_v6, 0.0  ;;  %v1596_v19 = vmax.f32 %v1456_v38, 0.0 }
 0x3df   :  { %v1595_v32 = vmax.f32 %v1265_v29, 0.0  ;;  %v1597_v42 = vmax.f32 %v1458_v39, 0.0 }
 0x3e0   :  { %v1678_v59 = vpack.c.bf16 %v1594_v58, %v1590_v52  ;;  %v1680_v55 = vpack.c.bf16 %v1596_v19, %v1592_v9 }
 0x3e1   :  { %v1679_v33 = vpack.c.bf16 %v1595_v32, %v1591_v30  ;;  %v1681_v16 = vpack.c.bf16 %v1597_v42, %v1593_v36  ;;  %v1268_v3 = vpop.f32.mrb[44].mxu1  ;;  %v1461_v37 = vpop.f32.mrb[108].mxu0 }
 0x3e2   :  { %v1269_v24 = vadd.f32 %v1268_v3, %v5115_v54  ;;  %v1462_v25 = vadd.f32 %v1461_v37, %v5119_v4  ;;  %v1270_v21 = vpop.f32.mrb[45].mxu1  ;;  %v1463_v48 = vpop.f32.mrb[109].mxu0 }
 0x3e3   :  { %v1271_v10 = vadd.f32 %v1270_v21, %v5123_v15  ;;  %v1464_v34 = vadd.f32 %v1463_v48, %v5127_v63  ;;  %v1272_v50 = vpop.f32.mrb[46].mxu1  ;;  %v1465_v43 = vpop.f32.mrb[110].mxu0  ;;  %2074 = vmatprep.mubr.bf16.mxu1 %v1679_v33  ;;  %2235 = vmatprep.mubr.bf16.mxu0 %v1681_v16 }
 0x3e4   :  { %v1273_v6 = vadd.f32 %v1272_v50, %v5115_v54  ;;  %v1466_v38 = vadd.f32 %v1465_v43, %v5119_v4  ;;  %v1274_v29 = vpop.f32.mrb[47].mxu1  ;;  %v1467_v39 = vpop.f32.mrb[111].mxu0  ;;  %2075 = vmatmul.mubr.bf16.gmra.mrb[104].mxu1 %v1678_v59  ;;  %2236 = vmatmul.mubr.bf16.gmra.mrb[168].mxu0 %v1680_v55  ;;  %v1598_v58 = vmax.f32 %v1269_v24, 0.0  ;;  %v1600_v19 = vmax.f32 %v1462_v25, 0.0 }
 0x3e5   :  { %v1275_v52 = vadd.f32 %v1274_v29, %v5123_v15  ;;  %v1468_v9 = vadd.f32 %v1467_v39, %v5127_v63  ;;  %v1599_v32 = vmax.f32 %v1271_v10, 0.0  ;;  %v1601_v42 = vmax.f32 %v1464_v34, 0.0 }
 0x3e6   :  { %v1602_v30 = vmax.f32 %v1273_v6, 0.0  ;;  %v1604_v36 = vmax.f32 %v1466_v38, 0.0 }
 0x3e7   :  { %v1603_v33 = vmax.f32 %v1275_v52, 0.0  ;;  %v1605_v16 = vmax.f32 %v1468_v9, 0.0 }
 0x3e8   :  { %v1682_v3 = vpack.c.bf16 %v1602_v30, %v1598_v58  ;;  %v1684_v37 = vpack.c.bf16 %v1604_v36, %v1600_v19 }
 0x3e9   :  { %v1683_v21 = vpack.c.bf16 %v1603_v33, %v1599_v32  ;;  %v1685_v48 = vpack.c.bf16 %v1605_v16, %v1601_v42  ;;  %v1278_v50 = vpop.f32.mrb[48].mxu1  ;;  %v1471_v43 = vpop.f32.mrb[112].mxu0 }
 0x3ea   :  { %v1279_v59 = vadd.f32 %v1278_v50, %v5115_v54  ;;  %v1472_v55 = vadd.f32 %v1471_v43, %v5119_v4  ;;  %v1280_v29 = vpop.f32.mrb[49].mxu1  ;;  %v1473_v39 = vpop.f32.mrb[113].mxu0 }
 0x3eb   :  { %v1281_v24 = vadd.f32 %v1280_v29, %v5123_v15  ;;  %v1474_v25 = vadd.f32 %v1473_v39, %v5127_v63  ;;  %v1282_v10 = vpop.f32.mrb[50].mxu1  ;;  %v1475_v34 = vpop.f32.mrb[114].mxu0  ;;  %2082 = vmatprep.mubr.bf16.mxu1 %v1683_v21  ;;  %2243 = vmatprep.mubr.bf16.mxu0 %v1685_v48 }
 0x3ec   :  { %v1283_v6 = vadd.f32 %v1282_v10, %v5115_v54  ;;  %v1476_v38 = vadd.f32 %v1475_v34, %v5119_v4  ;;  %v1284_v52 = vpop.f32.mrb[51].mxu1  ;;  %v1477_v9 = vpop.f32.mrb[115].mxu0  ;;  %2083 = vmatmul.mubr.bf16.gmra.mrb[108].mxu1 %v1682_v3  ;;  %2244 = vmatmul.mubr.bf16.gmra.mrb[172].mxu0 %v1684_v37  ;;  %v1606_v30 = vmax.f32 %v1279_v59, 0.0  ;;  %v1608_v36 = vmax.f32 %v1472_v55, 0.0 }
 0x3ed   :  { %v1285_v58 = vadd.f32 %v1284_v52, %v5123_v15  ;;  %v1478_v19 = vadd.f32 %v1477_v9, %v5127_v63  ;;  %v1607_v33 = vmax.f32 %v1281_v24, 0.0  ;;  %v1609_v16 = vmax.f32 %v1474_v25, 0.0 }
 0x3ee   :  { %v1610_v32 = vmax.f32 %v1283_v6, 0.0  ;;  %v1612_v42 = vmax.f32 %v1476_v38, 0.0 }
 0x3ef   :  { %v1611_v21 = vmax.f32 %v1285_v58, 0.0  ;;  %v1613_v48 = vmax.f32 %v1478_v19, 0.0 }
 0x3f0   :  { %v1686_v50 = vpack.c.bf16 %v1610_v32, %v1606_v30  ;;  %v1688_v43 = vpack.c.bf16 %v1612_v42, %v1608_v36 }
 0x3f1   :  { %v1687_v29 = vpack.c.bf16 %v1611_v21, %v1607_v33  ;;  %v1689_v39 = vpack.c.bf16 %v1613_v48, %v1609_v16  ;;  %v1288_v10 = vpop.f32.mrb[52].mxu1  ;;  %v1481_v34 = vpop.f32.mrb[116].mxu0 }
 0x3f2   :  { %v1289_v3 = vadd.f32 %v1288_v10, %v5115_v54  ;;  %v1482_v37 = vadd.f32 %v1481_v34, %v5119_v4  ;;  %v1290_v52 = vpop.f32.mrb[53].mxu1  ;;  %v1483_v9 = vpop.f32.mrb[117].mxu0 }
 0x3f3   :  { %v1291_v59 = vadd.f32 %v1290_v52, %v5123_v15  ;;  %v1484_v55 = vadd.f32 %v1483_v9, %v5127_v63  ;;  %v1292_v24 = vpop.f32.mrb[54].mxu1  ;;  %v1485_v25 = vpop.f32.mrb[118].mxu0  ;;  %2090 = vmatprep.mubr.bf16.mxu1 %v1687_v29  ;;  %2251 = vmatprep.mubr.bf16.mxu0 %v1689_v39 }
 0x3f4   :  { %v1293_v6 = vadd.f32 %v1292_v24, %v5115_v54  ;;  %v1486_v38 = vadd.f32 %v1485_v25, %v5119_v4  ;;  %v1294_v58 = vpop.f32.mrb[55].mxu1  ;;  %v1487_v19 = vpop.f32.mrb[119].mxu0  ;;  %2091 = vmatmul.mubr.bf16.gmra.mrb[112].mxu1 %v1686_v50  ;;  %2252 = vmatmul.mubr.bf16.gmra.mrb[176].mxu0 %v1688_v43  ;;  %v1614_v32 = vmax.f32 %v1289_v3, 0.0  ;;  %v1616_v42 = vmax.f32 %v1482_v37, 0.0 }
 0x3f5   :  { %v1295_v30 = vadd.f32 %v1294_v58, %v5123_v15  ;;  %v1488_v36 = vadd.f32 %v1487_v19, %v5127_v63  ;;  %v1615_v21 = vmax.f32 %v1291_v59, 0.0  ;;  %v1617_v48 = vmax.f32 %v1484_v55, 0.0 }
 0x3f6   :  { %v1618_v33 = vmax.f32 %v1293_v6, 0.0  ;;  %v1620_v16 = vmax.f32 %v1486_v38, 0.0 }
 0x3f7   :  { %v1619_v29 = vmax.f32 %v1295_v30, 0.0  ;;  %v1621_v39 = vmax.f32 %v1488_v36, 0.0 }
 0x3f8   :  { %v1690_v10 = vpack.c.bf16 %v1618_v33, %v1614_v32  ;;  %v1692_v34 = vpack.c.bf16 %v1620_v16, %v1616_v42 }
 0x3f9   :  { %v1691_v52 = vpack.c.bf16 %v1619_v29, %v1615_v21  ;;  %v1693_v9 = vpack.c.bf16 %v1621_v39, %v1617_v48  ;;  %v1298_v24 = vpop.f32.mrb[56].mxu1  ;;  %v1491_v25 = vpop.f32.mrb[120].mxu0 }
 0x3fa   :  { %v1299_v50 = vadd.f32 %v1298_v24, %v5115_v54  ;;  %v1492_v43 = vadd.f32 %v1491_v25, %v5119_v4  ;;  %v1300_v58 = vpop.f32.mrb[57].mxu1  ;;  %v1493_v19 = vpop.f32.mrb[121].mxu0 }
 0x3fb   :  { %v1301_v3 = vadd.f32 %v1300_v58, %v5123_v15  ;;  %v1494_v37 = vadd.f32 %v1493_v19, %v5127_v63  ;;  %v1302_v59 = vpop.f32.mrb[58].mxu1  ;;  %v1495_v55 = vpop.f32.mrb[122].mxu0  ;;  %2098 = vmatprep.mubr.bf16.mxu1 %v1691_v52  ;;  %2259 = vmatprep.mubr.bf16.mxu0 %v1693_v9 }
 0x3fc   :  { %v1303_v6 = vadd.f32 %v1302_v59, %v5115_v54  ;;  %v1496_v38 = vadd.f32 %v1495_v55, %v5119_v4  ;;  %v1304_v30 = vpop.f32.mrb[59].mxu1  ;;  %v1497_v36 = vpop.f32.mrb[123].mxu0  ;;  %2099 = vmatmul.mubr.bf16.gmra.mrb[116].mxu1 %v1690_v10  ;;  %2260 = vmatmul.mubr.bf16.gmra.mrb[180].mxu0 %v1692_v34  ;;  %v1622_v33 = vmax.f32 %v1299_v50, 0.0  ;;  %v1624_v16 = vmax.f32 %v1492_v43, 0.0 }
 0x3fd   :  { %v1305_v32 = vadd.f32 %v1304_v30, %v5123_v15  ;;  %v1498_v42 = vadd.f32 %v1497_v36, %v5127_v63  ;;  %v1623_v29 = vmax.f32 %v1301_v3, 0.0  ;;  %v1625_v39 = vmax.f32 %v1494_v37, 0.0 }
 0x3fe   :  { %v1626_v21 = vmax.f32 %v1303_v6, 0.0  ;;  %v1628_v48 = vmax.f32 %v1496_v38, 0.0 }
 0x3ff   :  { %v1627_v52 = vmax.f32 %v1305_v32, 0.0  ;;  %v1629_v9 = vmax.f32 %v1498_v42, 0.0 }
 0x400   :  { %v1694_v24 = vpack.c.bf16 %v1626_v21, %v1622_v33  ;;  %v1696_v25 = vpack.c.bf16 %v1628_v48, %v1624_v16 }
 0x401   :  { %v1695_v58 = vpack.c.bf16 %v1627_v52, %v1623_v29  ;;  %v1697_v19 = vpack.c.bf16 %v1629_v9, %v1625_v39  ;;  %v1308_v59 = vpop.f32.mrb[60].mxu1  ;;  %v1501_v55 = vpop.f32.mrb[124].mxu0 }
 0x402   :  { %v1309_v10 = vadd.f32 %v1308_v59, %v5115_v54  ;;  %v1502_v34 = vadd.f32 %v1501_v55, %v5119_v4  ;;  %v1310_v30 = vpop.f32.mrb[61].mxu1  ;;  %v1503_v36 = vpop.f32.mrb[125].mxu0 }
 0x403   :  { %v1311_v50 = vadd.f32 %v1310_v30, %v5123_v15  ;;  %v1504_v43 = vadd.f32 %v1503_v36, %v5127_v63  ;;  %v1312_v3 = vpop.f32.mrb[62].mxu1  ;;  %v1505_v37 = vpop.f32.mrb[126].mxu0  ;;  %2106 = vmatprep.mubr.bf16.mxu1 %v1695_v58  ;;  %2267 = vmatprep.mubr.bf16.mxu0 %v1697_v19 }
 0x404   :  { %v1313_v6 = vadd.f32 %v1312_v3, %v5115_v54  ;;  %v1506_v38 = vadd.f32 %v1505_v37, %v5119_v4  ;;  %v1314_v32 = vpop.f32.mrb[63].mxu1  ;;  %v1507_v42 = vpop.f32.mrb[127].mxu0  ;;  %2107 = vmatmul.mubr.bf16.gmra.mrb[120].mxu1 %v1694_v24  ;;  %2268 = vmatmul.mubr.bf16.gmra.mrb[184].mxu0 %v1696_v25  ;;  %v1630_v21 = vmax.f32 %v1309_v10, 0.0  ;;  %v1632_v48 = vmax.f32 %v1502_v34, 0.0 }
 0x405   :  { %v1315_v33 = vadd.f32 %v1314_v32, %v5123_v15  ;;  %v1508_v16 = vadd.f32 %v1507_v42, %v5127_v63  ;;  %v1631_v52 = vmax.f32 %v1311_v50, 0.0  ;;  %v1633_v9 = vmax.f32 %v1504_v43, 0.0  ;;  %v4284_v63 = vld [vmem:[%s5854_s8] sm:$0xff] }
 0x406   :  { %v1634_v29 = vmax.f32 %v1313_v6, 0.0  ;;  %v1636_v39 = vmax.f32 %v1506_v38, 0.0  ;;  %v5262_v25 = vrot.slane %v4284_v63, %v958_v17 }
 0x407   :  { %v1635_v58 = vmax.f32 %v1315_v33, 0.0  ;;  %v1637_v19 = vmax.f32 %v1508_v16, 0.0 }
 0x408   :  { %v1698_v59 = vpack.c.bf16 %v1634_v29, %v1630_v21  ;;  %v1700_v54 = vpack.c.bf16 %v1636_v39, %v1632_v48 }
 0x409   :  { %v1699_v55 = vpack.c.bf16 %v1635_v58, %v1631_v52  ;;  %v1701_v4 = vpack.c.bf16 %v1637_v19, %v1633_v9 }
 0x40b   :  { %2114 = vmatprep.mubr.bf16.mxu1 %v1699_v55  ;;  %2275 = vmatprep.mubr.bf16.mxu0 %v1701_v4 }
 0x40c   :  { %2115 = vmatmul.mubr.bf16.gmra.mrb[124].mxu1 %v1698_v59  ;;  %2276 = vmatmul.mubr.bf16.gmra.mrb[188].mxu0 %v1700_v54 }
 0x41f   :  { %v3696_v24 = vpop.f32.mrb[64].mxu1  ;;  %v3808_v15 = vpop.f32.mrb[128].mxu0 }
 0x420   :  { %v3697_v10 = vpop.f32.mrb[65].mxu1  ;;  %v3809_v34 = vpop.f32.mrb[129].mxu0 }
 0x421   :  { %v3698_v30 = vadd.f32 %v3697_v10, %v3696_v24  ;;  %v3810_v36 = vadd.f32 %v3809_v34, %v3808_v15  ;;  %v3699_v50 = vpop.f32.mrb[66].mxu1  ;;  %v3811_v43 = vpop.f32.mrb[130].mxu0 }
 0x422   :  { %v3700_v3 = vpop.f32.mrb[67].mxu1  ;;  %v3812_v37 = vpop.f32.mrb[131].mxu0 }
 0x423   :  { %v1997_v6 = vadd.f32 %v3698_v30, %v5262_v25  ;;  %v3701_v38 = vadd.f32 %v3700_v3, %v3699_v50  ;;  %v3813_v32 = vadd.f32 %v3812_v37, %v3811_v43 }
 0x425   :  { %v2158_v42 = vadd.f32 %v3810_v36, %v1997_v6  ;;  %v2000_v33 = vadd.f32 %v3701_v38, %v5262_v25 }
 0x427   :  { %v2161_v16 = vadd.f32 %v3813_v32, %v2000_v33  ;;  %v3702_v21 = vpop.f32.mrb[68].mxu1  ;;  %v3814_v48 = vpop.f32.mrb[132].mxu0  ;;  %v5267_v17 = vadd.f32 %v2158_v42, %v4855_v56 }
 0x428   :  { %v3703_v29 = vpop.f32.mrb[69].mxu1  ;;  %v3815_v39 = vpop.f32.mrb[133].mxu0 }
 0x429   :  { %v3704_v52 = vadd.f32 %v3703_v29, %v3702_v21  ;;  %v3816_v9 = vadd.f32 %v3815_v39, %v3814_v48  ;;  %v3705_v58 = vpop.f32.mrb[70].mxu1  ;;  %v3817_v19 = vpop.f32.mrb[134].mxu0  ;;  %2316 = vadd.xlane.f32.xlu0 %v5267_v17  ;;  %v5271_v59 = vadd.f32 %v2161_v16, %v4858_v51 }
 0x42a   :  { %v3706_v54 = vpop.f32.mrb[71].mxu1  ;;  %v3818_v55 = vpop.f32.mrb[135].mxu0 }
 0x42b   :  { %v2005_v4 = vadd.f32 %v3704_v52, %v5262_v25  ;;  %v3707_v24 = vadd.f32 %v3706_v54, %v3705_v58  ;;  %v3819_v15 = vadd.f32 %v3818_v55, %v3817_v19  ;;  %2318 = vadd.xlane.f32.xlu1 %v5271_v59 }
 0x42d   :  { %v2166_v56 = vadd.f32 %v3816_v9, %v2005_v4  ;;  %v2008_v63 = vadd.f32 %v3707_v24, %v5262_v25 }
 0x42f   :  { %v2169_v10 = vadd.f32 %v3819_v15, %v2008_v63  ;;  %v3708_v34 = vpop.f32.mrb[72].mxu1  ;;  %v3820_v30 = vpop.f32.mrb[136].mxu0  ;;  %v5277_v36 = vadd.f32 %v2166_v56, %v4879_v22 }
 0x430   :  { %v3709_v50 = vpop.f32.mrb[73].mxu1  ;;  %v3821_v51 = vpop.f32.mrb[137].mxu0 }
 0x431   :  { %v3710_v43 = vadd.f32 %v3709_v50, %v3708_v34  ;;  %v3822_v3 = vadd.f32 %v3821_v51, %v3820_v30  ;;  %v3711_v37 = vpop.f32.mrb[74].mxu1  ;;  %v3823_v6 = vpop.f32.mrb[138].mxu0  ;;  %2320 = vadd.xlane.f32.xlu0 %v5277_v36  ;;  %v5281_v38 = vadd.f32 %v2169_v10, %v4882_v26 }
 0x432   :  { %v3712_v32 = vpop.f32.mrb[75].mxu1  ;;  %v3824_v42 = vpop.f32.mrb[139].mxu0 }
 0x433   :  { %v2013_v33 = vadd.f32 %v3710_v43, %v5262_v25  ;;  %v3713_v16 = vadd.f32 %v3712_v32, %v3711_v37  ;;  %v3825_v21 = vadd.f32 %v3824_v42, %v3823_v6  ;;  %2322 = vadd.xlane.f32.xlu1 %v5281_v38 }
 0x435   :  { %v2174_v22 = vadd.f32 %v3822_v3, %v2013_v33  ;;  %v2016_v48 = vadd.f32 %v3713_v16, %v5262_v25 }
 0x437   :  { %v2177_v29 = vadd.f32 %v3825_v21, %v2016_v48  ;;  %v3714_v39 = vpop.f32.mrb[76].mxu1  ;;  %v3826_v52 = vpop.f32.mrb[140].mxu0  ;;  %v5287_v9 = vadd.f32 %v2174_v22, %v4903_v14 }
 0x438   :  { %v3715_v58 = vpop.f32.mrb[77].mxu1  ;;  %v3827_v26 = vpop.f32.mrb[141].mxu0 }
 0x439   :  { %v3716_v19 = vadd.f32 %v3715_v58, %v3714_v39  ;;  %v3828_v54 = vadd.f32 %v3827_v26, %v3826_v52  ;;  %v3717_v55 = vpop.f32.mrb[78].mxu1  ;;  %v3829_v4 = vpop.f32.mrb[142].mxu0  ;;  %2324 = vadd.xlane.f32.xlu0 %v5287_v9  ;;  %v5291_v24 = vadd.f32 %v2177_v29, %v4906_v40 }
 0x43a   :  { %v3718_v15 = vpop.f32.mrb[79].mxu1  ;;  %v3830_v56 = vpop.f32.mrb[143].mxu0 }
 0x43b   :  { %v2021_v63 = vadd.f32 %v3716_v19, %v5262_v25  ;;  %v3719_v10 = vadd.f32 %v3718_v15, %v3717_v55  ;;  %v3831_v34 = vadd.f32 %v3830_v56, %v3829_v4  ;;  %2326 = vadd.xlane.f32.xlu1 %v5291_v24 }
 0x43d   :  { %v2182_v14 = vadd.f32 %v3828_v54, %v2021_v63  ;;  %v2024_v30 = vadd.f32 %v3719_v10, %v5262_v25 }
 0x43f   :  { %v2185_v50 = vadd.f32 %v3831_v34, %v2024_v30  ;;  %v3720_v51 = vpop.f32.mrb[80].mxu1  ;;  %v3832_v43 = vpop.f32.mrb[144].mxu0  ;;  %v5297_v3 = vadd.f32 %v2182_v14, %v4927_v20 }
 0x440   :  { %v3721_v37 = vpop.f32.mrb[81].mxu1  ;;  %v3833_v40 = vpop.f32.mrb[145].mxu0 }
 0x441   :  { %v3722_v6 = vadd.f32 %v3721_v37, %v3720_v51  ;;  %v3834_v32 = vadd.f32 %v3833_v40, %v3832_v43  ;;  %v3723_v42 = vpop.f32.mrb[82].mxu1  ;;  %v3835_v33 = vpop.f32.mrb[146].mxu0  ;;  %2328 = vadd.xlane.f32.xlu0 %v5297_v3  ;;  %v5301_v16 = vadd.f32 %v2185_v50, %v4930_v8 }
 0x442   :  { %v3724_v21 = vpop.f32.mrb[83].mxu1  ;;  %v3836_v22 = vpop.f32.mrb[147].mxu0 }
 0x443   :  { %v2029_v48 = vadd.f32 %v3722_v6, %v5262_v25  ;;  %v3725_v29 = vadd.f32 %v3724_v21, %v3723_v42  ;;  %v3837_v39 = vadd.f32 %v3836_v22, %v3835_v33  ;;  %2330 = vadd.xlane.f32.xlu1 %v5301_v16 }
 0x445   :  { %v2190_v20 = vadd.f32 %v3834_v32, %v2029_v48  ;;  %v2032_v52 = vadd.f32 %v3725_v29, %v5262_v25 }
 0x447   :  { %v2193_v58 = vadd.f32 %v3837_v39, %v2032_v52  ;;  %v3726_v26 = vpop.f32.mrb[84].mxu1  ;;  %v3838_v19 = vpop.f32.mrb[148].mxu0  ;;  %v5307_v54 = vadd.f32 %v2190_v20, %v4948_v57 }
 0x448   :  { %v3727_v55 = vpop.f32.mrb[85].mxu1  ;;  %v3839_v8 = vpop.f32.mrb[149].mxu0 }
 0x449   :  { %v3728_v4 = vadd.f32 %v3727_v55, %v3726_v26  ;;  %v3840_v15 = vadd.f32 %v3839_v8, %v3838_v19  ;;  %v3729_v56 = vpop.f32.mrb[86].mxu1  ;;  %v3841_v63 = vpop.f32.mrb[150].mxu0  ;;  %2332 = vadd.xlane.f32.xlu0 %v5307_v54  ;;  %v5311_v10 = vadd.f32 %v2193_v58, %v4951_v13 }
 0x44a   :  { %v3730_v34 = vpop.f32.mrb[87].mxu1  ;;  %v3842_v14 = vpop.f32.mrb[151].mxu0 }
 0x44b   :  { %v2037_v30 = vadd.f32 %v3728_v4, %v5262_v25  ;;  %v3731_v50 = vadd.f32 %v3730_v34, %v3729_v56  ;;  %v3843_v51 = vadd.f32 %v3842_v14, %v3841_v63  ;;  %2334 = vadd.xlane.f32.xlu1 %v5311_v10 }
 0x44d   :  { %v2198_v57 = vadd.f32 %v3840_v15, %v2037_v30  ;;  %v2040_v43 = vadd.f32 %v3731_v50, %v5262_v25 }
 0x44f   :  { %v2201_v37 = vadd.f32 %v3843_v51, %v2040_v43  ;;  %v3732_v40 = vpop.f32.mrb[88].mxu1  ;;  %v3844_v6 = vpop.f32.mrb[152].mxu0  ;;  %v5317_v32 = vadd.f32 %v2198_v57, %v4962_v35 }
 0x450   :  { %v3733_v42 = vpop.f32.mrb[89].mxu1  ;;  %v3845_v13 = vpop.f32.mrb[153].mxu0 }
 0x451   :  { %v3734_v33 = vadd.f32 %v3733_v42, %v3732_v40  ;;  %v3846_v21 = vadd.f32 %v3845_v13, %v3844_v6  ;;  %v3735_v22 = vpop.f32.mrb[90].mxu1  ;;  %v3847_v48 = vpop.f32.mrb[154].mxu0  ;;  %2336 = vadd.xlane.f32.xlu0 %v5317_v32  ;;  %v5321_v29 = vadd.f32 %v2201_v37, %v4965_v5 }
 0x452   :  { %v3736_v39 = vpop.f32.mrb[91].mxu1  ;;  %v3848_v20 = vpop.f32.mrb[155].mxu0 }
 0x453   :  { %v2045_v52 = vadd.f32 %v3734_v33, %v5262_v25  ;;  %v3737_v58 = vadd.f32 %v3736_v39, %v3735_v22  ;;  %v3849_v26 = vadd.f32 %v3848_v20, %v3847_v48  ;;  %2338 = vadd.xlane.f32.xlu1 %v5321_v29 }
 0x455   :  { %v2206_v35 = vadd.f32 %v3846_v21, %v2045_v52  ;;  %v2048_v19 = vadd.f32 %v3737_v58, %v5262_v25 }
 0x457   :  { %v2209_v55 = vadd.f32 %v3849_v26, %v2048_v19  ;;  %v3738_v8 = vpop.f32.mrb[92].mxu1  ;;  %v3850_v4 = vpop.f32.mrb[156].mxu0  ;;  %v5327_v15 = vadd.f32 %v2206_v35, %v4976_v0 }
 0x458   :  { %v3739_v56 = vpop.f32.mrb[93].mxu1  ;;  %v3851_v5 = vpop.f32.mrb[157].mxu0 }
 0x459   :  { %v3740_v63 = vadd.f32 %v3739_v56, %v3738_v8  ;;  %v3852_v34 = vadd.f32 %v3851_v5, %v3850_v4  ;;  %v3741_v14 = vpop.f32.mrb[94].mxu1  ;;  %v3853_v30 = vpop.f32.mrb[158].mxu0  ;;  %2340 = vadd.xlane.f32.xlu0 %v5327_v15  ;;  %v5331_v50 = vadd.f32 %v2209_v55, %v4979_v23 }
 0x45a   :  { %v3742_v51 = vpop.f32.mrb[95].mxu1  ;;  %v3854_v57 = vpop.f32.mrb[159].mxu0 }
 0x45b   :  { %v2053_v43 = vadd.f32 %v3740_v63, %v5262_v25  ;;  %v3743_v37 = vadd.f32 %v3742_v51, %v3741_v14  ;;  %v3855_v40 = vadd.f32 %v3854_v57, %v3853_v30  ;;  %2342 = vadd.xlane.f32.xlu1 %v5331_v50 }
 0x45d   :  { %v2214_v0 = vadd.f32 %v3852_v34, %v2053_v43  ;;  %v2056_v6 = vadd.f32 %v3743_v37, %v5262_v25 }
 0x45f   :  { %v2217_v42 = vadd.f32 %v3855_v40, %v2056_v6  ;;  %v3744_v13 = vpop.f32.mrb[96].mxu1  ;;  %v3856_v33 = vpop.f32.mrb[160].mxu0  ;;  %v5337_v21 = vadd.f32 %v2214_v0, %v4993_v60 }
 0x460   :  { %v3745_v22 = vpop.f32.mrb[97].mxu1  ;;  %v3857_v23 = vpop.f32.mrb[161].mxu0 }
 0x461   :  { %v3746_v48 = vadd.f32 %v3745_v22, %v3744_v13  ;;  %v3858_v39 = vadd.f32 %v3857_v23, %v3856_v33  ;;  %v3747_v20 = vpop.f32.mrb[98].mxu1  ;;  %v3859_v52 = vpop.f32.mrb[162].mxu0  ;;  %2344 = vadd.xlane.f32.xlu0 %v5337_v21  ;;  %v5341_v58 = vadd.f32 %v2217_v42, %v4990_v44 }
 0x462   :  { %v3748_v26 = vpop.f32.mrb[99].mxu1  ;;  %v3860_v35 = vpop.f32.mrb[163].mxu0 }
 0x463   :  { %v2061_v19 = vadd.f32 %v3746_v48, %v5262_v25  ;;  %v3749_v55 = vadd.f32 %v3748_v26, %v3747_v20  ;;  %v3861_v8 = vadd.f32 %v3860_v35, %v3859_v52  ;;  %2346 = vadd.xlane.f32.xlu1 %v5341_v58 }
 0x465   :  { %v2222_v60 = vadd.f32 %v3858_v39, %v2061_v19  ;;  %v2064_v4 = vadd.f32 %v3749_v55, %v5262_v25 }
 0x467   :  { %v2225_v56 = vadd.f32 %v3861_v8, %v2064_v4  ;;  %v3750_v5 = vpop.f32.mrb[100].mxu1  ;;  %v3862_v63 = vpop.f32.mrb[164].mxu0  ;;  %v5347_v34 = vadd.f32 %v2222_v60, %v5007_v2 }
 0x468   :  { %v3751_v14 = vpop.f32.mrb[101].mxu1  ;;  %v3863_v44 = vpop.f32.mrb[165].mxu0 }
 0x469   :  { %v3752_v30 = vadd.f32 %v3751_v14, %v3750_v5  ;;  %v3864_v51 = vadd.f32 %v3863_v44, %v3862_v63  ;;  %v3753_v57 = vpop.f32.mrb[102].mxu1  ;;  %v3865_v43 = vpop.f32.mrb[166].mxu0  ;;  %2348 = vadd.xlane.f32.xlu0 %v5347_v34  ;;  %v5351_v37 = vadd.f32 %v2225_v56, %v5004_v46 }
 0x46a   :  { %v3754_v40 = vpop.f32.mrb[103].mxu1  ;;  %v3866_v0 = vpop.f32.mrb[167].mxu0 }
 0x46b   :  { %v2069_v6 = vadd.f32 %v3752_v30, %v5262_v25  ;;  %v3755_v42 = vadd.f32 %v3754_v40, %v3753_v57  ;;  %v3867_v13 = vadd.f32 %v3866_v0, %v3865_v43  ;;  %2350 = vadd.xlane.f32.xlu1 %v5351_v37 }
 0x46d   :  { %v2230_v2 = vadd.f32 %v3864_v51, %v2069_v6  ;;  %v2072_v33 = vadd.f32 %v3755_v42, %v5262_v25 }
 0x46f   :  { %v2233_v22 = vadd.f32 %v3867_v13, %v2072_v33  ;;  %v5357_v23 = vadd.f32 %v2230_v2, %v5021_v27 }
 0x471   :  { %2352 = vadd.xlane.f32.xlu0 %v5357_v23  ;;  %v5361_v46 = vadd.f32 %v2233_v22, %v5018_v53 }
 0x473   :  { %2354 = vadd.xlane.f32.xlu1 %v5361_v46 }
 0x4b7   :  { %v3756_v48 = vpop.f32.mrb[104].mxu1  ;;  %v3868_v39 = vpop.f32.mrb[168].mxu0 }
 0x4b8   :  { %v3757_v20 = vpop.f32.mrb[105].mxu1  ;;  %v3869_v52 = vpop.f32.mrb[169].mxu0 }
 0x4b9   :  { %v3758_v26 = vadd.f32 %v3757_v20, %v3756_v48  ;;  %v3870_v35 = vadd.f32 %v3869_v52, %v3868_v39  ;;  %v3759_v19 = vpop.f32.mrb[106].mxu1  ;;  %v3871_v55 = vpop.f32.mrb[170].mxu0 }
 0x4ba   :  { %v3760_v8 = vpop.f32.mrb[107].mxu1  ;;  %v3872_v4 = vpop.f32.mrb[171].mxu0 }
 0x4bb   :  { %v2077_v60 = vadd.f32 %v3758_v26, %v5262_v25  ;;  %v3761_v27 = vadd.f32 %v3760_v8, %v3759_v19  ;;  %v3873_v56 = vadd.f32 %v3872_v4, %v3871_v55 }
 0x4bd   :  { %v2238_v5 = vadd.f32 %v3870_v35, %v2077_v60  ;;  %v2080_v53 = vadd.f32 %v3761_v27, %v5262_v25 }
 0x4bf   :  { %v2241_v63 = vadd.f32 %v3873_v56, %v2080_v53  ;;  %v3762_v14 = vpop.f32.mrb[108].mxu1  ;;  %v3874_v44 = vpop.f32.mrb[172].mxu0  ;;  %v5367_v30 = vadd.f32 %v2238_v5, %v5032_v45 }
 0x4c0   :  { %v3763_v51 = vpop.f32.mrb[109].mxu1  ;;  %v3875_v57 = vpop.f32.mrb[173].mxu0 }
 0x4c1   :  { %v3764_v43 = vadd.f32 %v3763_v51, %v3762_v14  ;;  %v3876_v40 = vadd.f32 %v3875_v57, %v3874_v44  ;;  %v3765_v0 = vpop.f32.mrb[110].mxu1  ;;  %2356 = vadd.xlane.f32.xlu0 %v5367_v30  ;;  %v5371_v6 = vadd.f32 %v2241_v63, %v5035_v7  ;;  %v3877_v42 = vpop.f32.mrb[174].mxu0 }
 0x4c2   :  { %v3766_v13 = vpop.f32.mrb[111].mxu1  ;;  %v3878_v22 = vpop.f32.mrb[175].mxu0 }
 0x4c3   :  { %v2085_v2 = vadd.f32 %v3764_v43, %v5262_v25  ;;  %v3767_v33 = vadd.f32 %v3766_v13, %v3765_v0  ;;  %2358 = vadd.xlane.f32.xlu1 %v5371_v6  ;;  %v3879_v45 = vadd.f32 %v3878_v22, %v3877_v42 }
 0x4c5   :  { %v2246_v48 = vadd.f32 %v3876_v40, %v2085_v2  ;;  %v2088_v39 = vadd.f32 %v3767_v33, %v5262_v25 }
 0x4c7   :  { %v2249_v20 = vadd.f32 %v3879_v45, %v2088_v39  ;;  %v3768_v52 = vpop.f32.mrb[112].mxu1  ;;  %v3880_v26 = vpop.f32.mrb[176].mxu0  ;;  %v5377_v35 = vadd.f32 %v2246_v48, %v5046_v41 }
 0x4c8   :  { %v3769_v7 = vpop.f32.mrb[113].mxu1  ;;  %v3881_v19 = vpop.f32.mrb[177].mxu0 }
 0x4c9   :  { %v3770_v55 = vadd.f32 %v3769_v7, %v3768_v52  ;;  %v3882_v8 = vadd.f32 %v3881_v19, %v3880_v26  ;;  %v3771_v60 = vpop.f32.mrb[114].mxu1  ;;  %2360 = vadd.xlane.f32.xlu0 %v5377_v35  ;;  %v5381_v27 = vadd.f32 %v2249_v20, %v5049_v11  ;;  %v3883_v4 = vpop.f32.mrb[178].mxu0 }
 0x4ca   :  { %v3772_v56 = vpop.f32.mrb[115].mxu1  ;;  %v3884_v63 = vpop.f32.mrb[179].mxu0 }
 0x4cb   :  { %v2093_v5 = vadd.f32 %v3770_v55, %v5262_v25  ;;  %v3773_v53 = vadd.f32 %v3772_v56, %v3771_v60  ;;  %2362 = vadd.xlane.f32.xlu1 %v5381_v27  ;;  %v3885_v41 = vadd.f32 %v3884_v63, %v3883_v4 }
 0x4cd   :  { %v2254_v14 = vadd.f32 %v3882_v8, %v2093_v5  ;;  %v2096_v44 = vadd.f32 %v3773_v53, %v5262_v25 }
 0x4cf   :  { %v2257_v51 = vadd.f32 %v3885_v41, %v2096_v44  ;;  %v3774_v57 = vpop.f32.mrb[116].mxu1  ;;  %v3886_v43 = vpop.f32.mrb[180].mxu0  ;;  %v5387_v40 = vadd.f32 %v2254_v14, %v5060_v31 }
 0x4d0   :  { %v3775_v11 = vpop.f32.mrb[117].mxu1  ;;  %v3887_v0 = vpop.f32.mrb[181].mxu0 }
 0x4d1   :  { %v3776_v42 = vadd.f32 %v3775_v11, %v3774_v57  ;;  %v3888_v13 = vadd.f32 %v3887_v0, %v3886_v43  ;;  %v3777_v2 = vpop.f32.mrb[118].mxu1  ;;  %2364 = vadd.xlane.f32.xlu0 %v5387_v40  ;;  %v5391_v33 = vadd.f32 %v2257_v51, %v5063_v12  ;;  %v3889_v22 = vpop.f32.mrb[182].mxu0 }
 0x4d2   :  { %v3778_v45 = vpop.f32.mrb[119].mxu1  ;;  %v3890_v20 = vpop.f32.mrb[183].mxu0 }
 0x4d3   :  { %v2101_v48 = vadd.f32 %v3776_v42, %v5262_v25  ;;  %v3779_v39 = vadd.f32 %v3778_v45, %v3777_v2  ;;  %2366 = vadd.xlane.f32.xlu1 %v5391_v33  ;;  %v3891_v31 = vadd.f32 %v3890_v20, %v3889_v22 }
 0x4d5   :  { %v2262_v52 = vadd.f32 %v3888_v13, %v2101_v48  ;;  %v2104_v26 = vadd.f32 %v3779_v39, %v5262_v25 }
 0x4d7   :  { %v2265_v7 = vadd.f32 %v3891_v31, %v2104_v26  ;;  %v3780_v19 = vpop.f32.mrb[120].mxu1  ;;  %v3892_v55 = vpop.f32.mrb[184].mxu0  ;;  %v5397_v8 = vadd.f32 %v2262_v52, %v5074_v62 }
 0x4d8   :  { %v3781_v12 = vpop.f32.mrb[121].mxu1  ;;  %v3893_v60 = vpop.f32.mrb[185].mxu0 }
 0x4d9   :  { %v3782_v4 = vadd.f32 %v3781_v12, %v3780_v19  ;;  %v3894_v56 = vadd.f32 %v3893_v60, %v3892_v55  ;;  %v3783_v5 = vpop.f32.mrb[122].mxu1  ;;  %2368 = vadd.xlane.f32.xlu0 %v5397_v8  ;;  %v5401_v53 = vadd.f32 %v2265_v7, %v5077_v28  ;;  %v3895_v63 = vpop.f32.mrb[186].mxu0 }
 0x4da   :  { %v3784_v41 = vpop.f32.mrb[123].mxu1  ;;  %v3896_v51 = vpop.f32.mrb[187].mxu0 }
 0x4db   :  { %v2109_v14 = vadd.f32 %v3782_v4, %v5262_v25  ;;  %v3785_v44 = vadd.f32 %v3784_v41, %v3783_v5  ;;  %2370 = vadd.xlane.f32.xlu1 %v5401_v53  ;;  %v3897_v62 = vadd.f32 %v3896_v51, %v3895_v63  ;;  %v2317_v28 = vpop.xlane.xlu0 %2316  ;;  %v2319_v26 = vpop.xlane.xlu1 %2318 }
 0x4dc   :  { %v2381_v4 = vmul.f32 0.0078125, %v2319_v26 }
 0x4dd   :  { %v2270_v57 = vadd.f32 %v3894_v56, %v2109_v14  ;;  %v2112_v43 = vadd.f32 %v3785_v44, %v5262_v25 }
 0x4df   :  { %v2273_v11 = vadd.f32 %v3897_v62, %v2112_v43  ;;  %v3786_v0 = vpop.f32.mrb[124].mxu1  ;;  %v3898_v42 = vpop.f32.mrb[188].mxu0  ;;  %v5407_v13 = vadd.f32 %v2270_v57, %v5088_v47  ;;  %v2380_v47 = vmul.f32 0.0078125, %v2317_v28  ;;  %v5423_v62 = vsub.f32 %v5271_v59, %v2381_v4 }
 0x4e0   :  { %v3899_v2 = vpop.f32.mrb[189].mxu0  ;;  %v3787_v45 = vpop.f32.mrb[125].mxu1 }
 0x4e1   :  { %v3900_v22 = vadd.f32 %v3899_v2, %v3898_v42  ;;  %v3901_v48 = vpop.f32.mrb[190].mxu0  ;;  %2372 = vadd.xlane.f32.xlu0 %v5407_v13  ;;  %v5411_v39 = vadd.f32 %v2273_v11, %v5091_v1  ;;  %v3788_v20 = vadd.f32 %v3787_v45, %v3786_v0  ;;  %v3789_v31 = vpop.f32.mrb[126].mxu1  ;;  %v5417_v1 = vsub.f32 %v5267_v17, %v2380_v47  ;;  %v4144_v17 = vld [vmem:[%s5851_s5] sm:$0xff]  }
 0x4e2   :  { %v3902_v52 = vpop.f32.mrb[191].mxu0  ;;  %v3790_v7 = vpop.f32.mrb[127].mxu1  ;;  %3948 = vmatprep.subr.bf16.mxu1 %v4144_v17  ;;  %v2445_v28 = vmul.f32 %v5423_v62, %v5423_v62 }
 0x4e3   :  { %v3903_v19 = vadd.f32 %v3902_v52, %v3901_v48  ;;  %2374 = vadd.xlane.f32.xlu1 %v5411_v39  ;;  %v2117_v55 = vadd.f32 %v3788_v20, %v5262_v25  ;;  %v3791_v12 = vadd.f32 %v3790_v7, %v3789_v31  ;;  %v2321_v60 = vpop.xlane.xlu0 %2320  ;;  %v2323_v63 = vpop.xlane.xlu1 %2322  ;;  %v2444_v59 = vmul.f32 %v5417_v1, %v5417_v1 }
 0x4e4   :  { %v2382_v41 = vmul.f32 0.0078125, %v2321_v60  ;;  %v2383_v57 = vmul.f32 0.0078125, %v2323_v63  ;;  %3949 = vmatpush3.bf16.msra.mxu1 %v4144_v17 }
 0x4e5   :  { %v2120_v56 = vadd.f32 %v3791_v12, %v5262_v25  ;;  %v2278_v5 = vadd.f32 %v3900_v22, %v2117_v55 }
 0x4e6   :  { %v5433_v11 = vsub.f32 %v5277_v36, %v2382_v41  ;;  %v5439_v42 = vsub.f32 %v5281_v38, %v2383_v57 }
 0x4e7   :  { %v2281_v14 = vadd.f32 %v3903_v19, %v2120_v56  ;;  %v5420_v44 = vadd.f32 %v2278_v5, %v5102_v18  ;;  %v2325_v51 = vpop.xlane.xlu0 %2324  ;;  %v2327_v25 = vpop.xlane.xlu1 %2326 }
 0x4e8   :  { %v2384_v18 = vmul.f32 0.0078125, %v2325_v51  ;;  %v2446_v45 = vmul.f32 %v5433_v11, %v5433_v11  ;;  %v2447_v31 = vmul.f32 %v5439_v42, %v5439_v42 }
 0x4e9   :  { %2376 = vadd.xlane.f32.xlu0 %v5420_v44  ;;  %v5427_v43 = vadd.f32 %v2281_v14, %v5105_v61  ;;  %v2385_v61 = vmul.f32 0.0078125, %v2327_v25 }
 0x4ea   :  { %v5444_v36 = vsub.f32 %v5287_v9, %v2384_v18 }
 0x4eb   :  { %2378 = vadd.xlane.f32.xlu1 %v5427_v43  ;;  %v2329_v0 = vpop.xlane.xlu0 %2328  ;;  %v2331_v2 = vpop.xlane.xlu1 %2330  ;;  %v5449_v20 = vsub.f32 %v5291_v24, %v2385_v61 }
 0x4ec   :  { %v2386_v22 = vmul.f32 0.0078125, %v2329_v0  ;;  %v2387_v38 = vmul.f32 0.0078125, %v2331_v2  ;;  %v2448_v7 = vmul.f32 %v5444_v36, %v5444_v36 }
 0x4ed   :  { %2476 = vadd.xlane.f32.xlu0 %v2444_v59  ;;  %v2449_v55 = vmul.f32 %v5449_v20, %v5449_v20 }
 0x4ee   :  { %v5454_v26 = vsub.f32 %v5297_v3, %v2386_v22  ;;  %v5459_v47 = vsub.f32 %v5301_v16, %v2387_v38 }
 0x4ef   :  { %2478 = vadd.xlane.f32.xlu1 %v2445_v28  ;;  %v2333_v48 = vpop.xlane.xlu0 %2332  ;;  %v2335_v52 = vpop.xlane.xlu1 %2334 }
 0x4f0   :  { %v2388_v9 = vmul.f32 0.0078125, %v2333_v48  ;;  %v2389_v24 = vmul.f32 0.0078125, %v2335_v52  ;;  %v2450_v4 = vmul.f32 %v5454_v26, %v5454_v26  ;;  %v2451_v63 = vmul.f32 %v5459_v47, %v5459_v47 }
 0x4f1   :  { %2480 = vadd.xlane.f32.xlu0 %v2446_v45 }
 0x4f2   :  { %v5464_v60 = vsub.f32 %v5307_v54, %v2388_v9  ;;  %v5469_v5 = vsub.f32 %v5311_v10, %v2389_v24  ;;  %v4145_v54 = vld [vmem:[%s5851_s5 + $0x8] sm:$0xff]  }
 0x4f3   :  { %2482 = vadd.xlane.f32.xlu1 %v2447_v31  ;;  %v2337_v19 = vpop.xlane.xlu0 %2336  ;;  %v2339_v12 = vpop.xlane.xlu1 %2338  ;;  %3950 = vmatprep.subr.bf16.mxu1 %v4145_v54 }
 0x4f4   :  { %v2390_v3 = vmul.f32 0.0078125, %v2337_v19  ;;  %v2391_v16 = vmul.f32 0.0078125, %v2339_v12  ;;  %v2452_v57 = vmul.f32 %v5464_v60, %v5464_v60  ;;  %v2453_v18 = vmul.f32 %v5469_v5, %v5469_v5  ;;  %3951 = vmatpush3.bf16.msra.mxu1 %v4145_v54  ;;  %v4150_v54 = vld [vmem:[%s5851_s5 + $0x30] sm:$0xff]  }
 0x4f5   :  { %2484 = vadd.xlane.f32.xlu0 %v2448_v7 }
 0x4f6   :  { %v5477_v14 = vsub.f32 %v5317_v32, %v2390_v3  ;;  %v5482_v25 = vsub.f32 %v5321_v29, %v2391_v16  ;;  %v4146_v32 = vld [vmem:[%s5851_s5 + $0x10] sm:$0xff]  }
 0x4f7   :  { %2486 = vadd.xlane.f32.xlu1 %v2449_v55  ;;  %v2341_v56 = vpop.xlane.xlu0 %2340  ;;  %v2343_v41 = vpop.xlane.xlu1 %2342  ;;  %3952 = vmatprep.subr.bf16.mxu1 %v4146_v32 }
 0x4f8   :  { %v2392_v51 = vmul.f32 0.0078125, %v2341_v56  ;;  %v2393_v17 = vmul.f32 0.0078125, %v2343_v41  ;;  %v2454_v29 = vmul.f32 %v5477_v14, %v5477_v14  ;;  %v2455_v45 = vmul.f32 %v5482_v25, %v5482_v25  ;;  %3953 = vmatpush3.bf16.msra.mxu1 %v4146_v32 }
 0x4f9   :  { %2488 = vadd.xlane.f32.xlu0 %v2450_v4 }
 0x4fa   :  { %v5490_v0 = vsub.f32 %v5327_v15, %v2392_v51  ;;  %v5495_v2 = vsub.f32 %v5331_v50, %v2393_v17  ;;  %v4147_v15 = vld [vmem:[%s5851_s5 + $0x18] sm:$0xff]  }
 0x4fb   :  { %2490 = vadd.xlane.f32.xlu1 %v2451_v63  ;;  %v2345_v10 = vpop.xlane.xlu0 %2344  ;;  %v2347_v59 = vpop.xlane.xlu1 %2346  ;;  %3954 = vmatprep.subr.bf16.mxu1 %v4147_v15 }
 0x4fc   :  { %v2394_v61 = vmul.f32 0.0078125, %v2345_v10  ;;  %v2395_v22 = vmul.f32 0.0078125, %v2347_v59  ;;  %v2456_v50 = vmul.f32 %v5490_v0, %v5490_v0  ;;  %v2457_v19 = vmul.f32 %v5495_v2, %v5495_v2  ;;  %3955 = vmatpush3.bf16.msra.mxu1 %v4147_v15 }
 0x4fd   :  { %2492 = vadd.xlane.f32.xlu0 %v2452_v57 }
 0x4fe   :  { %v5503_v38 = vsub.f32 %v5337_v21, %v2394_v61  ;;  %v5508_v9 = vsub.f32 %v5341_v58, %v2395_v22  ;;  %v4148_v21 = vld [vmem:[%s5851_s5 + $0x20] sm:$0xff]  }
 0x4ff   :  { %2494 = vadd.xlane.f32.xlu1 %v2453_v18  ;;  %v2349_v28 = vpop.xlane.xlu0 %2348  ;;  %v2351_v48 = vpop.xlane.xlu1 %2350  ;;  %3956 = vmatprep.subr.bf16.mxu1 %v4148_v21 }
 0x500   :  { %v2396_v31 = vmul.f32 0.0078125, %v2349_v28  ;;  %v2397_v7 = vmul.f32 0.0078125, %v2351_v48  ;;  %v2458_v58 = vmul.f32 %v5503_v38, %v5503_v38  ;;  %v2459_v56 = vmul.f32 %v5508_v9, %v5508_v9  ;;  %3957 = vmatpush3.bf16.msra.mxu1 %v4148_v21 }
 0x501   :  { %2496 = vadd.xlane.f32.xlu0 %v2454_v29 }
 0x502   :  { %v5516_v55 = vsub.f32 %v5347_v34, %v2396_v31  ;;  %v5521_v3 = vsub.f32 %v5351_v37, %v2397_v7  ;;  %v4149_v34 = vld [vmem:[%s5851_s5 + $0x28] sm:$0xff]  }
 0x503   :  { %2498 = vadd.xlane.f32.xlu1 %v2455_v45  ;;  %v2353_v52 = vpop.xlane.xlu0 %2352  ;;  %v2355_v24 = vpop.xlane.xlu1 %2354  ;;  %3958 = vmatprep.subr.bf16.mxu1 %v4149_v34 }
 0x504   :  { %v2398_v12 = vmul.f32 0.0078125, %v2353_v52  ;;  %v2399_v4 = vmul.f32 0.0078125, %v2355_v24  ;;  %v2460_v63 = vmul.f32 %v5516_v55, %v5516_v55  ;;  %v2461_v41 = vmul.f32 %v5521_v3, %v5521_v3  ;;  %3959 = vmatpush3.bf16.msra.mxu1 %v4149_v34 }
 0x505   :  { %2500 = vadd.xlane.f32.xlu0 %v2456_v50  ;;  %3960 = vmatprep.subr.bf16.mxu1 %v4150_v54 }
 0x506   :  { %v5529_v16 = vsub.f32 %v5357_v23, %v2398_v12  ;;  %v5534_v37 = vsub.f32 %v5361_v46, %v2399_v4  ;;  %v4151_v46 = vld [vmem:[%s5851_s5 + $0x38] sm:$0xff]  }
 0x507   :  { %2502 = vadd.xlane.f32.xlu1 %v2457_v19 }
 0x508   :  { %v2462_v23 = vmul.f32 %v5529_v16, %v5529_v16  ;;  %v2463_v51 = vmul.f32 %v5534_v37, %v5534_v37  ;;  %3961 = vmatpush3.bf16.msra.mxu1 %v4150_v54 }
 0x509   :  { %2504 = vadd.xlane.f32.xlu0 %v2458_v58  ;;  %3962 = vmatprep.subr.bf16.mxu1 %v4151_v46 }
 0x50b   :  { %2506 = vadd.xlane.f32.xlu1 %v2459_v56 }
 0x50c   :  { %3963 = vmatpush3.bf16.msra.mxu1 %v4151_v46 }
 0x50d   :  { %2508 = vadd.xlane.f32.xlu0 %v2460_v63 }
 0x50f   :  { %2510 = vadd.xlane.f32.xlu1 %v2461_v41 }
 0x511   :  { %2512 = vadd.xlane.f32.xlu0 %v2462_v23 }
 0x513   :  { %2514 = vadd.xlane.f32.xlu1 %v2463_v51 }
 0x54e   :  { %v2357_v57 = vpop.xlane.xlu0 %2356 }
 0x54f   :  { %v2400_v10 = vmul.f32 0.0078125, %v2357_v57 }
 0x550   :  { %v2359_v17 = vpop.xlane.xlu1 %2358 }
 0x551   :  { %v5549_v18 = vsub.f32 %v5367_v30, %v2400_v10  ;;  %v2401_v59 = vmul.f32 0.0078125, %v2359_v17 }
 0x553   :  { %v5552_v32 = vsub.f32 %v5371_v6, %v2401_v59  ;;  %v2464_v61 = vmul.f32 %v5549_v18, %v5549_v18 }
 0x555   :  { %2516 = vadd.xlane.f32.xlu0 %v2464_v61  ;;  %v2465_v29 = vmul.f32 %v5552_v32, %v5552_v32 }
 0x556   :  { %v2361_v28 = vpop.xlane.xlu0 %2360 }
 0x557   :  { %v2402_v22 = vmul.f32 0.0078125, %v2361_v28  ;;  %2518 = vadd.xlane.f32.xlu1 %v2465_v29 }
 0x558   :  { %v2363_v45 = vpop.xlane.xlu1 %2362 }
 0x559   :  { %v5559_v48 = vsub.f32 %v5377_v35, %v2402_v22  ;;  %v2403_v30 = vmul.f32 0.0078125, %v2363_v45 }
 0x55b   :  { %v5562_v15 = vsub.f32 %v5381_v27, %v2403_v30  ;;  %v2466_v6 = vmul.f32 %v5559_v48, %v5559_v48 }
 0x55d   :  { %2520 = vadd.xlane.f32.xlu0 %v2466_v6  ;;  %v2467_v31 = vmul.f32 %v5562_v15, %v5562_v15 }
 0x55e   :  { %v2365_v50 = vpop.xlane.xlu0 %2364 }
 0x55f   :  { %v2404_v52 = vmul.f32 0.0078125, %v2365_v50  ;;  %2522 = vadd.xlane.f32.xlu1 %v2467_v31 }
 0x560   :  { %v2367_v7 = vpop.xlane.xlu1 %2366 }
 0x561   :  { %v5569_v19 = vsub.f32 %v5387_v40, %v2404_v52  ;;  %v2405_v35 = vmul.f32 0.0078125, %v2367_v7 }
 0x563   :  { %v5572_v24 = vsub.f32 %v5391_v33, %v2405_v35  ;;  %v2468_v27 = vmul.f32 %v5569_v19, %v5569_v19 }
 0x565   :  { %2524 = vadd.xlane.f32.xlu0 %v2468_v27  ;;  %v2469_v21 = vmul.f32 %v5572_v24, %v5572_v24 }
 0x566   :  { %v2369_v12 = vpop.xlane.xlu0 %2368 }
 0x567   :  { %v2406_v58 = vmul.f32 0.0078125, %v2369_v12  ;;  %2526 = vadd.xlane.f32.xlu1 %v2469_v21 }
 0x568   :  { %v2371_v4 = vpop.xlane.xlu1 %2370 }
 0x569   :  { %v5579_v56 = vsub.f32 %v5397_v8, %v2406_v58  ;;  %v2407_v40 = vmul.f32 0.0078125, %v2371_v4  ;;  %v2670_v58 = vsub.s32 4, %v4537_v49 }
 0x56b   :  { %v5582_v34 = vsub.f32 %v5401_v53, %v2407_v40  ;;  %v2470_v33 = vmul.f32 %v5579_v56, %v5579_v56 }
 0x56d   :  { %2528 = vadd.xlane.f32.xlu0 %v2470_v33  ;;  %v2471_v63 = vmul.f32 %v5582_v34, %v5582_v34 }
 0x56e   :  { %v2373_v41 = vpop.xlane.xlu0 %2372 }
 0x56f   :  { %v2408_v54 = vmul.f32 0.0078125, %v2373_v41  ;;  %2530 = vadd.xlane.f32.xlu1 %v2471_v63 }
 0x570   :  { %v2375_v23 = vpop.xlane.xlu1 %2374 }
 0x571   :  { %v5589_v51 = vsub.f32 %v5407_v13, %v2408_v54  ;;  %v2409_v8 = vmul.f32 0.0078125, %v2375_v23  ;;  %v5612_v23 = vld [vmem:[%s5854_s8] sm:$0xff] }
 0x573   :  { %v5592_v46 = vsub.f32 %v5411_v39, %v2409_v8  ;;  %v2472_v53 = vmul.f32 %v5589_v51, %v5589_v51  ;;  %v5615_v8 = vrot.slane %v5612_v23, %v2670_v58 }
 0x575   :  { %2532 = vadd.xlane.f32.xlu0 %v2472_v53  ;;  %v2473_v57 = vmul.f32 %v5592_v46, %v5592_v46 }
 0x576   :  { %v2377_v10 = vpop.xlane.xlu0 %2376 }
 0x577   :  { %2534 = vadd.xlane.f32.xlu1 %v2473_v57  ;;  %v2410_v17 = vmul.f32 0.0078125, %v2377_v10  ;;  %v2706_v57 = vsub.s32 5, %v4537_v49 }
 0x578   :  { %v2379_v59 = vpop.xlane.xlu1 %2378 }
 0x579   :  { %v5599_v61 = vsub.f32 %v5420_v44, %v2410_v17  ;;  %v2411_v13 = vmul.f32 0.0078125, %v2379_v59 }
 0x57a   :  { %v2477_v29 = vpop.xlane.xlu0 %2476 }
 0x57b   :  { %v5602_v28 = vsub.f32 %v5427_v43, %v2411_v13  ;;  %v2540_v39 = vmul.f32 0.0078125, %v2477_v29  ;;  %v2474_v22 = vmul.f32 %v5599_v61, %v5599_v61 }
 0x57c   :  { %v2479_v45 = vpop.xlane.xlu1 %2478 }
 0x57d   :  { %v2572_v30 = vadd.f32 1e-05, %v2540_v39  ;;  %v2541_v6 = vmul.f32 0.0078125, %v2479_v45  ;;  %2536 = vadd.xlane.f32.xlu0 %v2474_v22  ;;  %v2475_v31 = vmul.f32 %v5602_v28, %v5602_v28 }
 0x57e   :  { %v2481_v50 = vpop.xlane.xlu0 %2480 }
 0x57f   :  { %4220 = vrsqrt.f32 %v2572_v30  ;;  %v2573_v44 = vadd.f32 1e-05, %v2541_v6  ;;  %v2542_v52 = vmul.f32 0.0078125, %v2481_v50  ;;  %2538 = vadd.xlane.f32.xlu1 %v2475_v31  ;;  %v5622_v50 = vrot.slane %v5612_v23, %v2706_v57 }
 0x580   :  { %v2483_v7 = vpop.xlane.xlu1 %2482 }
 0x581   :  { %4222 = vrsqrt.f32 %v2573_v44  ;;  %v2574_v43 = vadd.f32 1e-05, %v2542_v52  ;;  %v2543_v35 = vmul.f32 0.0078125, %v2483_v7 }
 0x582   :  { %v2485_v27 = vpop.xlane.xlu0 %2484 }
 0x583   :  { %4224 = vrsqrt.f32 %v2574_v43  ;;  %v2575_v21 = vadd.f32 1e-05, %v2543_v35  ;;  %v2544_v12 = vmul.f32 0.0078125, %v2485_v27 }
 0x584   :  { %v2487_v4 = vpop.xlane.xlu1 %2486 }
 0x585   :  { %4226 = vrsqrt.f32 %v2575_v21  ;;  %v2576_v40 = vadd.f32 1e-05, %v2544_v12  ;;  %v2545_v33 = vmul.f32 0.0078125, %v2487_v4 }
 0x586   :  { %v2489_v63 = vpop.xlane.xlu0 %2488 }
 0x587   :  { %4228 = vrsqrt.f32 %v2576_v40  ;;  %v2577_v41 = vadd.f32 1e-05, %v2545_v33  ;;  %v2546_v54 = vmul.f32 0.0078125, %v2489_v63 }
 0x588   :  { %v2491_v53 = vpop.xlane.xlu1 %2490 }
 0x589   :  { %v4221_v10 = vpop.eup %4220  ;;  %4230 = vrsqrt.f32 %v2577_v41  ;;  %v2578_v17 = vadd.f32 1e-05, %v2546_v54  ;;  %v2547_v59 = vmul.f32 0.0078125, %v2491_v53 }
 0x58a   :  { %v2493_v13 = vpop.xlane.xlu0 %2492  ;;  %v2636_v29 = vmul.f32 %v4221_v10, %v5417_v1 }
 0x58b   :  { %v4223_v39 = vpop.eup %4222  ;;  %4232 = vrsqrt.f32 %v2578_v17  ;;  %v2579_v22 = vadd.f32 1e-05, %v2547_v59  ;;  %v2548_v45 = vmul.f32 0.0078125, %v2493_v13 }
 0x58c   :  { %v2495_v30 = vpop.xlane.xlu1 %2494  ;;  %v2637_v6 = vmul.f32 %v4223_v39, %v5423_v62  ;;  %v2672_v31 = vmul.f32 %v5615_v8, %v2636_v29 }
 0x58d   :  { %v4225_v44 = vpop.eup %4224  ;;  %4234 = vrsqrt.f32 %v2579_v22  ;;  %v2580_v52 = vadd.f32 1e-05, %v2548_v45  ;;  %v2549_v7 = vmul.f32 0.0078125, %v2495_v30 }
 0x58e   :  { %v2638_v43 = vmul.f32 %v4225_v44, %v5433_v11  ;;  %v2497_v35 = vpop.xlane.xlu0 %2496  ;;  %v2673_v1 = vmul.f32 %v5615_v8, %v2637_v6  ;;  %v2708_v40 = vadd.f32 %v5622_v50, %v2672_v31 }
 0x58f   :  { %v4227_v27 = vpop.eup %4226  ;;  %4236 = vrsqrt.f32 %v2580_v52  ;;  %v2581_v21 = vadd.f32 1e-05, %v2549_v7  ;;  %v2550_v12 = vmul.f32 0.0078125, %v2497_v35 }
 0x590   :  { %v2674_v62 = vmul.f32 %v5615_v8, %v2638_v43  ;;  %v2639_v58 = vmul.f32 %v4227_v27, %v5439_v42  ;;  %v2499_v4 = vpop.xlane.xlu1 %2498  ;;  %v2709_v33 = vadd.f32 %v5622_v50, %v2673_v1 }
 0x591   :  { %v4229_v63 = vpop.eup %4228  ;;  %4238 = vrsqrt.f32 %v2581_v21  ;;  %v2582_v41 = vadd.f32 1e-05, %v2550_v12  ;;  %v2551_v11 = vmul.f32 0.0078125, %v2499_v4 }
 0x592   :  { %v2675_v54 = vmul.f32 %v5615_v8, %v2639_v58  ;;  %v2501_v53 = vpop.xlane.xlu0 %2500  ;;  %v2740_v57 = vpack.c.bf16 %v2709_v33, %v2708_v40  ;;  %v2640_v10 = vmul.f32 %v4229_v63, %v5444_v36  ;;  %v2710_v29 = vadd.f32 %v5622_v50, %v2674_v62 }
 0x593   :  { %v4231_v17 = vpop.eup %4230  ;;  %4240 = vrsqrt.f32 %v2582_v41  ;;  %v2583_v59 = vadd.f32 1e-05, %v2551_v11  ;;  %v2552_v13 = vmul.f32 0.0078125, %v2501_v53 }
 0x594   :  { %v2503_v42 = vpop.xlane.xlu1 %2502  ;;  %3964 = vmatprep.mubr.bf16.mxu1 %v2740_v57  ;;  %v2711_v39 = vadd.f32 %v5622_v50, %v2675_v54  ;;  %v2641_v22 = vmul.f32 %v4231_v17, %v5449_v20  ;;  %v2676_v45 = vmul.f32 %v5615_v8, %v2640_v10 }
 0x595   :  { %v4233_v30 = vpop.eup %4232  ;;  %4242 = vrsqrt.f32 %v2583_v59  ;;  %v2584_v6 = vadd.f32 1e-05, %v2552_v13  ;;  %v2553_v31 = vmul.f32 0.0078125, %v2503_v42 }
 0x596   :  { %v2505_v44 = vpop.xlane.xlu0 %2504  ;;  %v2741_v36 = vpack.c.bf16 %v2711_v39, %v2710_v29  ;;  %v2677_v52 = vmul.f32 %v5615_v8, %v2641_v22  ;;  %v2642_v7 = vmul.f32 %v4233_v30, %v5454_v26  ;;  %v2712_v20 = vadd.f32 %v5622_v50, %v2676_v45 }
 0x597   :  { %v4235_v43 = vpop.eup %4234  ;;  %4244 = vrsqrt.f32 %v2584_v6  ;;  %v2585_v35 = vadd.f32 1e-05, %v2553_v31  ;;  %v2554_v1 = vmul.f32 0.0078125, %v2505_v44 }
 0x598   :  { %v2507_v27 = vpop.xlane.xlu1 %2506  ;;  %3965 = vmatmul.mubr.bf16.vlgmr.msra.gmra.mrb[128].mxu1 %v2741_v36  ;;  %v2713_v21 = vadd.f32 %v5622_v50, %v2677_v52  ;;  %v2643_v12 = vmul.f32 %v4235_v43, %v5459_v47  ;;  %v2678_v62 = vmul.f32 %v5615_v8, %v2642_v7 }
 0x599   :  { %v4237_v58 = vpop.eup %4236  ;;  %4246 = vrsqrt.f32 %v2585_v35  ;;  %v2586_v4 = vadd.f32 1e-05, %v2554_v1  ;;  %v2555_v40 = vmul.f32 0.0078125, %v2507_v27 }
 0x59a   :  { %v2509_v33 = vpop.xlane.xlu0 %2508  ;;  %v2742_v26 = vpack.c.bf16 %v2713_v21, %v2712_v20  ;;  %v2679_v63 = vmul.f32 %v5615_v8, %v2643_v12  ;;  %v2644_v41 = vmul.f32 %v4237_v58, %v5464_v60  ;;  %v2714_v47 = vadd.f32 %v5622_v50, %v2678_v62 }
 0x59b   :  { %v4239_v11 = vpop.eup %4238  ;;  %4248 = vrsqrt.f32 %v2586_v4  ;;  %v2587_v54 = vadd.f32 1e-05, %v2555_v40  ;;  %v2556_v53 = vmul.f32 0.0078125, %v2509_v33  ;;  %v4152_v40 = vld [vmem:[%s5852_s6] sm:$0xff]  }
 0x59c   :  { %v2511_v57 = vpop.xlane.xlu1 %2510  ;;  %3968 = vmatprep.mubr.bf16.mxu1 %v2742_v26  ;;  %v2715_v10 = vadd.f32 %v5622_v50, %v2679_v63  ;;  %v2645_v17 = vmul.f32 %v4239_v11, %v5469_v5  ;;  %v2680_v59 = vmul.f32 %v5615_v8, %v2644_v41  ;;  %3996 = vmatprep.subr.bf16.mxu1 %v4152_v40 }
 0x59d   :  { %v4241_v13 = vpop.eup %4240  ;;  %4250 = vrsqrt.f32 %v2587_v54  ;;  %v2588_v42 = vadd.f32 1e-05, %v2556_v53  ;;  %v2557_v29 = vmul.f32 0.0078125, %v2511_v57  ;;  %3997 = vmatpush3.bf16.msra.mxu1 %v4152_v40  ;;  %v4155_v40 = vld [vmem:[%s5852_s6 + $0x18] sm:$0xff]  }
 0x59e   :  { %v2513_v39 = vpop.xlane.xlu0 %2512  ;;  %v2743_v60 = vpack.c.bf16 %v2715_v10, %v2714_v47  ;;  %v2681_v22 = vmul.f32 %v5615_v8, %v2645_v17  ;;  %v2646_v45 = vmul.f32 %v4241_v13, %v5477_v14  ;;  %v2716_v5 = vadd.f32 %v5622_v50, %v2680_v59 }
 0x59f   :  { %v4243_v30 = vpop.eup %4242  ;;  %4252 = vrsqrt.f32 %v2588_v42  ;;  %v2589_v6 = vadd.f32 1e-05, %v2557_v29  ;;  %v2558_v31 = vmul.f32 0.0078125, %v2513_v39 }
 0x5a0   :  { %v2515_v44 = vpop.xlane.xlu1 %2514  ;;  %3969 = vmatmul.mubr.bf16.gmra.mrb[132].mxu1 %v2743_v60  ;;  %v2717_v36 = vadd.f32 %v5622_v50, %v2681_v22  ;;  %v2647_v52 = vmul.f32 %v4243_v30, %v5482_v25  ;;  %v2682_v7 = vmul.f32 %v5615_v8, %v2646_v45 }
 0x5a1   :  { %v4245_v43 = vpop.eup %4244  ;;  %4254 = vrsqrt.f32 %v2589_v6  ;;  %v2590_v35 = vadd.f32 1e-05, %v2558_v31  ;;  %v2559_v1 = vmul.f32 0.0078125, %v2515_v44 }
 0x5a2   :  { %v2744_v27 = vpack.c.bf16 %v2717_v36, %v2716_v5  ;;  %v2683_v14 = vmul.f32 %v5615_v8, %v2647_v52  ;;  %v2648_v20 = vmul.f32 %v4245_v43, %v5490_v0  ;;  %v2718_v62 = vadd.f32 %v5622_v50, %v2682_v7  ;;  %v4153_v0 = vld [vmem:[%s5852_s6 + $0x8] sm:$0xff]  }
 0x5a3   :  { %v4247_v21 = vpop.eup %4246  ;;  %4256 = vrsqrt.f32 %v2590_v35  ;;  %v2591_v12 = vadd.f32 1e-05, %v2559_v1  ;;  %3998 = vmatprep.subr.bf16.mxu1 %v4153_v0 }
 0x5a4   :  { %3972 = vmatprep.mubr.bf16.mxu1 %v2744_v27  ;;  %v2719_v58 = vadd.f32 %v5622_v50, %v2683_v14  ;;  %v2649_v25 = vmul.f32 %v4247_v21, %v5495_v2  ;;  %v2684_v4 = vmul.f32 %v5615_v8, %v2648_v20  ;;  %3999 = vmatpush3.bf16.msra.mxu1 %v4153_v0 }
 0x5a5   :  { %v4249_v33 = vpop.eup %4248  ;;  %4258 = vrsqrt.f32 %v2591_v12 }
 0x5a6   :  { %v2745_v26 = vpack.c.bf16 %v2719_v58, %v2718_v62  ;;  %v2685_v63 = vmul.f32 %v5615_v8, %v2649_v25  ;;  %v2650_v41 = vmul.f32 %v4249_v33, %v5503_v38  ;;  %v2720_v2 = vadd.f32 %v5622_v50, %v2684_v4  ;;  %v4154_v58 = vld [vmem:[%s5852_s6 + $0x10] sm:$0xff]  }
 0x5a7   :  { %v4251_v11 = vpop.eup %4250  ;;  %4000 = vmatprep.subr.bf16.mxu1 %v4154_v58 }
 0x5a8   :  { %3973 = vmatmul.mubr.bf16.gmra.mrb[136].mxu1 %v2745_v26  ;;  %v2721_v54 = vadd.f32 %v5622_v50, %v2685_v63  ;;  %v2651_v53 = vmul.f32 %v4251_v11, %v5508_v9  ;;  %v2686_v57 = vmul.f32 %v5615_v8, %v2650_v41 }
 0x5a9   :  { %v4253_v47 = vpop.eup %4252  ;;  %4001 = vmatpush3.bf16.msra.mxu1 %v4154_v58 }
 0x5aa   :  { %v2746_v10 = vpack.c.bf16 %v2721_v54, %v2720_v2  ;;  %v2687_v17 = vmul.f32 %v5615_v8, %v2651_v53  ;;  %v2652_v59 = vmul.f32 %v4253_v47, %v5516_v55  ;;  %v2722_v13 = vadd.f32 %v5622_v50, %v2686_v57  ;;  %4002 = vmatprep.subr.bf16.mxu1 %v4155_v40 }
 0x5ab   :  { %v4255_v38 = vpop.eup %4254 }
 0x5ac   :  { %3976 = vmatprep.mubr.bf16.mxu1 %v2746_v10  ;;  %v2723_v42 = vadd.f32 %v5622_v50, %v2687_v17  ;;  %v2653_v29 = vmul.f32 %v4255_v38, %v5521_v3  ;;  %v2688_v9 = vmul.f32 %v5615_v8, %v2652_v59 }
 0x5ad   :  { %v4257_v39 = vpop.eup %4256  ;;  %4003 = vmatpush3.bf16.msra.mxu1 %v4155_v40 }
 0x5ae   :  { %v2747_v60 = vpack.c.bf16 %v2723_v42, %v2722_v13  ;;  %v2689_v22 = vmul.f32 %v5615_v8, %v2653_v29  ;;  %v2654_v45 = vmul.f32 %v4257_v39, %v5529_v16  ;;  %v2724_v55 = vadd.f32 %v5622_v50, %v2688_v9 }
 0x5af   :  { %v4259_v30 = vpop.eup %4258 }
 0x5b0   :  { %3977 = vmatmul.mubr.bf16.gmra.mrb[140].mxu1 %v2747_v60  ;;  %v2725_v6 = vadd.f32 %v5622_v50, %v2689_v22  ;;  %v2655_v31 = vmul.f32 %v4259_v30, %v5534_v37  ;;  %v2690_v44 = vmul.f32 %v5615_v8, %v2654_v45 }
 0x5b2   :  { %v2748_v5 = vpack.c.bf16 %v2725_v6, %v2724_v55  ;;  %v2691_v3 = vmul.f32 %v5615_v8, %v2655_v31  ;;  %v2726_v36 = vadd.f32 %v5622_v50, %v2690_v44 }
 0x5b4   :  { %3980 = vmatprep.mubr.bf16.mxu1 %v2748_v5  ;;  %v2727_v52 = vadd.f32 %v5622_v50, %v2691_v3 }
 0x5b6   :  { %v2749_v7 = vpack.c.bf16 %v2727_v52, %v2726_v36 }
 0x5b8   :  { %3981 = vmatmul.mubr.bf16.gmra.mrb[144].mxu1 %v2749_v7 }
 0x5e2   :  { %v2517_v16 = vpop.xlane.xlu0 %2516 }
 0x5e3   :  { %v2560_v43 = vmul.f32 0.0078125, %v2517_v16 }
 0x5e4   :  { %v2519_v35 = vpop.xlane.xlu1 %2518 }
 0x5e5   :  { %v2592_v1 = vadd.f32 1e-05, %v2560_v43  ;;  %v2561_v27 = vmul.f32 0.0078125, %v2519_v35 }
 0x5e7   :  { %4260 = vrsqrt.f32 %v2592_v1  ;;  %v2593_v14 = vadd.f32 1e-05, %v2561_v27 }
 0x5e9   :  { %4262 = vrsqrt.f32 %v2593_v14 }
 0x5ea   :  { %v2521_v37 = vpop.xlane.xlu0 %2520 }
 0x5eb   :  { %v2562_v20 = vmul.f32 0.0078125, %v2521_v37 }
 0x5ec   :  { %v2523_v21 = vpop.xlane.xlu1 %2522 }
 0x5ed   :  { %v2594_v12 = vadd.f32 1e-05, %v2562_v20  ;;  %v2563_v62 = vmul.f32 0.0078125, %v2523_v21 }
 0x5ef   :  { %4264 = vrsqrt.f32 %v2594_v12  ;;  %v2595_v25 = vadd.f32 1e-05, %v2563_v62 }
 0x5f1   :  { %v4261_v4 = vpop.eup %4260  ;;  %4266 = vrsqrt.f32 %v2595_v25 }
 0x5f2   :  { %v2525_v0 = vpop.xlane.xlu0 %2524  ;;  %v2656_v33 = vmul.f32 %v4261_v4, %v5549_v18 }
 0x5f3   :  { %v4263_v26 = vpop.eup %4262  ;;  %v2564_v63 = vmul.f32 0.0078125, %v2525_v0 }
 0x5f4   :  { %v2527_v41 = vpop.xlane.xlu1 %2526  ;;  %v2657_v11 = vmul.f32 %v4263_v26, %v5552_v32  ;;  %v2692_v2 = vmul.f32 %v5615_v8, %v2656_v33 }
 0x5f5   :  { %v2596_v54 = vadd.f32 1e-05, %v2564_v63  ;;  %v2565_v53 = vmul.f32 0.0078125, %v2527_v41 }
 0x5f6   :  { %v2693_v57 = vmul.f32 %v5615_v8, %v2657_v11  ;;  %v2728_v10 = vadd.f32 %v5622_v50, %v2692_v2 }
 0x5f7   :  { %4268 = vrsqrt.f32 %v2596_v54  ;;  %v2597_v47 = vadd.f32 1e-05, %v2565_v53 }
 0x5f8   :  { %v2729_v17 = vadd.f32 %v5622_v50, %v2693_v57 }
 0x5f9   :  { %v4265_v18 = vpop.eup %4264  ;;  %4270 = vrsqrt.f32 %v2597_v47 }
 0x5fa   :  { %v2529_v59 = vpop.xlane.xlu0 %2528  ;;  %v2750_v38 = vpack.c.bf16 %v2729_v17, %v2728_v10  ;;  %v2658_v13 = vmul.f32 %v4265_v18, %v5559_v48 }
 0x5fb   :  { %v4267_v32 = vpop.eup %4266  ;;  %v2566_v42 = vmul.f32 0.0078125, %v2529_v59 }
 0x5fc   :  { %v2531_v29 = vpop.xlane.xlu1 %2530  ;;  %3984 = vmatprep.mubr.bf16.mxu1 %v2750_v38  ;;  %v2659_v9 = vmul.f32 %v4267_v32, %v5562_v15  ;;  %v2694_v39 = vmul.f32 %v5615_v8, %v2658_v13 }
 0x5fd   :  { %v2598_v60 = vadd.f32 1e-05, %v2566_v42  ;;  %v2567_v22 = vmul.f32 0.0078125, %v2531_v29  ;;  %v2774_v29 = vsub.s32 6, %v4537_v49 }
 0x5fe   :  { %v2695_v45 = vmul.f32 %v5615_v8, %v2659_v9  ;;  %v2730_v55 = vadd.f32 %v5622_v50, %v2694_v39 }
 0x5ff   :  { %4272 = vrsqrt.f32 %v2598_v60  ;;  %v2599_v30 = vadd.f32 1e-05, %v2567_v22  ;;  %v5731_v9 = vrot.slane %v5612_v23, %v2774_v29 }
 0x600   :  { %v2731_v6 = vadd.f32 %v5622_v50, %v2695_v45 }
 0x601   :  { %v4269_v31 = vpop.eup %4268  ;;  %4274 = vrsqrt.f32 %v2599_v30 }
 0x602   :  { %v2533_v48 = vpop.xlane.xlu0 %2532  ;;  %v2751_v44 = vpack.c.bf16 %v2731_v6, %v2730_v55  ;;  %v2660_v5 = vmul.f32 %v4269_v31, %v5569_v19 }
 0x603   :  { %v4271_v3 = vpop.eup %4270  ;;  %v2568_v15 = vmul.f32 0.0078125, %v2533_v48 }
 0x604   :  { %v2535_v36 = vpop.xlane.xlu1 %2534  ;;  %3985 = vmatmul.mubr.bf16.gmra.mrb[148].mxu1 %v2751_v44  ;;  %v2661_v52 = vmul.f32 %v4271_v3, %v5572_v24  ;;  %v2696_v7 = vmul.f32 %v5615_v8, %v2660_v5 }
 0x605   :  { %v2600_v16 = vadd.f32 1e-05, %v2568_v15  ;;  %v2569_v43 = vmul.f32 0.0078125, %v2535_v36 }
 0x606   :  { %v2697_v35 = vmul.f32 %v5615_v8, %v2661_v52  ;;  %v2732_v27 = vadd.f32 %v5622_v50, %v2696_v7 }
 0x607   :  { %4276 = vrsqrt.f32 %v2600_v16  ;;  %v2601_v1 = vadd.f32 1e-05, %v2569_v43 }
 0x608   :  { %v2733_v14 = vadd.f32 %v5622_v50, %v2697_v35 }
 0x609   :  { %v4273_v37 = vpop.eup %4272  ;;  %4278 = vrsqrt.f32 %v2601_v1 }
 0x60a   :  { %v2752_v19 = vpack.c.bf16 %v2733_v14, %v2732_v27  ;;  %v2662_v20 = vmul.f32 %v4273_v37, %v5579_v56  ;;  %v2537_v12 = vpop.xlane.xlu0 %2536 }
 0x60b   :  { %v4275_v21 = vpop.eup %4274  ;;  %v2570_v24 = vmul.f32 0.0078125, %v2537_v12 }
 0x60c   :  { %3988 = vmatprep.mubr.bf16.mxu1 %v2752_v19  ;;  %v2663_v62 = vmul.f32 %v4275_v21, %v5582_v34  ;;  %v2698_v58 = vmul.f32 %v5615_v8, %v2662_v20  ;;  %v2539_v25 = vpop.xlane.xlu1 %2538 }
 0x60d   :  { %v2602_v4 = vadd.f32 1e-05, %v2570_v24  ;;  %v2571_v40 = vmul.f32 0.0078125, %v2539_v25 }
 0x60e   :  { %v2699_v0 = vmul.f32 %v5615_v8, %v2663_v62  ;;  %v2734_v26 = vadd.f32 %v5622_v50, %v2698_v58 }
 0x60f   :  { %4280 = vrsqrt.f32 %v2602_v4  ;;  %v2603_v33 = vadd.f32 1e-05, %v2571_v40 }
 0x610   :  { %v2735_v63 = vadd.f32 %v5622_v50, %v2699_v0 }
 0x611   :  { %v4277_v56 = vpop.eup %4276  ;;  %4282 = vrsqrt.f32 %v2603_v33 }
 0x612   :  { %v2753_v41 = vpack.c.bf16 %v2735_v63, %v2734_v26  ;;  %v2664_v11 = vmul.f32 %v4277_v56, %v5589_v51  ;;  %v3360_v56 = vld [vmem:[%s5853_s7 + $0x8] sm:$0xff] }
 0x613   :  { %v4279_v2 = vpop.eup %4278  ;;  %3378 = vperm.xlu1 %4047, %v3360_v56  }
 0x614   :  { %3989 = vmatmul.mubr.bf16.gmra.mrb[152].mxu1 %v2753_v41  ;;  %v2665_v34 = vmul.f32 %v4279_v2, %v5592_v46  ;;  %v2700_v54 = vmul.f32 %v5615_v8, %v2664_v11 }
 0x616   :  { %v2701_v53 = vmul.f32 %v5615_v8, %v2665_v34  ;;  %v2736_v57 = vadd.f32 %v5622_v50, %v2700_v54  ;;  %v3361_v54 = vld [vmem:[%s5853_s7 + $0x10] sm:$0xff] }
 0x617   :  { %3383 = vperm.xlu1 %4047, %v3361_v54  }
 0x618   :  { %v2737_v47 = vadd.f32 %v5622_v50, %v2701_v53 }
 0x619   :  { %v4281_v10 = vpop.eup %4280 }
 0x61a   :  { %v2754_v17 = vpack.c.bf16 %v2737_v47, %v2736_v57  ;;  %v2666_v18 = vmul.f32 %v4281_v10, %v5599_v61 }
 0x61b   :  { %v4283_v59 = vpop.eup %4282 }
 0x61c   :  { %3992 = vmatprep.mubr.bf16.mxu1 %v2754_v17  ;;  %v2667_v51 = vmul.f32 %v4283_v59, %v5602_v28  ;;  %v2702_v38 = vmul.f32 %v5615_v8, %v2666_v18 }
 0x61e   :  { %v2703_v46 = vmul.f32 %v5615_v8, %v2667_v51  ;;  %v2738_v13 = vadd.f32 %v5622_v50, %v2702_v38  ;;  %v3362_v51 = vld [vmem:[%s5853_s7 + $0x18] sm:$0xff] }
 0x61f   :  { %3388 = vperm.xlu1 %4047, %v3362_v51  }
 0x620   :  { %v2739_v32 = vadd.f32 %v5622_v50, %v2703_v46 }
 0x622   :  { %v2755_v42 = vpack.c.bf16 %v2739_v32, %v2738_v13 }
 0x624   :  { %3993 = vmatmul.mubr.bf16.gmra.mrb[156].mxu1 %v2755_v42 }
 0x66b   :  { %v3966_v61 = vpop.f32.mrb[128].mxu1 }
 0x66c   :  { %v2867_v39 = vadd.f32 %v3966_v61, %v5731_v9  ;;  %v2858_v60 = vpop.f32.mrb[129].mxu1 }
 0x66d   :  { %v2859_v28 = vadd.f32 %v2858_v60, %v5731_v9  ;;  %v3967_v22 = vpop.f32.mrb[130].mxu1 }
 0x66e   :  { %v2870_v8 = vadd.f32 %v3967_v22, %v5731_v9  ;;  %v2861_v45 = vpop.f32.mrb[131].mxu1  ;;  %v2987_v50 = vmax.f32 %v2867_v39, 0.0 }
 0x66f   :  { %v2862_v30 = vadd.f32 %v2861_v45, %v5731_v9  ;;  %v2985_v6 = vmax.f32 %v2859_v28, 0.0 }
 0x670   :  { %v2988_v55 = vmax.f32 %v2870_v8, 0.0 }
 0x671   :  { %v2986_v31 = vmax.f32 %v2862_v30, 0.0 }
 0x672   :  { %v3018_v48 = vpack.c.bf16 %v2988_v55, %v2987_v50 }
 0x673   :  { %v3017_v44 = vpack.c.bf16 %v2986_v31, %v2985_v6  ;;  %v3970_v5 = vpop.f32.mrb[132].mxu1 }
 0x674   :  { %v2883_v3 = vadd.f32 %v3970_v5, %v5731_v9  ;;  %v2874_v15 = vpop.f32.mrb[133].mxu1 }
 0x675   :  { %v2875_v36 = vadd.f32 %v2874_v15, %v5731_v9  ;;  %v3971_v52 = vpop.f32.mrb[134].mxu1  ;;  %4004 = vmatprep.mubr.msk.bf16.mxu1 %vm3069_vm0, %v3017_v44 }
 0x676   :  { %v2886_v7 = vadd.f32 %v3971_v52, %v5731_v9  ;;  %v2877_v16 = vpop.f32.mrb[135].mxu1  ;;  %4005 = vmatmul.mubr.msk.bf16.vlgmr.msra.gmra.mrb[160].mxu1 %vm3069_vm0, %v3018_v48  ;;  %v2991_v35 = vmax.f32 %v2883_v3, 0.0  ;;  %v3359_v48 = vld [vmem:[%s5853_s7] sm:$0xff] }
 0x677   :  { %v2878_v43 = vadd.f32 %v2877_v16, %v5731_v9  ;;  %v2989_v27 = vmax.f32 %v2875_v36, 0.0  ;;  %3373 = vperm.xlu0 %4046, %v3359_v48  }
 0x678   :  { %v2992_v1 = vmax.f32 %v2886_v7, 0.0 }
 0x679   :  { %v2990_v14 = vmax.f32 %v2878_v43, 0.0 }
 0x67a   :  { %v3020_v37 = vpack.c.bf16 %v2992_v1, %v2991_v35 }
 0x67b   :  { %v3019_v19 = vpack.c.bf16 %v2990_v14, %v2989_v27  ;;  %v3974_v20 = vpop.f32.mrb[136].mxu1 }
 0x67c   :  { %v2899_v21 = vadd.f32 %v3974_v20, %v5731_v9  ;;  %v2890_v12 = vpop.f32.mrb[137].mxu1 }
 0x67d   :  { %v2891_v24 = vadd.f32 %v2890_v12, %v5731_v9  ;;  %v3975_v62 = vpop.f32.mrb[138].mxu1  ;;  %4008 = vmatprep.mubr.msk.bf16.mxu1 %vm3069_vm0, %v3019_v19 }
 0x67e   :  { %v2902_v58 = vadd.f32 %v3975_v62, %v5731_v9  ;;  %v2893_v25 = vpop.f32.mrb[139].mxu1  ;;  %4009 = vmatmul.mubr.msk.bf16.gmra.mrb[164].mxu1 %vm3069_vm0, %v3020_v37  ;;  %v2995_v40 = vmax.f32 %v2899_v21, 0.0 }
 0x67f   :  { %v2894_v4 = vadd.f32 %v2893_v25, %v5731_v9  ;;  %v2993_v33 = vmax.f32 %v2891_v24, 0.0 }
 0x680   :  { %v2996_v0 = vmax.f32 %v2902_v58, 0.0 }
 0x681   :  { %v2994_v26 = vmax.f32 %v2894_v4, 0.0 }
 0x682   :  { %v3022_v63 = vpack.c.bf16 %v2996_v0, %v2995_v40 }
 0x683   :  { %v3021_v41 = vpack.c.bf16 %v2994_v26, %v2993_v33  ;;  %v3978_v11 = vpop.f32.mrb[140].mxu1 }
 0x684   :  { %v2915_v2 = vadd.f32 %v3978_v11, %v5731_v9  ;;  %v2906_v34 = vpop.f32.mrb[141].mxu1 }
 0x685   :  { %v2907_v53 = vadd.f32 %v2906_v34, %v5731_v9  ;;  %v3979_v57 = vpop.f32.mrb[142].mxu1  ;;  %4012 = vmatprep.mubr.msk.bf16.mxu1 %vm3069_vm0, %v3021_v41 }
 0x686   :  { %v2918_v47 = vadd.f32 %v3979_v57, %v5731_v9  ;;  %v2909_v10 = vpop.f32.mrb[143].mxu1  ;;  %4013 = vmatmul.mubr.msk.bf16.gmra.mrb[168].mxu1 %vm3069_vm0, %v3022_v63  ;;  %v2999_v18 = vmax.f32 %v2915_v2, 0.0 }
 0x687   :  { %v2910_v17 = vadd.f32 %v2909_v10, %v5731_v9  ;;  %v2997_v38 = vmax.f32 %v2907_v53, 0.0 }
 0x688   :  { %v3000_v59 = vmax.f32 %v2918_v47, 0.0 }
 0x689   :  { %v2998_v46 = vmax.f32 %v2910_v17, 0.0 }
 0x68a   :  { %v3024_v13 = vpack.c.bf16 %v3000_v59, %v2999_v18 }
 0x68b   :  { %v3023_v32 = vpack.c.bf16 %v2998_v46, %v2997_v38  ;;  %v3982_v42 = vpop.f32.mrb[144].mxu1  ;;  %v3043_v38 = vsub.s32 7, %v4537_v49 }
 0x68c   :  { %v2931_v29 = vadd.f32 %v3982_v42, %v5731_v9  ;;  %v2922_v61 = vpop.f32.mrb[145].mxu1 }
 0x68d   :  { %v2923_v39 = vadd.f32 %v2922_v61, %v5731_v9  ;;  %v3983_v60 = vpop.f32.mrb[146].mxu1  ;;  %4016 = vmatprep.mubr.msk.bf16.mxu1 %vm3069_vm0, %v3023_v32  ;;  %v5795_v46 = vrot.slane %v5612_v23, %v3043_v38 }
 0x68e   :  { %v2934_v28 = vadd.f32 %v3983_v60, %v5731_v9  ;;  %v2925_v22 = vpop.f32.mrb[147].mxu1  ;;  %4017 = vmatmul.mubr.msk.bf16.gmra.mrb[172].mxu1 %vm3069_vm0, %v3024_v13  ;;  %v3003_v45 = vmax.f32 %v2931_v29, 0.0 }
 0x68f   :  { %v2926_v8 = vadd.f32 %v2925_v22, %v5731_v9  ;;  %v3001_v50 = vmax.f32 %v2923_v39, 0.0 }
 0x690   :  { %v3004_v30 = vmax.f32 %v2934_v28, 0.0 }
 0x691   :  { %v3002_v55 = vmax.f32 %v2926_v8, 0.0 }
 0x692   :  { %v3026_v6 = vpack.c.bf16 %v3004_v30, %v3003_v45 }
 0x693   :  { %v3025_v31 = vpack.c.bf16 %v3002_v55, %v3001_v50 }
 0x695   :  { %4020 = vmatprep.mubr.msk.bf16.mxu1 %vm3069_vm0, %v3025_v31 }
 0x696   :  { %4021 = vmatmul.mubr.msk.bf16.gmra.mrb[176].mxu1 %vm3069_vm0, %v3026_v6 }
 0x6d7   :  { %v3986_v44 = vpop.f32.mrb[148].mxu1 }
 0x6d8   :  { %v2947_v5 = vadd.f32 %v3986_v44, %v5731_v9  ;;  %v2938_v3 = vpop.f32.mrb[149].mxu1 }
 0x6d9   :  { %v2939_v15 = vadd.f32 %v2938_v3, %v5731_v9  ;;  %v3987_v36 = vpop.f32.mrb[150].mxu1 }
 0x6da   :  { %v2950_v52 = vadd.f32 %v3987_v36, %v5731_v9  ;;  %v2941_v7 = vpop.f32.mrb[151].mxu1  ;;  %v3007_v43 = vmax.f32 %v2947_v5, 0.0 }
 0x6db   :  { %v2942_v16 = vadd.f32 %v2941_v7, %v5731_v9  ;;  %v3005_v1 = vmax.f32 %v2939_v15, 0.0 }
 0x6dc   :  { %v3008_v35 = vmax.f32 %v2950_v52, 0.0 }
 0x6dd   :  { %v3006_v27 = vmax.f32 %v2942_v16, 0.0 }
 0x6de   :  { %v3028_v14 = vpack.c.bf16 %v3008_v35, %v3007_v43 }
 0x6df   :  { %v3027_v37 = vpack.c.bf16 %v3006_v27, %v3005_v1 }
 0x6e1   :  { %4024 = vmatprep.mubr.msk.bf16.mxu1 %vm3069_vm0, %v3027_v37 }
 0x6e2   :  { %4025 = vmatmul.mubr.msk.bf16.gmra.mrb[180].mxu1 %vm3069_vm0, %v3028_v14 }
 0x6e7   :  { %v3990_v19 = vpop.f32.mrb[152].mxu1 }
 0x6e8   :  { %v2963_v20 = vadd.f32 %v3990_v19, %v5731_v9  ;;  %v2954_v21 = vpop.f32.mrb[153].mxu1 }
 0x6e9   :  { %v2955_v12 = vadd.f32 %v2954_v21, %v5731_v9  ;;  %v3991_v24 = vpop.f32.mrb[154].mxu1 }
 0x6ea   :  { %v2966_v62 = vadd.f32 %v3991_v24, %v5731_v9  ;;  %v2957_v58 = vpop.f32.mrb[155].mxu1  ;;  %v3011_v4 = vmax.f32 %v2963_v20, 0.0 }
 0x6eb   :  { %v2958_v25 = vadd.f32 %v2957_v58, %v5731_v9  ;;  %v3009_v0 = vmax.f32 %v2955_v12, 0.0 }
 0x6ec   :  { %v3012_v40 = vmax.f32 %v2966_v62, 0.0 }
 0x6ed   :  { %v3010_v33 = vmax.f32 %v2958_v25, 0.0 }
 0x6ee   :  { %v3030_v26 = vpack.c.bf16 %v3012_v40, %v3011_v4 }
 0x6ef   :  { %v3029_v63 = vpack.c.bf16 %v3010_v33, %v3009_v0 }
 0x6f1   :  { %4028 = vmatprep.mubr.msk.bf16.mxu1 %vm3069_vm0, %v3029_v63 }
 0x6f2   :  { %4029 = vmatmul.mubr.msk.bf16.gmra.mrb[184].mxu1 %vm3069_vm0, %v3030_v26 }
 0x6f7   :  { %v3994_v56 = vpop.f32.mrb[156].mxu1 }
 0x6f8   :  { %v2979_v41 = vadd.f32 %v3994_v56, %v5731_v9  ;;  %v2970_v11 = vpop.f32.mrb[157].mxu1 }
 0x6f9   :  { %v2971_v2 = vadd.f32 %v2970_v11, %v5731_v9  ;;  %v3995_v34 = vpop.f32.mrb[158].mxu1 }
 0x6fa   :  { %v2982_v54 = vadd.f32 %v3995_v34, %v5731_v9  ;;  %v2973_v53 = vpop.f32.mrb[159].mxu1  ;;  %v3015_v47 = vmax.f32 %v2979_v41, 0.0 }
 0x6fb   :  { %v2974_v57 = vadd.f32 %v2973_v53, %v5731_v9  ;;  %v3013_v17 = vmax.f32 %v2971_v2, 0.0 }
 0x6fc   :  { %v3016_v10 = vmax.f32 %v2982_v54, 0.0 }
 0x6fd   :  { %v3014_v18 = vmax.f32 %v2974_v57, 0.0 }
 0x6fe   :  { %v3032_v59 = vpack.c.bf16 %v3016_v10, %v3015_v47 }
 0x6ff   :  { %v3031_v51 = vpack.c.bf16 %v3014_v18, %v3013_v17 }
 0x701   :  { %4032 = vmatprep.mubr.msk.bf16.mxu1 %vm3069_vm0, %v3031_v51 }
 0x702   :  { %4033 = vmatmul.mubr.msk.bf16.gmra.mrb[188].mxu1 %vm3069_vm0, %v3032_v59 }
 0x749   :  { %v4006_v13 = vpop.f32.mrb[160].mxu1 }
 0x74a   :  { %v3161_v32 = vadd.f32 %v4006_v13, %v5795_v46  ;;  %v3152_v42 = vpop.f32.mrb[161].mxu1 }
 0x74b   :  { %v3153_v9 = vadd.f32 %v3152_v42, %v5795_v46  ;;  %v4007_v29 = vpop.f32.mrb[162].mxu1 }
 0x74c   :  { %v3164_v61 = vadd.f32 %v4007_v29, %v5795_v46  ;;  %v3155_v39 = vpop.f32.mrb[163].mxu1  ;;  %v3281_v28 = vmax.f32 %v3161_v32, 0.0 }
 0x74d   :  { %v3156_v60 = vadd.f32 %v3155_v39, %v5795_v46  ;;  %v3279_v8 = vmax.f32 %v3153_v9, 0.0 }
 0x74e   :  { %v3282_v22 = vmax.f32 %v3164_v61, 0.0 }
 0x74f   :  { %v3280_v45 = vmax.f32 %v3156_v60, 0.0 }
 0x750   :  { %v3312_v30 = vpack.c.bf16 %v3282_v22, %v3281_v28 }
 0x751   :  { %v3311_v50 = vpack.c.bf16 %v3280_v45, %v3279_v8  ;;  %v4010_v23 = vpop.f32.mrb[164].mxu1 }
 0x752   :  { %v3177_v55 = vadd.f32 %v4010_v23, %v5795_v46  ;;  %v3168_v6 = vpop.f32.mrb[165].mxu1 }
 0x753   :  { %v3169_v31 = vadd.f32 %v3168_v6, %v5795_v46  ;;  %v4011_v48 = vpop.f32.mrb[166].mxu1  ;;  %3327 = vxpose.xlu1.c.b16.start [1/8] (narrow) %v3311_v50, 32 }
 0x754   :  { %v3180_v44 = vadd.f32 %v4011_v48, %v5795_v46  ;;  %v3171_v5 = vpop.f32.mrb[167].mxu1  ;;  %v3285_v15 = vmax.f32 %v3177_v55, 0.0 }
 0x755   :  { %v3172_v3 = vadd.f32 %v3171_v5, %v5795_v46  ;;  %v3283_v52 = vmax.f32 %v3169_v31, 0.0 }
 0x756   :  { %v3286_v36 = vmax.f32 %v3180_v44, 0.0 }
 0x757   :  { %v3284_v7 = vmax.f32 %v3172_v3, 0.0  ;;  %3328 = vxpose.xlu1.c.b16.cont [2/8] (narrow) %v3312_v30, 32 }
 0x758   :  { %v3314_v16 = vpack.c.bf16 %v3286_v36, %v3285_v15 }
 0x759   :  { %v3313_v43 = vpack.c.bf16 %v3284_v7, %v3283_v52  ;;  %v4014_v35 = vpop.f32.mrb[168].mxu1 }
 0x75a   :  { %v3193_v1 = vadd.f32 %v4014_v35, %v5795_v46  ;;  %v3184_v27 = vpop.f32.mrb[169].mxu1 }
 0x75b   :  { %v3185_v14 = vadd.f32 %v3184_v27, %v5795_v46  ;;  %v4015_v37 = vpop.f32.mrb[170].mxu1  ;;  %3329 = vxpose.xlu1.c.b16.cont [3/8] (narrow) %v3313_v43, 32 }
 0x75c   :  { %v3196_v19 = vadd.f32 %v4015_v37, %v5795_v46  ;;  %v3187_v20 = vpop.f32.mrb[171].mxu1  ;;  %v3289_v12 = vmax.f32 %v3193_v1, 0.0 }
 0x75d   :  { %v3188_v21 = vadd.f32 %v3187_v20, %v5795_v46  ;;  %v3287_v62 = vmax.f32 %v3185_v14, 0.0 }
 0x75e   :  { %v3290_v24 = vmax.f32 %v3196_v19, 0.0 }
 0x75f   :  { %v3288_v58 = vmax.f32 %v3188_v21, 0.0  ;;  %3330 = vxpose.xlu1.c.b16.cont [4/8] (narrow) %v3314_v16, 32 }
 0x760   :  { %v3316_v25 = vpack.c.bf16 %v3290_v24, %v3289_v12 }
 0x761   :  { %v3315_v4 = vpack.c.bf16 %v3288_v58, %v3287_v62  ;;  %v4018_v40 = vpop.f32.mrb[172].mxu1 }
 0x762   :  { %v3209_v0 = vadd.f32 %v4018_v40, %v5795_v46  ;;  %v3200_v33 = vpop.f32.mrb[173].mxu1 }
 0x763   :  { %v3201_v26 = vadd.f32 %v3200_v33, %v5795_v46  ;;  %v4019_v63 = vpop.f32.mrb[174].mxu1  ;;  %3331 = vxpose.xlu1.c.b16.cont [5/8] (narrow) %v3315_v4, 32 }
 0x764   :  { %v3212_v56 = vadd.f32 %v4019_v63, %v5795_v46  ;;  %v3203_v41 = vpop.f32.mrb[175].mxu1  ;;  %v3293_v2 = vmax.f32 %v3209_v0, 0.0 }
 0x765   :  { %v3204_v11 = vadd.f32 %v3203_v41, %v5795_v46  ;;  %v3291_v54 = vmax.f32 %v3201_v26, 0.0 }
 0x766   :  { %v3294_v34 = vmax.f32 %v3212_v56, 0.0 }
 0x767   :  { %v3292_v53 = vmax.f32 %v3204_v11, 0.0  ;;  %3332 = vxpose.xlu1.c.b16.cont [6/8] (narrow) %v3316_v25, 32 }
 0x768   :  { %v3318_v57 = vpack.c.bf16 %v3294_v34, %v3293_v2  ;;  %v3379_v2 = vpop.permute.xlu1 %3378 }
 0x769   :  { %v3317_v47 = vpack.c.bf16 %v3292_v53, %v3291_v54  ;;  %v4022_v10 = vpop.f32.mrb[176].mxu1 }
 0x76a   :  { %v3225_v17 = vadd.f32 %v4022_v10, %v5795_v46  ;;  %v3216_v18 = vpop.f32.mrb[177].mxu1 }
 0x76b   :  { %v3217_v59 = vadd.f32 %v3216_v18, %v5795_v46  ;;  %v4023_v51 = vpop.f32.mrb[178].mxu1  ;;  %3333 = vxpose.xlu1.c.b16.cont [7/8] (narrow) %v3317_v47, 32 }
 0x76c   :  { %v3228_v38 = vadd.f32 %v4023_v51, %v5795_v46  ;;  %v3219_v13 = vpop.f32.mrb[179].mxu1  ;;  %v3297_v42 = vmax.f32 %v3225_v17, 0.0  ;;  %v3384_v34 = vpop.permute.xlu1 %3383 }
 0x76d   :  { %v3220_v32 = vadd.f32 %v3219_v13, %v5795_v46  ;;  %v3295_v29 = vmax.f32 %v3217_v59, 0.0  ;;  %v3374_v17 = vpop.permute.xlu0 %3373 }
 0x76e   :  { %v3298_v9 = vmax.f32 %v3228_v38, 0.0 }
 0x76f   :  { %v3296_v61 = vmax.f32 %v3220_v32, 0.0  ;;  %3334 = vxpose.xlu1.c.b16.end [8/8] (narrow) %v3318_v57, 32 }
 0x770   :  { %v3320_v39 = vpack.c.bf16 %v3298_v9, %v3297_v42  ;;  %v3389_v54 = vpop.permute.xlu1 %3388 }
 0x771   :  { %v3319_v60 = vpack.c.bf16 %v3296_v61, %v3295_v29 }
 0x773   :  { %3343 = vxpose.xlu0.c.b16.start [1/8] (narrow) %v3319_v60, 32 }
 0x777   :  { %3344 = vxpose.xlu0.c.b16.cont [2/8] (narrow) %v3320_v39, 32 }
 0x7b5   :  { %v4026_v28 = vpop.f32.mrb[180].mxu1 }
 0x7b6   :  { %v3241_v22 = vadd.f32 %v4026_v28, %v5795_v46  ;;  %v3232_v8 = vpop.f32.mrb[181].mxu1 }
 0x7b7   :  { %v3233_v45 = vadd.f32 %v3232_v8, %v5795_v46  ;;  %v4027_v30 = vpop.f32.mrb[182].mxu1 }
 0x7b8   :  { %v3244_v50 = vadd.f32 %v4027_v30, %v5795_v46  ;;  %v3235_v23 = vpop.f32.mrb[183].mxu1  ;;  %v3301_v6 = vmax.f32 %v3241_v22, 0.0 }
 0x7b9   :  { %v3236_v55 = vadd.f32 %v3235_v23, %v5795_v46  ;;  %v3299_v48 = vmax.f32 %v3233_v45, 0.0  ;;  %v3335_v53 = vpop.trf.xlu1 }
 0x7ba   :  { %v3302_v31 = vmax.f32 %v3244_v50, 0.0  ;;  %v3363_v57 = vunpack.c.l.bf16 %v3335_v53  ;;  %v3365_v47 = vunpack.c.h.bf16 %v3335_v53 }
 0x7bb   :  { %v3300_v44 = vmax.f32 %v3236_v55, 0.0 }
 0x7bc   :  { %v3322_v5 = vpack.c.bf16 %v3302_v31, %v3301_v6  ;;  %v3393_v18 = vmul.f32 %v3379_v2, %v3365_v47  ;;  %v3391_v51 = vmul.f32 %v3374_v17, %v3363_v57 }
 0x7bd   :  { %v3321_v3 = vpack.c.bf16 %v3300_v44, %v3299_v48  ;;  %v3336_v10 = vpop.trf.xlu1 }
 0x7be   :  { %v3367_v59 = vunpack.c.l.bf16 %v3336_v10  ;;  %v3399_v13 = vadd.f32 %v3393_v18, %v3391_v51 }
 0x7bf   :  { %3345 = vxpose.xlu0.c.b16.cont [3/8] (narrow) %v3321_v3, 32 }
 0x7c0   :  { %v3395_v38 = vmul.f32 %v3384_v34, %v3367_v59 }
 0x7c2   :  { %v3400_v42 = vadd.f32 %v3399_v13, %v3395_v38 }
 0x7c3   :  { %3346 = vxpose.xlu0.c.b16.cont [4/8] (narrow) %v3322_v5, 32 }
 0x7c5   :  { %v4030_v15 = vpop.f32.mrb[184].mxu1 }
 0x7c6   :  { %v3257_v36 = vadd.f32 %v4030_v15, %v5795_v46  ;;  %v3248_v52 = vpop.f32.mrb[185].mxu1 }
 0x7c7   :  { %v3249_v7 = vadd.f32 %v3248_v52, %v5795_v46  ;;  %v4031_v16 = vpop.f32.mrb[186].mxu1 }
 0x7c8   :  { %v3260_v43 = vadd.f32 %v4031_v16, %v5795_v46  ;;  %v3251_v35 = vpop.f32.mrb[187].mxu1  ;;  %v3305_v27 = vmax.f32 %v3257_v36, 0.0 }
 0x7c9   :  { %v3252_v1 = vadd.f32 %v3251_v35, %v5795_v46  ;;  %v3303_v37 = vmax.f32 %v3249_v7, 0.0  ;;  %v4388_v7 = vmov 1966171168  }
 0x7ca   :  { %v3306_v14 = vmax.f32 %v3260_v43, 0.0  ;;  %v3425_v16 = vunpack.c.l.s4 %v4388_v7 }
 0x7cb   :  { %v3304_v19 = vmax.f32 %v3252_v1, 0.0 }
 0x7cc   :  { %v3324_v20 = vpack.c.bf16 %v3306_v14, %v3305_v27  ;;  %v3426_v27 = vunpack.c.0.s8 %v3425_v16  ;;  %v3418_v14 = vstv %s5855_s9 }
 0x7cd   :  { %v3323_v21 = vpack.c.bf16 %v3304_v19, %v3303_v37 }
 0x7cf   :  { %3347 = vxpose.xlu0.c.b16.cont [5/8] (narrow) %v3323_v21, 32  ;;  %v3429_v21 = vsub.s32 %v3426_v27, %v4537_v49 }
 0x7d3   :  { %3348 = vxpose.xlu0.c.b16.cont [6/8] (narrow) %v3324_v20, 32 }
 0x7d5   :  { %v4034_v12 = vpop.f32.mrb[188].mxu1 }
 0x7d6   :  { %v3273_v24 = vadd.f32 %v4034_v12, %v5795_v46  ;;  %v3264_v62 = vpop.f32.mrb[189].mxu1 }
 0x7d7   :  { %v3265_v58 = vadd.f32 %v3264_v62, %v5795_v46  ;;  %v4035_v25 = vpop.f32.mrb[190].mxu1  ;;  %v5858_v62 = vlaneseq }
 0x7d8   :  { %v3276_v4 = vadd.f32 %v4035_v25, %v5795_v46  ;;  %v3267_v40 = vpop.f32.mrb[191].mxu1  ;;  %v3309_v33 = vmax.f32 %v3273_v24, 0.0 }
 0x7d9   :  { %v3268_v0 = vadd.f32 %v3267_v40, %v5795_v46  ;;  %v3307_v63 = vmax.f32 %v3265_v58, 0.0  ;;  %v3369_v46 = vunpack.c.h.bf16 %v3336_v10  ;;  %vm3441_vm1 = vcmp.lt.s32.totalorder %v5858_v62, 256 }
 0x7da   :  { %v3310_v26 = vmax.f32 %v3276_v4, 0.0 }
 0x7db   :  { %v3308_v56 = vmax.f32 %v3268_v0, 0.0  ;;  %v3397_v32 = vmul.f32 %v3389_v54, %v3369_v46 }
 0x7dc   :  { %v3326_v41 = vpack.c.bf16 %v3310_v26, %v3309_v33 }
 0x7dd   :  { %v3325_v11 = vpack.c.bf16 %v3308_v56, %v3307_v63  ;;  %v3401_v9 = vadd.f32 %v3400_v42, %v3397_v32 }
 0x7df   :  { %3349 = vxpose.xlu0.c.b16.cont [7/8] (narrow) %v3325_v11, 32  ;;  %v3402_v61 = vrot.slane %v3401_v9, 4 }
 0x7e1   :  { %v3403_v45 = vadd.f32 %v3402_v61, %v3401_v9 }
 0x7e3   :  { %3350 = vxpose.xlu0.c.b16.end [8/8] (narrow) %v3326_v41, 32  ;;  %v3404_v6 = vrot.slane %v3403_v45, 2 }
 0x7e5   :  { %v3405_v5 = vadd.f32 %v3404_v6, %v3403_v45 }
 0x7e7   :  { %v3406_v36 = vrot.slane %v3405_v5, 1 }
 0x7e9   :  { %v3407_v35 = vadd.f32 %v3406_v36, %v3405_v5 }
 0x7eb   :  { %v3419_v19 = vadd.f32 %v3418_v14, %v3407_v35 }
 0x82d   :  { %v3351_v29 = vpop.trf.xlu0 }
 0x82e   :  { %v3364_v39 = vunpack.c.l.bf16 %v3351_v29  ;;  %v3366_v60 = vunpack.c.h.bf16 %v3351_v29 }
 0x830   :  { %v3392_v28 = vmul.f32 %v3374_v17, %v3364_v39  ;;  %v3394_v22 = vmul.f32 %v3379_v2, %v3366_v60 }
 0x831   :  { %v3352_v8 = vpop.trf.xlu0 }
 0x832   :  { %v3368_v30 = vunpack.c.l.bf16 %v3352_v8  ;;  %v3370_v50 = vunpack.c.h.bf16 %v3352_v8  ;;  %v3408_v23 = vadd.f32 %v3394_v22, %v3392_v28 }
 0x834   :  { %v3396_v55 = vmul.f32 %v3384_v34, %v3368_v30  ;;  %v3398_v31 = vmul.f32 %v3389_v54, %v3370_v50 }
 0x836   :  { %v3409_v48 = vadd.f32 %v3408_v23, %v3396_v55 }
 0x838   :  { %v3410_v44 = vadd.f32 %v3409_v48, %v3398_v31 }
 0x83a   :  { %v3411_v3 = vrot.slane %v3410_v44, 4 }
 0x83c   :  { %v3412_v15 = vadd.f32 %v3411_v3, %v3410_v44 }
 0x83e   :  { %v3413_v52 = vrot.slane %v3412_v15, 2 }
 0x840   :  { %v3414_v43 = vadd.f32 %v3413_v52, %v3412_v15 }
 0x842   :  { %v3415_v1 = vrot.slane %v3414_v43, 1 }
 0x844   :  { %v3416_v37 = vadd.f32 %v3415_v1, %v3414_v43 }
 0x846   :  { %v3420_v20 = vadd.f32 %v3418_v14, %v3416_v37 }
 0x848   :  { %v3423_v12 = vcombine.low %v3419_v19, %v3420_v20 }
 0x84a   :  { %v3430_v24 = vrot.slane %v3423_v12, %v3429_v21 }
 0x84c   :  { %v3437_v58 = vrot.slane %v3430_v24, %v3429_v21 }
 0x84e   :  { %3443 = vst.msk [vmem:[#allocation9] sm:$0x3] %vm3441_vm1, %v3437_v58 }
 0x84f   :  { %4363 = shalt.err (!%p4360_p0)
}
 0x850   :  { %s4364_s12 = scalar_lea.hbm %s5856_s10, 32 }
 0x851   :  { %p4365_p1 = scmp.ne.s32.totalorder %s5856_s10, %s4364_s12  ;;  %p4368_p2 = scmp.lt.u32.totalorder %s4364_s12, %s5856_s10 }
 0x853   :  { %p4370_p3 = pnand %p4368_p2, %p4365_p1 }
 0x855   :  { %4373 = shalt.err (!%p4370_p3)
}
 0x856   :  { %3453 = dma.vmem_to_hbm [thread:$0]  %s3451_s25, 32, %s5856_s10, [#allocation5]  }
 0x857   :  { %4378 = dma.done.wait [#allocation5], 32  }
 0x858   :  { %4379 = vsyncadd [#allocation5], 4294967264 }
 0x859   :  { %3457 = vsyncpa [#allocation4], 1 }
 0x85a   :  { %3458 = vsyncpa [#allocation7], 1 }
 0x85b   :  { %3459 = vsyncpa [#allocation5], 1 }

</bundles_post_ra>
